<compile_context>
chip_gen: v6e
topology: v6e:2x2x1
jax: 0.10.0
libtpu: 0.0.40
codegen_flags: <defaults>
</compile_context>

<pallas_src>
import math

import jax
import jax.numpy as jnp
from jax.experimental import pallas as pl
from jax.experimental.pallas import tpu as pltpu

LATENT_DIM = 512
N_LEVELS = 18           # W+ latent levels
N_COARSE = 8            # LevelMapper edits the first 8 W+ levels
N_MAPPER_LAYERS = 4
LR_MUL = 0.01
LEAKY_SLOPE = 0.2
FUSED_LRELU_GAIN = math.sqrt(2.0)
IMG_H = IMG_W = 16
IMG_C = 3
IMG_FLAT = IMG_C * IMG_H * IMG_W      # 768 = 6 * 128 lanes (lane-dense output)


# ----------------------------------------------------------------------------
# Single fused kernel:
#   LevelMapper (PixelNorm + 4x EqualLinear w/ fused leaky-relu)
#   + latent_infer[:, :8] += alpha * delta   (full latent_infer written out)
#   + stand-in generator for BOTH latents
#   + display post-processing ((tanh(img)+1)/2), written once in final form.
# ----------------------------------------------------------------------------
def bald_proxy_kernel(alpha_ref, lat_ref, mw_ref, mb_ref, gw_ref,
                      latent_out_ref, img_out_ref):
    # alpha_ref:       (1, 1) f32 in SMEM   alpha * 1.2 * sqrt(2)  (last lrelu gain folded in)
    # lat_ref:         (B, 18, 512) f32     src_latent (read once)
    # mw_ref:          (4, 512, 512) bf16   pre-scaled (in,out) weights, lrelu gains folded in
    # mb_ref:          (4, 1, 512) f32      bias * lr_mul
    # gw_ref:          (512, 768) bf16      stand-in generator projection
    # latent_out_ref:  (B, 18, 512) f32     full latent_infer
    # img_out_ref:     (2B, 768) f32        [bald_target ; inv_source] already in [0, 1]
    B, L, D = lat_ref.shape
    lat = lat_ref[...]                                          # (B, 18, 512) f32
    alpha_eff = alpha_ref[0, 0]                                 # f32 scalar

    # ---- LevelMapper on the coarse slab -------------------------------------
    x = lat[:, :N_COARSE, :].reshape(B * N_COARSE, D)           # rows->sublanes, feats->lanes
    # PixelNorm over the 512-wide feature (lane) dim, f32.
    h = x * jax.lax.rsqrt(jnp.mean(x * x, axis=-1, keepdims=True) + 1e-8)
    for l in range(N_MAPPER_LAYERS):
        # bf16 MXU inputs, f32 accumulate; sqrt(2) gains folded into weights/alpha.
        z = jnp.dot(h.astype(jnp.bfloat16), mw_ref[l],
                    preferred_element_type=jnp.float32) + mb_ref[l]
        h = jnp.where(z >= 0.0, z, LEAKY_SLOPE * z)
    delta = h.reshape(B, N_COARSE, D)                           # (B, 8, 512) f32

    # ---- latent_infer = src_latent; latent_infer[:, :8] += alpha * delta ----
    latent_out_ref[:, :N_COARSE, :] = lat[:, :N_COARSE, :] + alpha_eff * delta
    latent_out_ref[:, N_COARSE:, :] = lat[:, N_COARSE:, :]

    # ---- stand-in generator for BOTH latents + fused display ----------------
    # mean over levels of latent_infer derived algebraically -> the 18-level
    # latent is never re-read:  mean(inf) = mean(src) + alpha * sum(delta) / L.
    mean_src = jnp.mean(lat, axis=1)                                      # (B, 512)
    mean_inf = mean_src + (alpha_eff / L) * jnp.sum(delta, axis=1)        # (B, 512)
    z2 = jnp.concatenate([mean_inf, mean_src], axis=0)                    # (2B, 512)
    img = jnp.dot(z2.astype(jnp.bfloat16), gw_ref[...],
                  preferred_element_type=jnp.float32)                     # (2B, 768)
    # display post-processing: (img + 1) / 2; tanh already lies in [-1, 1] so no clip.
    img_out_ref[...] = 0.5 * jnp.tanh(img) + 0.5


# ----------------------------------------------------------------------------
# Wrapper
# ----------------------------------------------------------------------------
def _vmem_spec():
    return pl.BlockSpec(memory_space=pltpu.MemorySpace.VMEM)


def bald_proxy_forward(src_latent, mapper_w, mapper_b, gen_w, alpha):
    b, l, d = src_latent.shape
    assert d == LATENT_DIM and l >= N_COARSE

    # fold the final fused-lrelu gain into alpha (the other gains live in the
    # weights); traced value -> no recompile when alpha changes.
    alpha_eff = (jnp.asarray(alpha, jnp.float32) * FUSED_LRELU_GAIN).reshape(1, 1)

    latent_infer, img_flat = pl.pallas_call(
        bald_proxy_kernel,
        out_shape=(
            jax.ShapeDtypeStruct((b, l, d), jnp.float32),
            jax.ShapeDtypeStruct((2 * b, IMG_FLAT), jnp.float32),
        ),
        in_specs=[
            pl.BlockSpec(memory_space=pltpu.MemorySpace.SMEM),   # alpha_eff scalar
            _vmem_spec(),                                        # src_latent
            _vmem_spec(),                                        # mapper weights (bf16)
            _vmem_spec(),                                        # mapper biases
            _vmem_spec(),                                        # generator weight (bf16)
        ],
        out_specs=(_vmem_spec(), _vmem_spec()),
    )(alpha_eff, src_latent, mapper_w, mapper_b, gen_w)

    # keep the kernel output lane-dense (2B, 768); reshape to NCHW only here.
    imgs = img_flat.reshape(2 * b, IMG_C, IMG_H, IMG_W)
    bald_target_img = imgs[:b]
    inv_source_img = imgs[b:]

    # matches: visual_list = [display(inv_source_img), display(bald_target_img)]
    return latent_infer, [inv_source_img, bald_target_img]


# ----------------------------------------------------------------------------
# Parameters / reference
# ----------------------------------------------------------------------------
def init_params(key):
    """Deterministic synthetic parameters matching the module's shapes.

    EqualLinear with lr_mul: stored param = randn(out, in) / lr_mul, effective
    weight = param * (1/sqrt(in)) * lr_mul = randn / sqrt(in).  Weights are kept
    pre-scaled, transposed to (in, out) for `x @ W`, the sqrt(2) fused-lrelu gain
    of layer l folded into layer l+1's weight, and cast to bf16 (halves the
    dominant HBM weight DMA; f32 accumulation happens in-kernel).
    """
    k_w, k_g = jax.random.split(key)
    mapper_w = jax.random.normal(
        k_w, (N_MAPPER_LAYERS, LATENT_DIM, LATENT_DIM), jnp.float32
    ) / math.sqrt(LATENT_DIM)
    gain = jnp.array(
        [1.0] + [FUSED_LRELU_GAIN] * (N_MAPPER_LAYERS - 1), jnp.float32
    ).reshape(N_MAPPER_LAYERS, 1, 1)
    mapper_w = (mapper_w * gain).astype(jnp.bfloat16)
    # bias_init = 0  =>  bias * lr_mul = 0; kept f32 (added post-accumulate).
    mapper_b = jnp.zeros((N_MAPPER_LAYERS, 1, LATENT_DIM), jnp.float32)
    # stand-in generator projection, bf16 for the same DMA reason.
    gen_w = (
        jax.random.normal(k_g, (LATENT_DIM, IMG_FLAT), jnp.float32)
        / math.sqrt(LATENT_DIM)
    ).astype(jnp.bfloat16)
    return mapper_w, mapper_b, gen_w


def reference_latent(src_latent, mapper_w, mapper_b, alpha):
    """Pure-JAX reference for latent_infer (same bf16 weights / casts)."""
    b, l, d = src_latent.shape
    x = src_latent[:, :N_COARSE, :].reshape(b * N_COARSE, d)
    h = x * jax.lax.rsqrt(jnp.mean(x * x, axis=-1, keepdims=True) + 1e-8)
    for i in range(N_MAPPER_LAYERS):
        z = jnp.dot(h.astype(jnp.bfloat16), mapper_w[i],
                    preferred_element_type=jnp.float32) + mapper_b[i]
        h = jnp.where(z >= 0.0, z, LEAKY_SLOPE * z)
    delta = h.reshape(b, N_COARSE, d)
    alpha_eff = jnp.float32(alpha) * FUSED_LRELU_GAIN
    return src_latent.at[:, :N_COARSE, :].add(alpha_eff * delta)


if __name__ == "__main__":
    key = jax.random.PRNGKey(0)
    k_lat, k_par = jax.random.split(key)

    B, L = 2, N_LEVELS                                   # W+ latent: (B, 18, 512)
    src_latent = jax.random.normal(k_lat, (B, L, LATENT_DIM), jnp.float32)

    mapper_w, mapper_b, gen_w = init_params(k_par)
    alpha = jnp.float32(0.8 * 1.2)                       # synthetic ckpt alpha * 1.2

    fwd = jax.jit(bald_proxy_forward)
    latent_infer, visual_list = fwd(src_latent, mapper_w, mapper_b, gen_w, alpha)

    jax.block_until_ready(latent_infer)
    for v in visual_list:
        jax.block_until_ready(v)

    assert latent_infer.shape == (B, L, LATENT_DIM)
    assert visual_list[0].shape == (B, IMG_C, IMG_H, IMG_W)
    assert visual_list[1].shape == (B, IMG_C, IMG_H, IMG_W)
    # the 10 fine levels must pass through unchanged
    assert bool(jnp.array_equal(latent_infer[:, N_COARSE:, :], src_latent[:, N_COARSE:, :]))
    # coarse update matches the pure-JAX reference (same bf16 weight path)
    ref = reference_latent(src_latent, mapper_w, mapper_b, alpha)
    assert bool(jnp.allclose(latent_infer, ref, rtol=1e-2, atol=5e-2))
    # images are already display-mapped to [0, 1]
    assert bool(jnp.all((visual_list[0] >= 0.0) & (visual_list[0] <= 1.0)))
    assert bool(jnp.all((visual_list[1] >= 0.0) & (visual_list[1] <= 1.0)))
    print("KERNEL_OK")
</pallas_src>

<mosaic_0001>
module attributes {stable_mosaic.version = 11 : i64} {
  func.func @bald_proxy_kernel(%arg0: memref<1x1xf32, #tpu.memory_space<smem>>, %arg1: memref<2x18x512xf32, #tpu.memory_space<vmem>>, %arg2: memref<4x512x512xbf16, #tpu.memory_space<vmem>>, %arg3: memref<4x1x512xf32, #tpu.memory_space<vmem>>, %arg4: memref<512x768xbf16, #tpu.memory_space<vmem>>, %arg5: memref<2x18x512xf32, #tpu.memory_space<vmem>>, %arg6: memref<4x768xf32, #tpu.memory_space<vmem>>) attributes {dimension_semantics = [], scalar_prefetch = 0 : i64, scratch_operands = 0 : i64, tpu.core_type = #tpu.core_type<tc>} {
    %c0 = arith.constant 0 : index
    %c0_0 = arith.constant 0 : index
    %c0_1 = arith.constant 0 : index
    %0 = vector.load %arg1[%c0, %c0_0, %c0_1] : memref<2x18x512xf32, #tpu.memory_space<vmem>>, vector<2x18x512xf32>
    %c0_2 = arith.constant 0 : index
    %c0_3 = arith.constant 0 : index
    %1 = memref.load %arg0[%c0_2, %c0_3] : memref<1x1xf32, #tpu.memory_space<smem>>
    %2 = vector.extract_strided_slice %0 {offsets = [0, 0, 0], sizes = [2, 8, 512], strides = [1, 1, 1]} : vector<2x18x512xf32> to vector<2x8x512xf32>
    %3 = vector.shape_cast %2 : vector<2x8x512xf32> to vector<16x512xf32>
    %4 = arith.mulf %3, %3 : vector<16x512xf32>
    %cst = arith.constant dense<0.000000e+00> : vector<16xf32>
    %5 = vector.multi_reduction <add>, %4, %cst [1] : vector<16x512xf32> to vector<16xf32>
    %6 = vector.shape_cast %5 : vector<16xf32> to vector<16x1xf32>
    %cst_4 = arith.constant 5.120000e+02 : f32
    %7 = vector.broadcast %cst_4 : f32 to vector<16x1xf32>
    %8 = arith.divf %6, %7 : vector<16x1xf32>
    %cst_5 = arith.constant 9.99999993E-9 : f32
    %9 = vector.broadcast %cst_5 : f32 to vector<16x1xf32>
    %10 = arith.addf %8, %9 : vector<16x1xf32>
    %11 = math.rsqrt %10 : vector<16x1xf32>
    %12 = vector.broadcast %11 : vector<16x1xf32> to vector<16x512xf32>
    %13 = arith.mulf %3, %12 : vector<16x512xf32>
    %14 = arith.truncf %13 : vector<16x512xf32> to vector<16x512xbf16>
    %c0_6 = arith.constant 0 : index
    %c0_7 = arith.constant 0 : index
    %c0_8 = arith.constant 0 : index
    %15 = vector.load %arg2[%c0_6, %c0_7, %c0_8] : memref<4x512x512xbf16, #tpu.memory_space<vmem>>, vector<1x512x512xbf16>
    %16 = vector.shape_cast %15 : vector<1x512x512xbf16> to vector<512x512xbf16>
    %cst_9 = arith.constant dense<0.000000e+00> : vector<16x512xf32>
    %17 = tpu.matmul %14, %16, %cst_9 {dimension_numbers = #tpu.dot_dimension_numbers<[1], [0], [0], [1], [0, 0, 1, 1], [], []>} : vector<16x512xbf16>, vector<512x512xbf16>, vector<16x512xf32> -> vector<16x512xf32>
    %c0_10 = arith.constant 0 : index
    %c0_11 = arith.constant 0 : index
    %c0_12 = arith.constant 0 : index
    %18 = vector.load %arg3[%c0_10, %c0_11, %c0_12] : memref<4x1x512xf32, #tpu.memory_space<vmem>>, vector<1x1x512xf32>
    %19 = vector.shape_cast %18 : vector<1x1x512xf32> to vector<1x512xf32>
    %20 = vector.broadcast %19 : vector<1x512xf32> to vector<16x512xf32>
    %21 = arith.addf %17, %20 : vector<16x512xf32>
    %cst_13 = arith.constant 0.000000e+00 : f32
    %22 = vector.broadcast %cst_13 : f32 to vector<16x512xf32>
    %23 = arith.cmpf oge, %21, %22 : vector<16x512xf32>
    %cst_14 = arith.constant 2.000000e-01 : f32
    %24 = vector.broadcast %cst_14 : f32 to vector<16x512xf32>
    %25 = arith.mulf %24, %21 : vector<16x512xf32>
    %26 = arith.select %23, %21, %25 : vector<16x512xi1>, vector<16x512xf32>
    %27 = arith.truncf %26 : vector<16x512xf32> to vector<16x512xbf16>
    %c1 = arith.constant 1 : index
    %c0_15 = arith.constant 0 : index
    %c0_16 = arith.constant 0 : index
    %28 = vector.load %arg2[%c1, %c0_15, %c0_16] : memref<4x512x512xbf16, #tpu.memory_space<vmem>>, vector<1x512x512xbf16>
    %29 = vector.shape_cast %28 : vector<1x512x512xbf16> to vector<512x512xbf16>
    %cst_17 = arith.constant dense<0.000000e+00> : vector<16x512xf32>
    %30 = tpu.matmul %27, %29, %cst_17 {dimension_numbers = #tpu.dot_dimension_numbers<[1], [0], [0], [1], [0, 0, 1, 1], [], []>} : vector<16x512xbf16>, vector<512x512xbf16>, vector<16x512xf32> -> vector<16x512xf32>
    %c1_18 = arith.constant 1 : index
    %c0_19 = arith.constant 0 : index
    %c0_20 = arith.constant 0 : index
    %31 = vector.load %arg3[%c1_18, %c0_19, %c0_20] : memref<4x1x512xf32, #tpu.memory_space<vmem>>, vector<1x1x512xf32>
    %32 = vector.shape_cast %31 : vector<1x1x512xf32> to vector<1x512xf32>
    %33 = vector.broadcast %32 : vector<1x512xf32> to vector<16x512xf32>
    %34 = arith.addf %30, %33 : vector<16x512xf32>
    %cst_21 = arith.constant 0.000000e+00 : f32
    %35 = vector.broadcast %cst_21 : f32 to vector<16x512xf32>
    %36 = arith.cmpf oge, %34, %35 : vector<16x512xf32>
    %cst_22 = arith.constant 2.000000e-01 : f32
    %37 = vector.broadcast %cst_22 : f32 to vector<16x512xf32>
    %38 = arith.mulf %37, %34 : vector<16x512xf32>
    %39 = arith.select %36, %34, %38 : vector<16x512xi1>, vector<16x512xf32>
    %40 = arith.truncf %39 : vector<16x512xf32> to vector<16x512xbf16>
    %c2 = arith.constant 2 : index
    %c0_23 = arith.constant 0 : index
    %c0_24 = arith.constant 0 : index
    %41 = vector.load %arg2[%c2, %c0_23, %c0_24] : memref<4x512x512xbf16, #tpu.memory_space<vmem>>, vector<1x512x512xbf16>
    %42 = vector.shape_cast %41 : vector<1x512x512xbf16> to vector<512x512xbf16>
    %cst_25 = arith.constant dense<0.000000e+00> : vector<16x512xf32>
    %43 = tpu.matmul %40, %42, %cst_25 {dimension_numbers = #tpu.dot_dimension_numbers<[1], [0], [0], [1], [0, 0, 1, 1], [], []>} : vector<16x512xbf16>, vector<512x512xbf16>, vector<16x512xf32> -> vector<16x512xf32>
    %c2_26 = arith.constant 2 : index
    %c0_27 = arith.constant 0 : index
    %c0_28 = arith.constant 0 : index
    %44 = vector.load %arg3[%c2_26, %c0_27, %c0_28] : memref<4x1x512xf32, #tpu.memory_space<vmem>>, vector<1x1x512xf32>
    %45 = vector.shape_cast %44 : vector<1x1x512xf32> to vector<1x512xf32>
    %46 = vector.broadcast %45 : vector<1x512xf32> to vector<16x512xf32>
    %47 = arith.addf %43, %46 : vector<16x512xf32>
    %cst_29 = arith.constant 0.000000e+00 : f32
    %48 = vector.broadcast %cst_29 : f32 to vector<16x512xf32>
    %49 = arith.cmpf oge, %47, %48 : vector<16x512xf32>
    %cst_30 = arith.constant 2.000000e-01 : f32
    %50 = vector.broadcast %cst_30 : f32 to vector<16x512xf32>
    %51 = arith.mulf %50, %47 : vector<16x512xf32>
    %52 = arith.select %49, %47, %51 : vector<16x512xi1>, vector<16x512xf32>
    %53 = arith.truncf %52 : vector<16x512xf32> to vector<16x512xbf16>
    %c3 = arith.constant 3 : index
    %c0_31 = arith.constant 0 : index
    %c0_32 = arith.constant 0 : index
    %54 = vector.load %arg2[%c3, %c0_31, %c0_32] : memref<4x512x512xbf16, #tpu.memory_space<vmem>>, vector<1x512x512xbf16>
    %55 = vector.shape_cast %54 : vector<1x512x512xbf16> to vector<512x512xbf16>
    %cst_33 = arith.constant dense<0.000000e+00> : vector<16x512xf32>
    %56 = tpu.matmul %53, %55, %cst_33 {dimension_numbers = #tpu.dot_dimension_numbers<[1], [0], [0], [1], [0, 0, 1, 1], [], []>} : vector<16x512xbf16>, vector<512x512xbf16>, vector<16x512xf32> -> vector<16x512xf32>
    %c3_34 = arith.constant 3 : index
    %c0_35 = arith.constant 0 : index
    %c0_36 = arith.constant 0 : index
    %57 = vector.load %arg3[%c3_34, %c0_35, %c0_36] : memref<4x1x512xf32, #tpu.memory_space<vmem>>, vector<1x1x512xf32>
    %58 = vector.shape_cast %57 : vector<1x1x512xf32> to vector<1x512xf32>
    %59 = vector.broadcast %58 : vector<1x512xf32> to vector<16x512xf32>
    %60 = arith.addf %56, %59 : vector<16x512xf32>
    %cst_37 = arith.constant 0.000000e+00 : f32
    %61 = vector.broadcast %cst_37 : f32 to vector<16x512xf32>
    %62 = arith.cmpf oge, %60, %61 : vector<16x512xf32>
    %cst_38 = arith.constant 2.000000e-01 : f32
    %63 = vector.broadcast %cst_38 : f32 to vector<16x512xf32>
    %64 = arith.mulf %63, %60 : vector<16x512xf32>
    %65 = arith.select %62, %60, %64 : vector<16x512xi1>, vector<16x512xf32>
    %66 = vector.shape_cast %65 : vector<16x512xf32> to vector<2x8x512xf32>
    %67 = vector.extract_strided_slice %0 {offsets = [0, 0, 0], sizes = [2, 8, 512], strides = [1, 1, 1]} : vector<2x18x512xf32> to vector<2x8x512xf32>
    %68 = vector.broadcast %1 : f32 to vector<2x8x512xf32>
    %69 = arith.mulf %68, %66 : vector<2x8x512xf32>
    %70 = arith.addf %67, %69 : vector<2x8x512xf32>
    %c0_39 = arith.constant 0 : index
    %c0_40 = arith.constant 0 : index
    %c0_41 = arith.constant 0 : index
    %71 = vector.load %arg5[%c0_39, %c0_40, %c0_41] : memref<2x18x512xf32, #tpu.memory_space<vmem>>, vector<2x8x512xf32>
    tpu.vector_store %arg5[%c0_39, %c0_40, %c0_41], %70 {strides = array<i32>} : memref<2x18x512xf32, #tpu.memory_space<vmem>>, vector<2x8x512xf32>,
    %72 = vector.extract_strided_slice %0 {offsets = [0, 8, 0], sizes = [2, 10, 512], strides = [1, 1, 1]} : vector<2x18x512xf32> to vector<2x10x512xf32>
    %c0_42 = arith.constant 0 : index
    %c8 = arith.constant 8 : index
    %c0_43 = arith.constant 0 : index
    %73 = vector.load %arg5[%c0_42, %c8, %c0_43] : memref<2x18x512xf32, #tpu.memory_space<vmem>>, vector<2x10x512xf32>
    tpu.vector_store %arg5[%c0_42, %c8, %c0_43], %72 {strides = array<i32>} : memref<2x18x512xf32, #tpu.memory_space<vmem>>, vector<2x10x512xf32>,
    %cst_44 = arith.constant dense<0.000000e+00> : vector<2x512xf32>
    %74 = vector.multi_reduction <add>, %0, %cst_44 [1] : vector<2x18x512xf32> to vector<2x512xf32>
    %cst_45 = arith.constant 1.800000e+01 : f32
    %75 = vector.broadcast %cst_45 : f32 to vector<2x512xf32>
    %76 = arith.divf %74, %75 : vector<2x512xf32>
    %cst_46 = arith.constant 1.800000e+01 : f32
    %77 = arith.divf %1, %cst_46 : f32
    %cst_47 = arith.constant dense<0.000000e+00> : vector<2x512xf32>
    %78 = vector.multi_reduction <add>, %66, %cst_47 [1] : vector<2x8x512xf32> to vector<2x512xf32>
    %79 = vector.broadcast %77 : f32 to vector<2x512xf32>
    %80 = arith.mulf %79, %78 : vector<2x512xf32>
    %81 = arith.addf %76, %80 : vector<2x512xf32>
    %82 = tpu.concatenate %81, %76 in 0 : vector<2x512xf32>, vector<2x512xf32> -> vector<4x512xf32>
    %83 = arith.truncf %82 : vector<4x512xf32> to vector<4x512xbf16>
    %c0_48 = arith.constant 0 : index
    %c0_49 = arith.constant 0 : index
    %84 = vector.load %arg4[%c0_48, %c0_49] : memref<512x768xbf16, #tpu.memory_space<vmem>>, vector<512x768xbf16>
    %cst_50 = arith.constant dense<0.000000e+00> : vector<4x768xf32>
    %85 = tpu.matmul %83, %84, %cst_50 {dimension_numbers = #tpu.dot_dimension_numbers<[1], [0], [0], [1], [0, 0, 1, 1], [], []>} : vector<4x512xbf16>, vector<512x768xbf16>, vector<4x768xf32> -> vector<4x768xf32>
    %86 = math.tanh %85 : vector<4x768xf32>
    %cst_51 = arith.constant 5.000000e-01 : f32
    %87 = vector.broadcast %cst_51 : f32 to vector<4x768xf32>
    %88 = arith.mulf %87, %86 : vector<4x768xf32>
    %cst_52 = arith.constant 5.000000e-01 : f32
    %89 = vector.broadcast %cst_52 : f32 to vector<4x768xf32>
    %90 = arith.addf %88, %89 : vector<4x768xf32>
    %c0_53 = arith.constant 0 : index
    %c0_54 = arith.constant 0 : index
    %91 = vector.load %arg6[%c0_53, %c0_54] : memref<4x768xf32, #tpu.memory_space<vmem>>, vector<4x768xf32>
    tpu.vector_store %arg6[%c0_53, %c0_54], %90 {strides = array<i32>} : memref<4x768xf32, #tpu.memory_space<vmem>>, vector<4x768xf32>,
    return
  }
}

</mosaic_0001>

<bundles_post_ra>
// kernel: bald_proxy_forward.1
= control target key start
LH: loop header
LB: loop body
LE: loop exit
PB: predicated region body
PF: predicated region fallthrough
CT: control target
= control target key end

     0   :  { %13 = vsyncpa [#allocation4], 0  ;;  %s8113_s0 = inlined_call_operand.<no memory space> [shape: f32[1,1], index: 0, kind: input, shape index: {}]   ;;  %s8114_s1 = inlined_call_operand.vmem [shape: f32[2,18,512], index: 1, kind: input, shape index: {}]   ;;  %s8115_s2 = inlined_call_operand.hbm [shape: bf16[4,512,512], index: 2, kind: input, shape index: {}]   ;;  %s8116_s3 = inlined_call_operand.hbm [shape: f32[4,1,512], index: 3, kind: input, shape index: {}]   ;;  %s8117_s4 = inlined_call_operand.hbm [shape: bf16[512,768], index: 4, kind: input, shape index: {}]   ;;  %s8118_s5 = inlined_call_operand.vmem [shape: f32[2,18,512], index: 5, kind: output, shape index: {0}]   ;;  %s8119_s6 = inlined_call_operand.vmem [shape: f32[4,768], index: 6, kind: output, shape index: {1}]  }
   0x1   :  { %14 = vsyncpa [#allocation6], 0  ;;  %s7628_s21 = smov [#allocation5]  }
   0x2   :  { %s36_s22 = sshll.u32 %s7628_s21, 4  ;;  %s37_s22 = int_to_ptr.vmem [resolvable:$true] %s36_s22 }
   0x3   :  { %s7572_s23 = scalar_lea.vmem %s37_s22, 256  ;;  %p7577_p1 = scmp.lt.s32.totalorder %s37_s22, %s37_s22 }
   0x4   :  { %p7573_p0 = scmp.ne.s32.totalorder %s37_s22, %s7572_s23  ;;  %p7578_p2 = scmp.lt.s32.totalorder %s7572_s23, %s7572_s23 }
   0x6   :  { %p7579_p3 = por %p7578_p2, %p7577_p1 }
   0x8   :  { %p7580_p4 = pnand %p7579_p3, %p7573_p0 }
   0xa   :  { %7583 = shalt.err (!%p7580_p4)
}
   0xb   :  { %s7629_s24 = smov 64   ;;  %s7630_s25 = smov 4  }
   0xc   :  { %42 = dma.hbm_to_vmem [thread:$0]  %s8116_s3, 256, %s37_s22, [#allocation6], %s7629_s24, %s7629_s24, %s7630_s25  }
   0xd   :  { %s7631_s28 = smov [#allocation3]  }
   0xe   :  { %s24_s29 = sshll.u32 %s7631_s28, 4  ;;  %s25_s29 = int_to_ptr.vmem [resolvable:$true] %s24_s29 }
   0xf   :  { %s7592_s30 = scalar_lea.vmem %s25_s29, 65536  ;;  %p7597_p6 = scmp.lt.s32.totalorder %s25_s29, %s25_s29 }
  0x10   :  { %p7593_p5 = scmp.ne.s32.totalorder %s25_s29, %s7592_s30  ;;  %p7598_p7 = scmp.lt.s32.totalorder %s7592_s30, %s7592_s30 }
  0x12   :  { %p7599_p8 = por %p7598_p7, %p7597_p6 }
  0x14   :  { %p7600_p9 = pnand %p7599_p8, %p7593_p5 }
  0x16   :  { %7603 = shalt.err (!%p7600_p9)
}
  0x17   :  { %s7632_s7 = smov 256   ;;  %s7633_s8 = smov 16  }
  0x18   :  { %30 = dma.hbm_to_vmem [thread:$0]  %s8115_s2, 65536, %s25_s29, [#allocation4], %s7632_s7, %s7632_s7, %s7633_s8  }
  0x19   :  { %s7634_s11 = smov [#allocation7]  }
  0x1a   :  { %s48_s12 = sshll.u32 %s7634_s11, 4  ;;  %s49_s12 = int_to_ptr.vmem [resolvable:$true] %s48_s12 }
  0x1b   :  { %s7612_s3 = scalar_lea.vmem %s49_s12, 24576  ;;  %p7617_p11 = scmp.lt.s32.totalorder %s49_s12, %s49_s12 }
  0x1c   :  { %p7613_p10 = scmp.ne.s32.totalorder %s49_s12, %s7612_s3  ;;  %p7618_p12 = scmp.lt.s32.totalorder %s7612_s3, %s7612_s3 }
  0x1e   :  { %p7619_p13 = por %p7618_p12, %p7617_p11 }
  0x20   :  { %p7620_p0 = pnand %p7619_p13, %p7613_p10 }
  0x22   :  { %7623 = shalt.err (!%p7620_p0)
}
  0x23   :  { %s7635_s13 = smov 384   ;;  %s7636_s14 = smov 24  }
  0x24   :  { %54 = dma.hbm_to_vmem [thread:$0]  %s8117_s4, 24576, %s49_s12, [#allocation6], %s7635_s13, %s7635_s13, %s7636_s14  }
  0x25   :  { %7624 = dma.done.wait [#allocation4], 65536  }
  0x26   :  { %7625 = vsyncadd [#allocation4], 4294901760 }
  0x27   :  { %7626 = dma.done.wait [#allocation6], 24832  }
  0x28   :  { %7627 = vsyncadd [#allocation6], 4294942464  ;;  %v64_v0 = vld [vmem:[%s8114_s1] sm:$0xff]  ;;  %v65_v1 = vld [vmem:[%s8114_s1 + $0x8] sm:$0xff]  ;;  %vm4130_vm0 = vcmask 1041408  }
  0x29   :  { %v66_v2 = vld [vmem:[%s8114_s1 + $0x10] sm:$0xff]  ;;  %v67_v3 = vld [vmem:[%s8114_s1 + $0x18] sm:$0xff]  ;;  %v68_v4 = vld [vmem:[%s8114_s1 + $0x20] sm:$0xff]  ;;  %v89_v6 = vmul.f32 %v64_v0, %v64_v0  ;;  %v90_v7 = vmul.f32 %v65_v1, %v65_v1  ;;  %s4213_s22 = smul.f32 0.055555556, %s8113_s0 }
  0x2a   :  { %v69_v5 = vld [vmem:[%s8114_s1 + $0x28] sm:$0xff]  ;;  %v91_v8 = vmul.f32 %v66_v2, %v66_v2  ;;  %v70_v9 = vld [vmem:[%s8114_s1 + $0x30] sm:$0xff]  ;;  %v71_v10 = vld [vmem:[%s8114_s1 + $0x38] sm:$0xff]  ;;  %4113 = vst [vmem:[%s8118_s5 + $0x20] sm:$0xff] %v68_v4  ;;  %v4129_v12 = vadd.f32 %v68_v4, %v64_v0  ;;  %v92_v17 = vmul.f32 %v67_v3, %v67_v3 }
  0x2b   :  { %v72_v11 = vld [vmem:[%s8114_s1 + $0x40] sm:$0x3]  ;;  %4114 = vst [vmem:[%s8118_s5 + $0x28] sm:$0xff] %v69_v5  ;;  %v4139_v13 = vadd.f32 %v69_v5, %v65_v1  ;;  %v73_v14 = vld [vmem:[%s8114_s1 + $0x48] sm:$0x3]  ;;  %v97_v18 = vadd.f32 %v90_v7, %v89_v6  ;;  %4115 = vst [vmem:[%s8118_s5 + $0x30] sm:$0xff] %v70_v9  ;;  %v4148_v19 = vadd.f32 %v70_v9, %v66_v2 }
  0x2c   :  { %v74_v15 = vld [vmem:[%s8114_s1 + $0x50] sm:$0x3]  ;;  %v75_v16 = vld [vmem:[%s8114_s1 + $0x58] sm:$0x3]  ;;  %4116 = vst [vmem:[%s8118_s5 + $0x38] sm:$0xff] %v71_v10  ;;  %v4157_v20 = vadd.f32 %v71_v10, %v67_v3  ;;  %v4131_v21 = vsel %vm4130_vm0, %v72_v11, 0.0 }
  0x2d   :  { %4117 = vst [vmem:[%s8118_s5 + $0x40] sm:$0x3] %v72_v11  ;;  %4118 = vst [vmem:[%s8118_s5 + $0x48] sm:$0x3] %v73_v14  ;;  %v4140_v22 = vsel %vm4130_vm0, %v73_v14, 0.0  ;;  %v4149_v23 = vsel %vm4130_vm0, %v74_v15, 0.0  ;;  %v98_v27 = vadd.f32 %v97_v18, %v91_v8  ;;  %v7751_v28 = vadd.f32 %v4131_v21, %v4129_v12 }
  0x2e   :  { %4119 = vst [vmem:[%s8118_s5 + $0x50] sm:$0x3] %v74_v15  ;;  %4120 = vst [vmem:[%s8118_s5 + $0x58] sm:$0x3] %v75_v16  ;;  %v4158_v24 = vsel %vm4130_vm0, %v75_v16, 0.0  ;;  %v76_v25 = vld [vmem:[%s8114_s1 + $0x60] sm:$0xff]  ;;  %v7753_v29 = vadd.f32 %v4140_v22, %v4139_v13  ;;  %v7755_v30 = vadd.f32 %v4149_v23, %v4148_v19 }
  0x2f   :  { %v77_v26 = vld [vmem:[%s8114_s1 + $0x68] sm:$0xff]  ;;  %v78_v31 = vld [vmem:[%s8114_s1 + $0x70] sm:$0xff]  ;;  %v79_v32 = vld [vmem:[%s8114_s1 + $0x78] sm:$0xff]  ;;  %v7766_v34 = vadd.f32 %v4158_v24, %v4157_v20  ;;  %v93_v38 = vmul.f32 %v76_v25, %v76_v25  ;;  %v99_v41 = vadd.f32 %v98_v27, %v92_v17 }
  0x30   :  { %v80_v33 = vld [vmem:[%s8114_s1 + $0x80] sm:$0xff]  ;;  %v81_v35 = vld [vmem:[%s8114_s1 + $0x88] sm:$0xff]  ;;  %v82_v36 = vld [vmem:[%s8114_s1 + $0x90] sm:$0xff]  ;;  %v94_v39 = vmul.f32 %v77_v26, %v77_v26  ;;  %v95_v40 = vmul.f32 %v78_v31, %v78_v31  ;;  %v96_v45 = vmul.f32 %v79_v32, %v79_v32 }
  0x31   :  { %v83_v37 = vld [vmem:[%s8114_s1 + $0x98] sm:$0xff]  ;;  %4121 = vst [vmem:[%s8118_s5 + $0x80] sm:$0xff] %v80_v33  ;;  %v84_v42 = vld [vmem:[%s8114_s1 + $0xa0] sm:$0x3]  ;;  %v86_v43 = vld [vmem:[%s8114_s1 + $0xb0] sm:$0x3]  ;;  %v4166_v47 = vadd.f32 %v80_v33, %v76_v25  ;;  %100 = vadd.xlane.f32.xlu0 %v99_v41  ;;  %v4184_v49 = vadd.f32 %v82_v36, %v78_v31 }
  0x32   :  { %4122 = vst [vmem:[%s8118_s5 + $0x88] sm:$0xff] %v81_v35  ;;  %4123 = vst [vmem:[%s8118_s5 + $0x90] sm:$0xff] %v82_v36  ;;  %v87_v44 = vld [vmem:[%s8114_s1 + $0xb8] sm:$0x3]  ;;  %v102_v46 = vadd.f32 %v94_v39, %v93_v38  ;;  %v4167_v48 = vsel %vm4130_vm0, %v84_v42, 0.0  ;;  %v4185_v53 = vsel %vm4130_vm0, %v86_v43, 0.0  ;;  %v4193_v57 = vadd.f32 %v83_v37, %v79_v32 }
  0x33   :  { %4124 = vst [vmem:[%s8118_s5 + $0x98] sm:$0xff] %v83_v37  ;;  %4125 = vst [vmem:[%s8118_s5 + $0xa0] sm:$0x3] %v84_v42  ;;  %v6475_v50 = vld [vmem:[#allocation3 + $0xe4] ss:$16 sps:$4 sm:$0xff]   ;;  %v7808_v52 = vadd.f32 %v4167_v48, %v4166_v47  ;;  %v7811_v56 = vadd.f32 %v4185_v53, %v4184_v49  ;;  %v4194_v58 = vsel %vm4130_vm0, %v87_v44, 0.0 }
  0x34   :  { %4127 = vst [vmem:[%s8118_s5 + $0xb0] sm:$0x3] %v86_v43  ;;  %4128 = vst [vmem:[%s8118_s5 + $0xb8] sm:$0x3] %v87_v44  ;;  %v103_v51 = vadd.f32 %v102_v46, %v95_v40  ;;  %v6477_v54 = vld [vmem:[#allocation3 + $0x2e4] ss:$16 sps:$4 sm:$0xff]   ;;  %916 = vmatprep.subr.bf16.mxu0 %v6475_v50  ;;  %v7814_v63 = vadd.f32 %v4194_v58, %v4193_v57 }
  0x35   :  { %v6479_v55 = vld [vmem:[#allocation3 + $0xe0] ss:$16 sps:$4 sm:$0xff]   ;;  %959 = vmatprep.subr.bf16.mxu1 %v6477_v54  ;;  %v6481_v61 = vld [vmem:[#allocation3 + $0xc4] ss:$16 sps:$4 sm:$0xff]  }
  0x36   :  { %v6480_v59 = vld [vmem:[#allocation3 + $0x2e0] ss:$16 sps:$4 sm:$0xff]   ;;  %v104_v60 = vadd.f32 %v103_v51, %v96_v45  ;;  %917 = vmatpush1.bf16.msra.mxu0 %v6479_v55  ;;  %v6483_v62 = vld [vmem:[#allocation3 + $0x2c4] ss:$16 sps:$4 sm:$0xff]  }
  0x37   :  { %960 = vmatpush1.bf16.msra.mxu1 %v6480_v59  ;;  %v6485_v0 = vld [vmem:[#allocation3 + $0xc0] ss:$16 sps:$4 sm:$0xff]   ;;  %918 = vmatprep.subr.bf16.mxu0 %v6481_v61  ;;  %v6487_v2 = vld [vmem:[#allocation3 + $0xa4] ss:$16 sps:$4 sm:$0xff]  }
  0x38   :  { %v6486_v1 = vld [vmem:[#allocation3 + $0x2c0] ss:$16 sps:$4 sm:$0xff]   ;;  %105 = vadd.xlane.f32.xlu0 %v104_v60  ;;  %961 = vmatprep.subr.bf16.mxu1 %v6483_v62  ;;  %v6489_v3 = vld [vmem:[#allocation3 + $0x2a4] ss:$16 sps:$4 sm:$0xff]  }
  0x39   :  { %v6491_v4 = vld [vmem:[#allocation3 + $0xa0] ss:$16 sps:$4 sm:$0xff]   ;;  %v6493_v6 = vld [vmem:[#allocation3 + $0x84] ss:$16 sps:$4 sm:$0xff]  }
  0x3a   :  { %919 = vmatpush1.bf16.msra.mxu0 %v6485_v0  ;;  %v6492_v5 = vld [vmem:[#allocation3 + $0x2a0] ss:$16 sps:$4 sm:$0xff]   ;;  %v6495_v7 = vld [vmem:[#allocation3 + $0x284] ss:$16 sps:$4 sm:$0xff]  }
  0x3b   :  { %962 = vmatpush1.bf16.msra.mxu1 %v6486_v1  ;;  %920 = vmatprep.subr.bf16.mxu0 %v6487_v2  ;;  %v6497_v8 = vld [vmem:[#allocation3 + $0x80] ss:$16 sps:$4 sm:$0xff]   ;;  %v6499_v10 = vld [vmem:[#allocation3 + $0x64] ss:$16 sps:$4 sm:$0xff]   ;;  %v6573_v1 = vld [vmem:[#allocation3 + $0xec] ss:$16 sps:$4 sm:$0xff]  }
  0x3c   :  { %963 = vmatprep.subr.bf16.mxu1 %v6489_v3  ;;  %v6498_v9 = vld [vmem:[#allocation3 + $0x280] ss:$16 sps:$4 sm:$0xff]   ;;  %v6501_v11 = vld [vmem:[#allocation3 + $0x264] ss:$16 sps:$4 sm:$0xff]   ;;  %v6576_v2 = vld [vmem:[#allocation3 + $0x2ec] ss:$16 sps:$4 sm:$0xff]  }
  0x3d   :  { %v6503_v12 = vld [vmem:[#allocation3 + $0x60] ss:$16 sps:$4 sm:$0xff]   ;;  %v6505_v14 = vld [vmem:[#allocation3 + $0x44] ss:$16 sps:$4 sm:$0xff]  }
  0x3e   :  { %921 = vmatpush1.bf16.msra.mxu0 %v6491_v4  ;;  %v6504_v13 = vld [vmem:[#allocation3 + $0x260] ss:$16 sps:$4 sm:$0xff]   ;;  %v6507_v15 = vld [vmem:[#allocation3 + $0x244] ss:$16 sps:$4 sm:$0xff]  }
  0x3f   :  { %964 = vmatpush1.bf16.msra.mxu1 %v6492_v5  ;;  %922 = vmatprep.subr.bf16.mxu0 %v6493_v6  ;;  %v6509_v16 = vld [vmem:[#allocation3 + $0x40] ss:$16 sps:$4 sm:$0xff]   ;;  %v6511_v18 = vld [vmem:[#allocation3 + $0x24] ss:$16 sps:$4 sm:$0xff]  }
  0x40   :  { %965 = vmatprep.subr.bf16.mxu1 %v6495_v7  ;;  %v6510_v17 = vld [vmem:[#allocation3 + $0x240] ss:$16 sps:$4 sm:$0xff]   ;;  %v6513_v19 = vld [vmem:[#allocation3 + $0x224] ss:$16 sps:$4 sm:$0xff]  }
  0x41   :  { %v6515_v20 = vld [vmem:[#allocation3 + $0x20] ss:$16 sps:$4 sm:$0xff]   ;;  %v6517_v22 = vld [vmem:[#allocation3 + $0x4] ss:$16 sps:$4 sm:$0xff]  }
  0x42   :  { %923 = vmatpush1.bf16.msra.mxu0 %v6497_v8  ;;  %v6516_v21 = vld [vmem:[#allocation3 + $0x220] ss:$16 sps:$4 sm:$0xff]   ;;  %v6519_v23 = vld [vmem:[#allocation3 + $0x204] ss:$16 sps:$4 sm:$0xff]  }
  0x43   :  { %966 = vmatpush1.bf16.msra.mxu1 %v6498_v9  ;;  %924 = vmatprep.subr.bf16.mxu0 %v6499_v10  ;;  %v6521_v24 = vld [vmem:[#allocation3] ss:$16 sps:$4 sm:$0xff]   ;;  %v6523_v26 = vld [vmem:[#allocation3 + $0x1e4] ss:$16 sps:$4 sm:$0xff]  }
  0x44   :  { %967 = vmatprep.subr.bf16.mxu1 %v6501_v11  ;;  %v6522_v25 = vld [vmem:[#allocation3 + $0x200] ss:$16 sps:$4 sm:$0xff]   ;;  %v6525_v27 = vld [vmem:[#allocation3 + $0x3e4] ss:$16 sps:$4 sm:$0xff]   ;;  %v7547_v11 = vld [vmem:[%s8114_s1 + $0x8] sm:$0xff] }
  0x45   :  { %v6527_v31 = vld [vmem:[#allocation3 + $0x1e0] ss:$16 sps:$4 sm:$0xff]   ;;  %v6529_v33 = vld [vmem:[#allocation3 + $0x1c4] ss:$16 sps:$4 sm:$0xff]  }
  0x46   :  { %925 = vmatpush1.bf16.msra.mxu0 %v6503_v12  ;;  %v6528_v32 = vld [vmem:[#allocation3 + $0x3e0] ss:$16 sps:$4 sm:$0xff]   ;;  %v6531_v35 = vld [vmem:[#allocation3 + $0x3c4] ss:$16 sps:$4 sm:$0xff]  }
  0x47   :  { %968 = vmatpush1.bf16.msra.mxu1 %v6504_v13  ;;  %926 = vmatprep.subr.bf16.mxu0 %v6505_v14  ;;  %v6533_v36 = vld [vmem:[#allocation3 + $0x1c0] ss:$16 sps:$4 sm:$0xff]   ;;  %v6535_v38 = vld [vmem:[#allocation3 + $0x1a4] ss:$16 sps:$4 sm:$0xff]   ;;  %v7548_v13 = vld [vmem:[%s8114_s1 + $0x18] sm:$0xff] }
  0x48   :  { %969 = vmatprep.subr.bf16.mxu1 %v6507_v15  ;;  %v6534_v37 = vld [vmem:[#allocation3 + $0x3c0] ss:$16 sps:$4 sm:$0xff]   ;;  %v6537_v39 = vld [vmem:[#allocation3 + $0x3a4] ss:$16 sps:$4 sm:$0xff]  }
  0x49   :  { %v6539_v40 = vld [vmem:[#allocation3 + $0x1a0] ss:$16 sps:$4 sm:$0xff]   ;;  %v6541_v42 = vld [vmem:[#allocation3 + $0x184] ss:$16 sps:$4 sm:$0xff]  }
  0x4a   :  { %927 = vmatpush1.bf16.msra.mxu0 %v6509_v16  ;;  %v6540_v41 = vld [vmem:[#allocation3 + $0x3a0] ss:$16 sps:$4 sm:$0xff]   ;;  %v6543_v43 = vld [vmem:[#allocation3 + $0x384] ss:$16 sps:$4 sm:$0xff]  }
  0x4b   :  { %970 = vmatpush1.bf16.msra.mxu1 %v6510_v17  ;;  %928 = vmatprep.subr.bf16.mxu0 %v6511_v18  ;;  %v6545_v44 = vld [vmem:[#allocation3 + $0x180] ss:$16 sps:$4 sm:$0xff]   ;;  %v6547_v46 = vld [vmem:[#allocation3 + $0x164] ss:$16 sps:$4 sm:$0xff]  }
  0x4c   :  { %971 = vmatprep.subr.bf16.mxu1 %v6513_v19  ;;  %v6546_v45 = vld [vmem:[#allocation3 + $0x380] ss:$16 sps:$4 sm:$0xff]   ;;  %v6549_v47 = vld [vmem:[#allocation3 + $0x364] ss:$16 sps:$4 sm:$0xff]   ;;  %v7551_v19 = vld [vmem:[%s8114_s1 + $0x68] sm:$0xff] }
  0x4d   :  { %v6551_v48 = vld [vmem:[#allocation3 + $0x160] ss:$16 sps:$4 sm:$0xff]   ;;  %v6553_v50 = vld [vmem:[#allocation3 + $0x144] ss:$16 sps:$4 sm:$0xff]  }
  0x4e   :  { %929 = vmatpush1.bf16.msra.mxu0 %v6515_v20  ;;  %v6552_v49 = vld [vmem:[#allocation3 + $0x360] ss:$16 sps:$4 sm:$0xff]   ;;  %v6555_v51 = vld [vmem:[#allocation3 + $0x344] ss:$16 sps:$4 sm:$0xff]  }
  0x4f   :  { %972 = vmatpush1.bf16.msra.mxu1 %v6516_v21  ;;  %930 = vmatprep.subr.bf16.mxu0 %v6517_v22  ;;  %v6557_v53 = vld [vmem:[#allocation3 + $0x140] ss:$16 sps:$4 sm:$0xff]   ;;  %v6559_v55 = vld [vmem:[#allocation3 + $0x124] ss:$16 sps:$4 sm:$0xff]   ;;  %v7552_v21 = vld [vmem:[%s8114_s1 + $0x78] sm:$0xff] }
  0x50   :  { %973 = vmatprep.subr.bf16.mxu1 %v6519_v23  ;;  %v6558_v54 = vld [vmem:[#allocation3 + $0x340] ss:$16 sps:$4 sm:$0xff]   ;;  %v6561_v57 = vld [vmem:[#allocation3 + $0x324] ss:$16 sps:$4 sm:$0xff]   ;;  %v6571_v23 = vld [vmem:[#allocation3 + $0xe8] ss:$16 sps:$4 sm:$0xff]  }
  0x51   :  { %v6563_v58 = vld [vmem:[#allocation3 + $0x120] ss:$16 sps:$4 sm:$0xff]   ;;  %v6565_v60 = vld [vmem:[#allocation3 + $0x104] ss:$16 sps:$4 sm:$0xff]  }
  0x52   :  { %931 = vmatpush1.bf16.msra.mxu0 %v6521_v24  ;;  %v6564_v59 = vld [vmem:[#allocation3 + $0x320] ss:$16 sps:$4 sm:$0xff]   ;;  %v6567_v61 = vld [vmem:[#allocation3 + $0x304] ss:$16 sps:$4 sm:$0xff]   ;;  %v6574_v24 = vld [vmem:[#allocation3 + $0x2e8] ss:$16 sps:$4 sm:$0xff]  }
  0x53   :  { %974 = vmatpush1.bf16.msra.mxu1 %v6522_v25  ;;  %932 = vmatprep.subr.bf16.mxu0 %v6523_v26  ;;  %v6569_v62 = vld [vmem:[#allocation3 + $0x100] ss:$16 sps:$4 sm:$0xff]  }
  0x54   :  { %975 = vmatprep.subr.bf16.mxu1 %v6525_v27  ;;  %v6570_v0 = vld [vmem:[#allocation3 + $0x300] ss:$16 sps:$4 sm:$0xff]  }
  0x55   :  { %v7549_v15 = vld [vmem:[%s8114_s1] sm:$0xff]  ;;  %v7550_v17 = vld [vmem:[%s8114_s1 + $0x10] sm:$0xff] }
  0x56   :  { %933 = vmatpush2.bf16.msra.mxu0 %v6527_v31  ;;  %v7553_v25 = vld [vmem:[%s8114_s1 + $0x60] sm:$0xff]  ;;  %v7554_v27 = vld [vmem:[%s8114_s1 + $0x70] sm:$0xff] }
  0x57   :  { %976 = vmatpush2.bf16.msra.mxu1 %v6528_v32  ;;  %934 = vmatprep.subr.bf16.mxu0 %v6529_v33 }
  0x58   :  { %977 = vmatprep.subr.bf16.mxu1 %v6531_v35 }
  0x5a   :  { %935 = vmatpush2.bf16.msra.mxu0 %v6533_v36 }
  0x5b   :  { %978 = vmatpush2.bf16.msra.mxu1 %v6534_v37  ;;  %936 = vmatprep.subr.bf16.mxu0 %v6535_v38  ;;  %v6579_v37 = vld [vmem:[#allocation3 + $0xcc] ss:$16 sps:$4 sm:$0xff]  }
  0x5c   :  { %979 = vmatprep.subr.bf16.mxu1 %v6537_v39  ;;  %v6582_v38 = vld [vmem:[#allocation3 + $0x2cc] ss:$16 sps:$4 sm:$0xff]   ;;  %v6577_v39 = vld [vmem:[#allocation3 + $0xc8] ss:$16 sps:$4 sm:$0xff]  }
  0x5e   :  { %937 = vmatpush2.bf16.msra.mxu0 %v6539_v40  ;;  %v6580_v40 = vld [vmem:[#allocation3 + $0x2c8] ss:$16 sps:$4 sm:$0xff]  }
  0x5f   :  { %980 = vmatpush2.bf16.msra.mxu1 %v6540_v41  ;;  %938 = vmatprep.subr.bf16.mxu0 %v6541_v42  ;;  %v6585_v41 = vld [vmem:[#allocation3 + $0xac] ss:$16 sps:$4 sm:$0xff]  }
  0x60   :  { %981 = vmatprep.subr.bf16.mxu1 %v6543_v43  ;;  %v6588_v42 = vld [vmem:[#allocation3 + $0x2ac] ss:$16 sps:$4 sm:$0xff]   ;;  %v6583_v43 = vld [vmem:[#allocation3 + $0xa8] ss:$16 sps:$4 sm:$0xff]  }
  0x62   :  { %939 = vmatpush2.bf16.msra.mxu0 %v6545_v44  ;;  %v6586_v44 = vld [vmem:[#allocation3 + $0x2a8] ss:$16 sps:$4 sm:$0xff]  }
  0x63   :  { %982 = vmatpush2.bf16.msra.mxu1 %v6546_v45  ;;  %940 = vmatprep.subr.bf16.mxu0 %v6547_v46  ;;  %v6591_v45 = vld [vmem:[#allocation3 + $0x8c] ss:$16 sps:$4 sm:$0xff]  }
  0x64   :  { %983 = vmatprep.subr.bf16.mxu1 %v6549_v47  ;;  %v6594_v46 = vld [vmem:[#allocation3 + $0x28c] ss:$16 sps:$4 sm:$0xff]   ;;  %v6589_v47 = vld [vmem:[#allocation3 + $0x88] ss:$16 sps:$4 sm:$0xff]  }
  0x66   :  { %941 = vmatpush2.bf16.msra.mxu0 %v6551_v48  ;;  %v6592_v48 = vld [vmem:[#allocation3 + $0x288] ss:$16 sps:$4 sm:$0xff]  }
  0x67   :  { %984 = vmatpush2.bf16.msra.mxu1 %v6552_v49  ;;  %942 = vmatprep.subr.bf16.mxu0 %v6553_v50  ;;  %v6597_v49 = vld [vmem:[#allocation3 + $0x6c] ss:$16 sps:$4 sm:$0xff]  }
  0x68   :  { %985 = vmatprep.subr.bf16.mxu1 %v6555_v51  ;;  %v6600_v50 = vld [vmem:[#allocation3 + $0x26c] ss:$16 sps:$4 sm:$0xff]   ;;  %v6595_v51 = vld [vmem:[#allocation3 + $0x68] ss:$16 sps:$4 sm:$0xff]  }
  0x6a   :  { %943 = vmatpush2.bf16.msra.mxu0 %v6557_v53  ;;  %v6598_v53 = vld [vmem:[#allocation3 + $0x268] ss:$16 sps:$4 sm:$0xff]  }
  0x6b   :  { %986 = vmatpush2.bf16.msra.mxu1 %v6558_v54  ;;  %944 = vmatprep.subr.bf16.mxu0 %v6559_v55  ;;  %v6603_v54 = vld [vmem:[#allocation3 + $0x4c] ss:$16 sps:$4 sm:$0xff]  }
  0x6c   :  { %987 = vmatprep.subr.bf16.mxu1 %v6561_v57  ;;  %v6606_v55 = vld [vmem:[#allocation3 + $0x24c] ss:$16 sps:$4 sm:$0xff]   ;;  %v6601_v57 = vld [vmem:[#allocation3 + $0x48] ss:$16 sps:$4 sm:$0xff]  }
  0x6e   :  { %945 = vmatpush2.bf16.msra.mxu0 %v6563_v58  ;;  %v6604_v58 = vld [vmem:[#allocation3 + $0x248] ss:$16 sps:$4 sm:$0xff]  }
  0x6f   :  { %988 = vmatpush2.bf16.msra.mxu1 %v6564_v59  ;;  %946 = vmatprep.subr.bf16.mxu0 %v6565_v60  ;;  %v6609_v59 = vld [vmem:[#allocation3 + $0x2c] ss:$16 sps:$4 sm:$0xff]  }
  0x70   :  { %989 = vmatprep.subr.bf16.mxu1 %v6567_v61  ;;  %v6612_v60 = vld [vmem:[#allocation3 + $0x22c] ss:$16 sps:$4 sm:$0xff]   ;;  %v6607_v61 = vld [vmem:[#allocation3 + $0x28] ss:$16 sps:$4 sm:$0xff]  }
  0x72   :  { %947 = vmatpush2.bf16.msra.mxu0 %v6569_v62  ;;  %v6610_v62 = vld [vmem:[#allocation3 + $0x228] ss:$16 sps:$4 sm:$0xff]  }
  0x73   :  { %990 = vmatpush2.bf16.msra.mxu1 %v6570_v0  ;;  %1002 = vmatprep.subr.bf16.mxu0 %v6573_v1  ;;  %v6615_v0 = vld [vmem:[#allocation3 + $0xc] ss:$16 sps:$4 sm:$0xff]  }
  0x74   :  { %1045 = vmatprep.subr.bf16.mxu1 %v6576_v2  ;;  %v6618_v1 = vld [vmem:[#allocation3 + $0x20c] ss:$16 sps:$4 sm:$0xff]   ;;  %v6613_v2 = vld [vmem:[#allocation3 + $0x8] ss:$16 sps:$4 sm:$0xff]  }
  0xba   :  { %v101_v3 = vpop.xlane.xlu0 %100 }
  0xbb   :  { %v108_v4 = vmul.f32 0.001953125, %v101_v3  ;;  %v6616_v3 = vld [vmem:[#allocation3 + $0x208] ss:$16 sps:$4 sm:$0xff]  }
  0xbd   :  { %v110_v5 = vadd.f32 1e-08, %v108_v4  ;;  %v6621_v4 = vld [vmem:[#allocation3 + $0x1ec] ss:$16 sps:$4 sm:$0xff]  }
  0xbf   :  { %7531 = vrsqrt.f32 %v110_v5  ;;  %v6624_v5 = vld [vmem:[#allocation3 + $0x3ec] ss:$16 sps:$4 sm:$0xff]  }
  0xc1   :  { %v106_v6 = vpop.xlane.xlu0 %105 }
  0xc2   :  { %v109_v7 = vmul.f32 0.001953125, %v106_v6  ;;  %v6619_v6 = vld [vmem:[#allocation3 + $0x1e8] ss:$16 sps:$4 sm:$0xff]  }
  0xc4   :  { %v111_v8 = vadd.f32 1e-08, %v109_v7  ;;  %v6622_v7 = vld [vmem:[#allocation3 + $0x3e8] ss:$16 sps:$4 sm:$0xff]  }
  0xc6   :  { %7533 = vrsqrt.f32 %v111_v8  ;;  %v6627_v8 = vld [vmem:[#allocation3 + $0x1cc] ss:$16 sps:$4 sm:$0xff]  }
  0xcc   :  { %v7532_v9 = vpop.eup %7531 }
  0xcd   :  { %v115_v12 = vmul.f32 %v7547_v11, %v7532_v9  ;;  %v117_v14 = vmul.f32 %v7548_v13, %v7532_v9  ;;  %v114_v16 = vmul.f32 %v7549_v15, %v7532_v9  ;;  %v116_v18 = vmul.f32 %v7550_v17, %v7532_v9  ;;  %v6630_v9 = vld [vmem:[#allocation3 + $0x3cc] ss:$16 sps:$4 sm:$0xff]   ;;  %v6628_v11 = vld [vmem:[#allocation3 + $0x3c8] ss:$16 sps:$4 sm:$0xff]  }
  0xce   :  { %v6636_v13 = vld [vmem:[#allocation3 + $0x3ac] ss:$16 sps:$4 sm:$0xff]   ;;  %v6634_v15 = vld [vmem:[#allocation3 + $0x3a8] ss:$16 sps:$4 sm:$0xff]  }
  0xcf   :  { %v6642_v17 = vld [vmem:[#allocation3 + $0x38c] ss:$16 sps:$4 sm:$0xff]  }
  0xd3   :  { %v7534_v10 = vpop.eup %7533 }
  0xd4   :  { %v119_v20 = vmul.f32 %v7551_v19, %v7534_v10  ;;  %v121_v22 = vmul.f32 %v7552_v21, %v7534_v10  ;;  %v118_v26 = vmul.f32 %v7553_v25, %v7534_v10  ;;  %v120_v31 = vmul.f32 %v7554_v27, %v7534_v10  ;;  %v6625_v10 = vld [vmem:[#allocation3 + $0x1c8] ss:$16 sps:$4 sm:$0xff]   ;;  %v6648_v21 = vld [vmem:[#allocation3 + $0x36c] ss:$16 sps:$4 sm:$0xff]  }
  0xd5   :  { %v6640_v19 = vld [vmem:[#allocation3 + $0x388] ss:$16 sps:$4 sm:$0xff]   ;;  %v6654_v25 = vld [vmem:[#allocation3 + $0x34c] ss:$16 sps:$4 sm:$0xff]  }
  0xd6   :  { %v123_v32 = vpack.c.bf16 %v119_v20, %v115_v12  ;;  %v125_v33 = vpack.c.bf16 %v121_v22, %v117_v14  ;;  %v7840_v35 = vpack.c.bf16 %v118_v26, %v114_v16  ;;  %v7842_v36 = vpack.c.bf16 %v120_v31, %v116_v18  ;;  %v6633_v12 = vld [vmem:[#allocation3 + $0x1ac] ss:$16 sps:$4 sm:$0xff]   ;;  %v6631_v14 = vld [vmem:[#allocation3 + $0x1a8] ss:$16 sps:$4 sm:$0xff]  }
  0xd7   :  { %v6639_v16 = vld [vmem:[#allocation3 + $0x18c] ss:$16 sps:$4 sm:$0xff]   ;;  %v6637_v18 = vld [vmem:[#allocation3 + $0x188] ss:$16 sps:$4 sm:$0xff]  }
  0xd8   :  { %948 = vmatprep.mubr.bf16.mxu0 %v123_v32  ;;  %991 = vmatprep.mubr.bf16.mxu1 %v125_v33  ;;  %v6645_v20 = vld [vmem:[#allocation3 + $0x16c] ss:$16 sps:$4 sm:$0xff]   ;;  %v6643_v22 = vld [vmem:[#allocation3 + $0x168] ss:$16 sps:$4 sm:$0xff]  }
  0xd9   :  { %949 = vmatmul.mubr.bf16.vlgmr.msra.gmra.mxu0 %v7840_v35  ;;  %992 = vmatmul.mubr.bf16.vlgmr.msra.gmra.mxu1 %v7842_v36  ;;  %v6649_v26 = vld [vmem:[#allocation3 + $0x148] ss:$16 sps:$4 sm:$0xff]   ;;  %v6657_v31 = vld [vmem:[#allocation3 + $0x12c] ss:$16 sps:$4 sm:$0xff]  }
  0xda   :  { %1003 = vmatpush1.bf16.msra.mxu0 %v6571_v23  ;;  %1046 = vmatpush1.bf16.msra.mxu1 %v6574_v24  ;;  %v6646_v23 = vld [vmem:[#allocation3 + $0x368] ss:$16 sps:$4 sm:$0xff]   ;;  %v6651_v24 = vld [vmem:[#allocation3 + $0x14c] ss:$16 sps:$4 sm:$0xff]  }
  0xdb   :  { %1034 = vmatprep.mubr.bf16.mxu0 %v123_v32  ;;  %1077 = vmatprep.mubr.bf16.mxu1 %v125_v33  ;;  %v6652_v27 = vld [vmem:[#allocation3 + $0x348] ss:$16 sps:$4 sm:$0xff]   ;;  %v6660_v32 = vld [vmem:[#allocation3 + $0x32c] ss:$16 sps:$4 sm:$0xff]  }
  0xdc   :  { %1004 = vmatprep.subr.bf16.mxu0 %v6579_v37  ;;  %1047 = vmatprep.subr.bf16.mxu1 %v6582_v38  ;;  %v6655_v33 = vld [vmem:[#allocation3 + $0x128] ss:$16 sps:$4 sm:$0xff]   ;;  %v6663_v38 = vld [vmem:[#allocation3 + $0x10c] ss:$16 sps:$4 sm:$0xff]  }
  0xdd   :  { %v6658_v37 = vld [vmem:[#allocation3 + $0x328] ss:$16 sps:$4 sm:$0xff]  }
  0xde   :  { %1005 = vmatpush1.bf16.msra.mxu0 %v6577_v39  ;;  %1048 = vmatpush1.bf16.msra.mxu1 %v6580_v40  ;;  %v6666_v39 = vld [vmem:[#allocation3 + $0x30c] ss:$16 sps:$4 sm:$0xff]   ;;  %v6661_v40 = vld [vmem:[#allocation3 + $0x108] ss:$16 sps:$4 sm:$0xff]  }
  0xdf   :  { %1006 = vmatprep.subr.bf16.mxu0 %v6585_v41  ;;  %1049 = vmatprep.subr.bf16.mxu1 %v6588_v42  ;;  %v6664_v41 = vld [vmem:[#allocation3 + $0x308] ss:$16 sps:$4 sm:$0xff]   ;;  %v6669_v42 = vld [vmem:[#allocation3 + $0x4e4] ss:$16 sps:$4 sm:$0xff]  }
  0xe2   :  { %1007 = vmatpush1.bf16.msra.mxu0 %v6583_v43  ;;  %1050 = vmatpush1.bf16.msra.mxu1 %v6586_v44  ;;  %v6667_v43 = vld [vmem:[#allocation3 + $0x4e0] ss:$16 sps:$4 sm:$0xff]   ;;  %v6672_v44 = vld [vmem:[#allocation3 + $0x4c4] ss:$16 sps:$4 sm:$0xff]  }
  0xe3   :  { %1008 = vmatprep.subr.bf16.mxu0 %v6591_v45  ;;  %1051 = vmatprep.subr.bf16.mxu1 %v6594_v46  ;;  %v6670_v45 = vld [vmem:[#allocation3 + $0x4c0] ss:$16 sps:$4 sm:$0xff]   ;;  %v6675_v46 = vld [vmem:[#allocation3 + $0x4a4] ss:$16 sps:$4 sm:$0xff]  }
  0xe6   :  { %1009 = vmatpush1.bf16.msra.mxu0 %v6589_v47  ;;  %1052 = vmatpush1.bf16.msra.mxu1 %v6592_v48  ;;  %v6673_v47 = vld [vmem:[#allocation3 + $0x4a0] ss:$16 sps:$4 sm:$0xff]   ;;  %v6678_v48 = vld [vmem:[#allocation3 + $0x484] ss:$16 sps:$4 sm:$0xff]  }
  0xe7   :  { %1010 = vmatprep.subr.bf16.mxu0 %v6597_v49  ;;  %1053 = vmatprep.subr.bf16.mxu1 %v6600_v50  ;;  %v6676_v49 = vld [vmem:[#allocation3 + $0x480] ss:$16 sps:$4 sm:$0xff]   ;;  %v6681_v50 = vld [vmem:[#allocation3 + $0x464] ss:$16 sps:$4 sm:$0xff]  }
  0xea   :  { %1011 = vmatpush1.bf16.msra.mxu0 %v6595_v51  ;;  %1054 = vmatpush1.bf16.msra.mxu1 %v6598_v53  ;;  %v6679_v51 = vld [vmem:[#allocation3 + $0x460] ss:$16 sps:$4 sm:$0xff]   ;;  %v6684_v53 = vld [vmem:[#allocation3 + $0x444] ss:$16 sps:$4 sm:$0xff]  }
  0xeb   :  { %1012 = vmatprep.subr.bf16.mxu0 %v6603_v54  ;;  %1055 = vmatprep.subr.bf16.mxu1 %v6606_v55  ;;  %v6715_v54 = vld [vmem:[#allocation3 + $0x6e0] ss:$16 sps:$4 sm:$0xff]   ;;  %v6717_v55 = vld [vmem:[#allocation3 + $0x6e4] ss:$16 sps:$4 sm:$0xff]  }
  0xee   :  { %1013 = vmatpush1.bf16.msra.mxu0 %v6601_v57  ;;  %1056 = vmatpush1.bf16.msra.mxu1 %v6604_v58  ;;  %v6685_v57 = vld [vmem:[#allocation3 + $0x420] ss:$16 sps:$4 sm:$0xff]  }
  0xef   :  { %1014 = vmatprep.subr.bf16.mxu0 %v6609_v59  ;;  %1057 = vmatprep.subr.bf16.mxu1 %v6612_v60  ;;  %v6721_v58 = vld [vmem:[#allocation3 + $0x6c0] ss:$16 sps:$4 sm:$0xff]   ;;  %v6723_v59 = vld [vmem:[#allocation3 + $0x6c4] ss:$16 sps:$4 sm:$0xff]  }
  0xf0   :  { %v6690_v60 = vld [vmem:[#allocation3 + $0x404] ss:$16 sps:$4 sm:$0xff]  }
  0xf2   :  { %1015 = vmatpush1.bf16.msra.mxu0 %v6607_v61  ;;  %1058 = vmatpush1.bf16.msra.mxu1 %v6610_v62  ;;  %v6688_v61 = vld [vmem:[#allocation3 + $0x400] ss:$16 sps:$4 sm:$0xff]  }
  0xf3   :  { %1016 = vmatprep.subr.bf16.mxu0 %v6615_v0  ;;  %1059 = vmatprep.subr.bf16.mxu1 %v6618_v1  ;;  %v6727_v62 = vld [vmem:[#allocation3 + $0x6a0] ss:$16 sps:$4 sm:$0xff]   ;;  %v6729_v0 = vld [vmem:[#allocation3 + $0x6a4] ss:$16 sps:$4 sm:$0xff]  }
  0xf4   :  { %v6693_v1 = vld [vmem:[#allocation3 + $0x5e4] ss:$16 sps:$4 sm:$0xff]  }
  0xf6   :  { %1017 = vmatpush1.bf16.msra.mxu0 %v6613_v2  ;;  %1060 = vmatpush1.bf16.msra.mxu1 %v6616_v3  ;;  %v6691_v2 = vld [vmem:[#allocation3 + $0x5e0] ss:$16 sps:$4 sm:$0xff]  }
  0xf7   :  { %1018 = vmatprep.subr.bf16.mxu0 %v6621_v4  ;;  %1061 = vmatprep.subr.bf16.mxu1 %v6624_v5  ;;  %v6733_v3 = vld [vmem:[#allocation3 + $0x680] ss:$16 sps:$4 sm:$0xff]   ;;  %v6735_v4 = vld [vmem:[#allocation3 + $0x684] ss:$16 sps:$4 sm:$0xff]  }
  0xf8   :  { %v6696_v5 = vld [vmem:[#allocation3 + $0x5c4] ss:$16 sps:$4 sm:$0xff]  }
  0xfa   :  { %1019 = vmatpush2.bf16.msra.mxu0 %v6619_v6  ;;  %1062 = vmatpush2.bf16.msra.mxu1 %v6622_v7  ;;  %v6694_v6 = vld [vmem:[#allocation3 + $0x5c0] ss:$16 sps:$4 sm:$0xff]  }
  0xfb   :  { %1020 = vmatprep.subr.bf16.mxu0 %v6627_v8  ;;  %1063 = vmatprep.subr.bf16.mxu1 %v6630_v9  ;;  %v6739_v7 = vld [vmem:[#allocation3 + $0x660] ss:$16 sps:$4 sm:$0xff]   ;;  %v6741_v8 = vld [vmem:[#allocation3 + $0x664] ss:$16 sps:$4 sm:$0xff]  }
  0xfc   :  { %v6699_v9 = vld [vmem:[#allocation3 + $0x5a4] ss:$16 sps:$4 sm:$0xff]  }
  0xfe   :  { %1021 = vmatpush2.bf16.msra.mxu0 %v6625_v10  ;;  %1064 = vmatpush2.bf16.msra.mxu1 %v6628_v11  ;;  %v6697_v10 = vld [vmem:[#allocation3 + $0x5a0] ss:$16 sps:$4 sm:$0xff]  }
  0xff   :  { %1022 = vmatprep.subr.bf16.mxu0 %v6633_v12  ;;  %1065 = vmatprep.subr.bf16.mxu1 %v6636_v13  ;;  %v6745_v11 = vld [vmem:[#allocation3 + $0x640] ss:$16 sps:$4 sm:$0xff]   ;;  %v6747_v12 = vld [vmem:[#allocation3 + $0x644] ss:$16 sps:$4 sm:$0xff]  }
 0x100   :  { %v6702_v13 = vld [vmem:[#allocation3 + $0x584] ss:$16 sps:$4 sm:$0xff]  }
 0x102   :  { %1023 = vmatpush2.bf16.msra.mxu0 %v6631_v14  ;;  %1066 = vmatpush2.bf16.msra.mxu1 %v6634_v15  ;;  %v6700_v14 = vld [vmem:[#allocation3 + $0x580] ss:$16 sps:$4 sm:$0xff]  }
 0x103   :  { %1024 = vmatprep.subr.bf16.mxu0 %v6639_v16  ;;  %1067 = vmatprep.subr.bf16.mxu1 %v6642_v17  ;;  %v6751_v15 = vld [vmem:[#allocation3 + $0x620] ss:$16 sps:$4 sm:$0xff]   ;;  %v6753_v16 = vld [vmem:[#allocation3 + $0x624] ss:$16 sps:$4 sm:$0xff]  }
 0x104   :  { %v6705_v17 = vld [vmem:[#allocation3 + $0x564] ss:$16 sps:$4 sm:$0xff]  }
 0x106   :  { %1025 = vmatpush2.bf16.msra.mxu0 %v6637_v18  ;;  %1068 = vmatpush2.bf16.msra.mxu1 %v6640_v19  ;;  %v6703_v18 = vld [vmem:[#allocation3 + $0x560] ss:$16 sps:$4 sm:$0xff]  }
 0x107   :  { %1026 = vmatprep.subr.bf16.mxu0 %v6645_v20  ;;  %1069 = vmatprep.subr.bf16.mxu1 %v6648_v21  ;;  %v6757_v19 = vld [vmem:[#allocation3 + $0x600] ss:$16 sps:$4 sm:$0xff]   ;;  %v6759_v20 = vld [vmem:[#allocation3 + $0x604] ss:$16 sps:$4 sm:$0xff]  }
 0x108   :  { %v6708_v21 = vld [vmem:[#allocation3 + $0x544] ss:$16 sps:$4 sm:$0xff]  }
 0x10a   :  { %1027 = vmatpush2.bf16.msra.mxu0 %v6643_v22  ;;  %1070 = vmatpush2.bf16.msra.mxu1 %v6646_v23  ;;  %v6706_v22 = vld [vmem:[#allocation3 + $0x540] ss:$16 sps:$4 sm:$0xff]  }
 0x10b   :  { %1028 = vmatprep.subr.bf16.mxu0 %v6651_v24  ;;  %1071 = vmatprep.subr.bf16.mxu1 %v6654_v25  ;;  %v6763_v23 = vld [vmem:[#allocation3 + $0x7e0] ss:$16 sps:$4 sm:$0xff]   ;;  %v6765_v24 = vld [vmem:[#allocation3 + $0x7e4] ss:$16 sps:$4 sm:$0xff]  }
 0x10c   :  { %v6711_v25 = vld [vmem:[#allocation3 + $0x524] ss:$16 sps:$4 sm:$0xff]  }
 0x10e   :  { %1029 = vmatpush2.bf16.msra.mxu0 %v6649_v26  ;;  %1072 = vmatpush2.bf16.msra.mxu1 %v6652_v27  ;;  %v6709_v26 = vld [vmem:[#allocation3 + $0x520] ss:$16 sps:$4 sm:$0xff]  }
 0x10f   :  { %1030 = vmatprep.subr.bf16.mxu0 %v6657_v31  ;;  %1073 = vmatprep.subr.bf16.mxu1 %v6660_v32  ;;  %v6769_v27 = vld [vmem:[#allocation3 + $0x7c0] ss:$16 sps:$4 sm:$0xff]   ;;  %v6771_v31 = vld [vmem:[#allocation3 + $0x7c4] ss:$16 sps:$4 sm:$0xff]  }
 0x110   :  { %v6714_v32 = vld [vmem:[#allocation3 + $0x504] ss:$16 sps:$4 sm:$0xff]  }
 0x112   :  { %1031 = vmatpush2.bf16.msra.mxu0 %v6655_v33  ;;  %1074 = vmatpush2.bf16.msra.mxu1 %v6658_v37  ;;  %v6712_v33 = vld [vmem:[#allocation3 + $0x500] ss:$16 sps:$4 sm:$0xff]  }
 0x113   :  { %1032 = vmatprep.subr.bf16.mxu0 %v6663_v38  ;;  %1075 = vmatprep.subr.bf16.mxu1 %v6666_v39  ;;  %v6775_v37 = vld [vmem:[#allocation3 + $0x7a0] ss:$16 sps:$4 sm:$0xff]   ;;  %v6777_v38 = vld [vmem:[#allocation3 + $0x7a4] ss:$16 sps:$4 sm:$0xff]   ;;  %v6720_v39 = vld [vmem:[#allocation3 + $0x4ec] ss:$16 sps:$4 sm:$0xff]  }
 0x116   :  { %1033 = vmatpush2.bf16.msra.mxu0 %v6661_v40  ;;  %1076 = vmatpush2.bf16.msra.mxu1 %v6664_v41  ;;  %v6781_v40 = vld [vmem:[#allocation3 + $0x780] ss:$16 sps:$4 sm:$0xff]   ;;  %v6783_v41 = vld [vmem:[#allocation3 + $0x784] ss:$16 sps:$4 sm:$0xff]  }
 0x117   :  { %1908 = vmatprep.subr.bf16.mxu0 %v6669_v42  ;;  %1951 = vmatprep.subr.bf16.mxu1 %v6717_v55  ;;  %v6789_v42 = vld [vmem:[#allocation3 + $0x764] ss:$16 sps:$4 sm:$0xff]  }
 0x119   :  { %1035 = vmatmul.mubr.bf16.vlgmr.msra.gmra.mxu0 %v7840_v35  ;;  %1078 = vmatmul.mubr.bf16.vlgmr.msra.gmra.mxu1 %v7842_v36  ;;  %v6682_v35 = vld [vmem:[#allocation3 + $0x440] ss:$16 sps:$4 sm:$0xff]   ;;  %v6687_v36 = vld [vmem:[#allocation3 + $0x424] ss:$16 sps:$4 sm:$0xff]  }
 0x11a   :  { %1909 = vmatpush1.bf16.msra.mxu0 %v6667_v43  ;;  %1952 = vmatpush1.bf16.msra.mxu1 %v6715_v54  ;;  %v6787_v43 = vld [vmem:[#allocation3 + $0x760] ss:$16 sps:$4 sm:$0xff]  }
 0x11b   :  { %1910 = vmatprep.subr.bf16.mxu0 %v6672_v44  ;;  %1953 = vmatprep.subr.bf16.mxu1 %v6723_v59  ;;  %v6795_v44 = vld [vmem:[#allocation3 + $0x744] ss:$16 sps:$4 sm:$0xff]  }
 0x11e   :  { %1911 = vmatpush1.bf16.msra.mxu0 %v6670_v45  ;;  %1954 = vmatpush1.bf16.msra.mxu1 %v6721_v58  ;;  %v6793_v45 = vld [vmem:[#allocation3 + $0x740] ss:$16 sps:$4 sm:$0xff]  }
 0x11f   :  { %1912 = vmatprep.subr.bf16.mxu0 %v6675_v46  ;;  %1955 = vmatprep.subr.bf16.mxu1 %v6729_v0  ;;  %v6801_v46 = vld [vmem:[#allocation3 + $0x724] ss:$16 sps:$4 sm:$0xff]  }
 0x122   :  { %1913 = vmatpush1.bf16.msra.mxu0 %v6673_v47  ;;  %1956 = vmatpush1.bf16.msra.mxu1 %v6727_v62  ;;  %v6799_v47 = vld [vmem:[#allocation3 + $0x720] ss:$16 sps:$4 sm:$0xff]  }
 0x123   :  { %1914 = vmatprep.subr.bf16.mxu0 %v6678_v48  ;;  %1957 = vmatprep.subr.bf16.mxu1 %v6735_v4  ;;  %v6807_v48 = vld [vmem:[#allocation3 + $0x704] ss:$16 sps:$4 sm:$0xff]  }
 0x126   :  { %1915 = vmatpush1.bf16.msra.mxu0 %v6676_v49  ;;  %1958 = vmatpush1.bf16.msra.mxu1 %v6733_v3  ;;  %v6805_v49 = vld [vmem:[#allocation3 + $0x700] ss:$16 sps:$4 sm:$0xff]  }
 0x127   :  { %1916 = vmatprep.subr.bf16.mxu0 %v6681_v50  ;;  %1959 = vmatprep.subr.bf16.mxu1 %v6741_v8  ;;  %v6813_v50 = vld [vmem:[#allocation3 + $0x6ec] ss:$16 sps:$4 sm:$0xff]  }
 0x12a   :  { %1917 = vmatpush1.bf16.msra.mxu0 %v6679_v51  ;;  %1960 = vmatpush1.bf16.msra.mxu1 %v6739_v7  ;;  %v256_v51 = vlaneseq }
 0x12b   :  { %1918 = vmatprep.subr.bf16.mxu0 %v6684_v53  ;;  %1961 = vmatprep.subr.bf16.mxu1 %v6747_v12 }
 0x12c   :  { %v7848_v53 = vshrl.u32 %v256_v51, 7 }
 0x12e   :  { %1919 = vmatpush1.bf16.msra.mxu0 %v6682_v35  ;;  %1962 = vmatpush1.bf16.msra.mxu1 %v6745_v11  ;;  %v7851_v54 = vsub.s32 0, %v7848_v53  ;;  %v7854_v55 = vsub.s32 1, %v7848_v53  ;;  %v7856_v35 = vld [vmem:[#allocation5] sm:$0xf]  ;;  %v7869_v51 = vsub.s32 3, %v7848_v53 }
 0x12f   :  { %1920 = vmatprep.subr.bf16.mxu0 %v6687_v36  ;;  %1963 = vmatprep.subr.bf16.mxu1 %v6753_v16 }
 0x130   :  { %v259_v36 = vrot.slane %v7856_v35, %v7851_v54 }
 0x132   :  { %1921 = vmatpush1.bf16.msra.mxu0 %v6685_v57  ;;  %1964 = vmatpush1.bf16.msra.mxu1 %v6751_v15  ;;  %v263_v57 = vrot.slane %v7856_v35, %v7854_v55 }
 0x133   :  { %1922 = vmatprep.subr.bf16.mxu0 %v6690_v60  ;;  %1965 = vmatprep.subr.bf16.mxu1 %v6759_v20  ;;  %v6718_v20 = vld [vmem:[#allocation3 + $0x4e8] ss:$16 sps:$4 sm:$0xff]  }
 0x136   :  { %1923 = vmatpush1.bf16.msra.mxu0 %v6688_v61  ;;  %1966 = vmatpush1.bf16.msra.mxu1 %v6757_v19 }
 0x137   :  { %1924 = vmatprep.subr.bf16.mxu0 %v6693_v1  ;;  %1967 = vmatprep.subr.bf16.mxu1 %v6765_v24  ;;  %v6732_v24 = vld [vmem:[#allocation3 + $0x4ac] ss:$16 sps:$4 sm:$0xff]  }
 0x13a   :  { %1925 = vmatpush2.bf16.msra.mxu0 %v6691_v2  ;;  %1968 = vmatpush2.bf16.msra.mxu1 %v6763_v23  ;;  %v6724_v23 = vld [vmem:[#allocation3 + $0x4c8] ss:$16 sps:$4 sm:$0xff]  }
 0x13b   :  { %1926 = vmatprep.subr.bf16.mxu0 %v6696_v5  ;;  %1969 = vmatprep.subr.bf16.mxu1 %v6771_v31  ;;  %v6744_v31 = vld [vmem:[#allocation3 + $0x46c] ss:$16 sps:$4 sm:$0xff]  }
 0x13e   :  { %1927 = vmatpush2.bf16.msra.mxu0 %v6694_v6  ;;  %1970 = vmatpush2.bf16.msra.mxu1 %v6769_v27  ;;  %v6736_v27 = vld [vmem:[#allocation3 + $0x488] ss:$16 sps:$4 sm:$0xff]  }
 0x13f   :  { %1928 = vmatprep.subr.bf16.mxu0 %v6699_v9  ;;  %1971 = vmatprep.subr.bf16.mxu1 %v6777_v38  ;;  %v6756_v38 = vld [vmem:[#allocation3 + $0x42c] ss:$16 sps:$4 sm:$0xff]  }
 0x142   :  { %1929 = vmatpush2.bf16.msra.mxu0 %v6697_v10  ;;  %1972 = vmatpush2.bf16.msra.mxu1 %v6775_v37  ;;  %v6748_v37 = vld [vmem:[#allocation3 + $0x448] ss:$16 sps:$4 sm:$0xff]  }
 0x143   :  { %1930 = vmatprep.subr.bf16.mxu0 %v6702_v13  ;;  %1973 = vmatprep.subr.bf16.mxu1 %v6783_v41  ;;  %v6760_v41 = vld [vmem:[#allocation3 + $0x408] ss:$16 sps:$4 sm:$0xff]  }
 0x146   :  { %1931 = vmatpush2.bf16.msra.mxu0 %v6700_v14  ;;  %1974 = vmatpush2.bf16.msra.mxu1 %v6781_v40  ;;  %v6762_v40 = vld [vmem:[#allocation3 + $0x40c] ss:$16 sps:$4 sm:$0xff]  }
 0x147   :  { %1932 = vmatprep.subr.bf16.mxu0 %v6705_v17  ;;  %1975 = vmatprep.subr.bf16.mxu1 %v6789_v42  ;;  %v6768_v42 = vld [vmem:[#allocation3 + $0x5ec] ss:$16 sps:$4 sm:$0xff]  }
 0x14a   :  { %1933 = vmatpush2.bf16.msra.mxu0 %v6703_v18  ;;  %1976 = vmatpush2.bf16.msra.mxu1 %v6787_v43  ;;  %v6766_v43 = vld [vmem:[#allocation3 + $0x5e8] ss:$16 sps:$4 sm:$0xff]  }
 0x14b   :  { %1934 = vmatprep.subr.bf16.mxu0 %v6708_v21  ;;  %1977 = vmatprep.subr.bf16.mxu1 %v6795_v44  ;;  %v6774_v44 = vld [vmem:[#allocation3 + $0x5cc] ss:$16 sps:$4 sm:$0xff]  }
 0x14e   :  { %1935 = vmatpush2.bf16.msra.mxu0 %v6706_v22  ;;  %1978 = vmatpush2.bf16.msra.mxu1 %v6793_v45  ;;  %v6726_v22 = vld [vmem:[#allocation3 + $0x4cc] ss:$16 sps:$4 sm:$0xff]   ;;  %v6772_v45 = vld [vmem:[#allocation3 + $0x5c8] ss:$16 sps:$4 sm:$0xff]  }
 0x14f   :  { %1936 = vmatprep.subr.bf16.mxu0 %v6711_v25  ;;  %1979 = vmatprep.subr.bf16.mxu1 %v6801_v46  ;;  %v6730_v25 = vld [vmem:[#allocation3 + $0x4a8] ss:$16 sps:$4 sm:$0xff]   ;;  %v6780_v46 = vld [vmem:[#allocation3 + $0x5ac] ss:$16 sps:$4 sm:$0xff]  }
 0x152   :  { %1937 = vmatpush2.bf16.msra.mxu0 %v6709_v26  ;;  %1980 = vmatpush2.bf16.msra.mxu1 %v6799_v47  ;;  %v6738_v26 = vld [vmem:[#allocation3 + $0x48c] ss:$16 sps:$4 sm:$0xff]   ;;  %v6778_v47 = vld [vmem:[#allocation3 + $0x5a8] ss:$16 sps:$4 sm:$0xff]  }
 0x153   :  { %1938 = vmatprep.subr.bf16.mxu0 %v6714_v32  ;;  %1981 = vmatprep.subr.bf16.mxu1 %v6807_v48  ;;  %v6742_v32 = vld [vmem:[#allocation3 + $0x468] ss:$16 sps:$4 sm:$0xff]   ;;  %v6786_v48 = vld [vmem:[#allocation3 + $0x58c] ss:$16 sps:$4 sm:$0xff]  }
 0x156   :  { %1939 = vmatpush2.bf16.msra.mxu0 %v6712_v33  ;;  %1982 = vmatpush2.bf16.msra.mxu1 %v6805_v49  ;;  %v6750_v33 = vld [vmem:[#allocation3 + $0x44c] ss:$16 sps:$4 sm:$0xff]   ;;  %v6784_v49 = vld [vmem:[#allocation3 + $0x588] ss:$16 sps:$4 sm:$0xff]  }
 0x157   :  { %1994 = vmatprep.subr.bf16.mxu0 %v6720_v39  ;;  %2037 = vmatprep.subr.bf16.mxu1 %v6813_v50  ;;  %v6754_v39 = vld [vmem:[#allocation3 + $0x428] ss:$16 sps:$4 sm:$0xff]   ;;  %v7866_v50 = vsub.s32 2, %v7848_v53 }
 0x158   :  { %v6796_v53 = vld [vmem:[#allocation3 + $0x548] ss:$16 sps:$4 sm:$0xff]  }
 0x199   :  { %v950_v58 = vpop.f32.mrf.mxu0  ;;  %v993_v59 = vpop.f32.mrf.mxu1 }
 0x19a   :  { %v951_v62 = vadd.f32 %v950_v58, %v259_v36  ;;  %v6790_v58 = vld [vmem:[#allocation3 + $0x568] ss:$16 sps:$4 sm:$0xff]  }
 0x19b   :  { %v952_v60 = vpop.f32.mrf.mxu0  ;;  %v995_v61 = vpop.f32.mrf.mxu1 }
 0x19c   :  { %v953_v0 = vadd.f32 %v952_v60, %v263_v57  ;;  %v994_v6 = vadd.f32 %v993_v59, %v951_v62  ;;  %v271_v59 = vrot.slane %v7856_v35, %v7869_v51  ;;  %v6798_v62 = vld [vmem:[#allocation3 + $0x54c] ss:$16 sps:$4 sm:$0xff]  }
 0x19d   :  { %v954_v1 = vpop.f32.mrf.mxu0  ;;  %v997_v3 = vpop.f32.mrf.mxu1 }
 0x19e   :  { %v955_v2 = vadd.f32 %v954_v1, %v259_v36  ;;  %v996_v4 = vadd.f32 %v995_v61, %v953_v0  ;;  %v1096_v13 = vmul.f32 0.2, %v994_v6  ;;  %vm1088_vm3 = vcmp.ge.f32.partialorder %v994_v6, 0.0  ;;  %v6792_v36 = vld [vmem:[#allocation3 + $0x56c] ss:$16 sps:$4 sm:$0xff]  }
 0x19f   :  { %v956_v5 = vpop.f32.mrf.mxu0  ;;  %v999_v10 = vpop.f32.mrf.mxu1 }
 0x1a0   :  { %v998_v7 = vadd.f32 %v997_v3, %v955_v2  ;;  %v957_v8 = vadd.f32 %v956_v5, %v263_v57  ;;  %v1097_v11 = vmul.f32 0.2, %v996_v4  ;;  %vm1089_vm2 = vcmp.ge.f32.partialorder %v996_v4, 0.0  ;;  %v6804_v5 = vld [vmem:[#allocation3 + $0x52c] ss:$16 sps:$4 sm:$0xff]  }
 0x1a1   :  { %v1104_v18 = vsel %vm1088_vm3, %v994_v6, %v1096_v13  ;;  %v267_v57 = vrot.slane %v7856_v35, %v7866_v50  ;;  %v6802_v35 = vld [vmem:[#allocation3 + $0x528] ss:$16 sps:$4 sm:$0xff]   ;;  %v6810_v13 = vld [vmem:[#allocation3 + $0x50c] ss:$16 sps:$4 sm:$0xff]  }
 0x1a2   :  { %v1100_v9 = vmul.f32 0.2, %v998_v7  ;;  %vm1092_vm1 = vcmp.ge.f32.partialorder %v998_v7, 0.0  ;;  %v1000_v12 = vadd.f32 %v999_v10, %v957_v8  ;;  %v1105_v16 = vsel %vm1089_vm2, %v996_v4, %v1097_v11 }
 0x1a4   :  { %vm1093_vm4 = vcmp.ge.f32.partialorder %v1000_v12, 0.0  ;;  %v1101_v14 = vmul.f32 0.2, %v1000_v12  ;;  %v1108_v15 = vsel %vm1092_vm1, %v998_v7, %v1100_v9 }
 0x1a5   :  { %v7862_v21 = vpack.c.bf16 %v1108_v15, %v1104_v18 }
 0x1a6   :  { %v1109_v17 = vsel %vm1093_vm4, %v1000_v12, %v1101_v14 }
 0x1a7   :  { %v1113_v19 = vpack.c.bf16 %v1109_v17, %v1105_v16 }
 0x1a9   :  { %1940 = vmatprep.mubr.bf16.mxu0 %v1113_v19 }
 0x1aa   :  { %1941 = vmatmul.mubr.bf16.vlgmr.msra.gmra.mxu0 %v7862_v21 }
 0x1ab   :  { %1995 = vmatpush1.bf16.msra.mxu0 %v6718_v20  ;;  %2026 = vmatprep.mubr.bf16.mxu0 %v1113_v19  ;;  %v6808_v19 = vld [vmem:[#allocation3 + $0x508] ss:$16 sps:$4 sm:$0xff]  }
 0x1ac   :  { %1996 = vmatprep.subr.bf16.mxu0 %v6726_v22 }
 0x1af   :  { %1997 = vmatpush1.bf16.msra.mxu0 %v6724_v23 }
 0x1b0   :  { %1998 = vmatprep.subr.bf16.mxu0 %v6732_v24 }
 0x1b3   :  { %1999 = vmatpush1.bf16.msra.mxu0 %v6730_v25 }
 0x1b4   :  { %2000 = vmatprep.subr.bf16.mxu0 %v6738_v26 }
 0x1b7   :  { %2001 = vmatpush1.bf16.msra.mxu0 %v6736_v27  ;;  %v6811_v27 = vld [vmem:[#allocation3 + $0x6e8] ss:$16 sps:$4 sm:$0xff]  }
 0x1b8   :  { %2002 = vmatprep.subr.bf16.mxu0 %v6744_v31 }
 0x1bb   :  { %2003 = vmatpush1.bf16.msra.mxu0 %v6742_v32  ;;  %v6816_v32 = vld [vmem:[#allocation3 + $0x6cc] ss:$16 sps:$4 sm:$0xff]  }
 0x1bc   :  { %2004 = vmatprep.subr.bf16.mxu0 %v6750_v33  ;;  %v6814_v33 = vld [vmem:[#allocation3 + $0x6c8] ss:$16 sps:$4 sm:$0xff]  }
 0x1bf   :  { %2005 = vmatpush1.bf16.msra.mxu0 %v6748_v37  ;;  %v6819_v37 = vld [vmem:[#allocation3 + $0x6ac] ss:$16 sps:$4 sm:$0xff]  }
 0x1c0   :  { %2006 = vmatprep.subr.bf16.mxu0 %v6756_v38  ;;  %v6817_v38 = vld [vmem:[#allocation3 + $0x6a8] ss:$16 sps:$4 sm:$0xff]  }
 0x1c3   :  { %2007 = vmatpush1.bf16.msra.mxu0 %v6754_v39  ;;  %v6822_v39 = vld [vmem:[#allocation3 + $0x68c] ss:$16 sps:$4 sm:$0xff]  }
 0x1c4   :  { %2008 = vmatprep.subr.bf16.mxu0 %v6762_v40  ;;  %v6859_v40 = vld [vmem:[#allocation3 + $0x8e0] ss:$16 sps:$4 sm:$0xff]  }
 0x1c7   :  { %2009 = vmatpush1.bf16.msra.mxu0 %v6760_v41  ;;  %v6861_v41 = vld [vmem:[#allocation3 + $0x8e4] ss:$16 sps:$4 sm:$0xff]  }
 0x1c8   :  { %2010 = vmatprep.subr.bf16.mxu0 %v6768_v42  ;;  %v6864_v42 = vld [vmem:[#allocation3 + $0x8c4] ss:$16 sps:$4 sm:$0xff]  }
 0x1cb   :  { %2011 = vmatpush2.bf16.msra.mxu0 %v6766_v43  ;;  %v6820_v43 = vld [vmem:[#allocation3 + $0x688] ss:$16 sps:$4 sm:$0xff]  }
 0x1cc   :  { %2012 = vmatprep.subr.bf16.mxu0 %v6774_v44  ;;  %v6825_v44 = vld [vmem:[#allocation3 + $0x66c] ss:$16 sps:$4 sm:$0xff]  }
 0x1cf   :  { %2013 = vmatpush2.bf16.msra.mxu0 %v6772_v45  ;;  %v6862_v45 = vld [vmem:[#allocation3 + $0x8c0] ss:$16 sps:$4 sm:$0xff]  }
 0x1d0   :  { %2014 = vmatprep.subr.bf16.mxu0 %v6780_v46  ;;  %v6823_v46 = vld [vmem:[#allocation3 + $0x668] ss:$16 sps:$4 sm:$0xff]  }
 0x1d3   :  { %2015 = vmatpush2.bf16.msra.mxu0 %v6778_v47  ;;  %v6828_v47 = vld [vmem:[#allocation3 + $0x64c] ss:$16 sps:$4 sm:$0xff]  }
 0x1d4   :  { %2016 = vmatprep.subr.bf16.mxu0 %v6786_v48  ;;  %v6865_v48 = vld [vmem:[#allocation3 + $0x8a0] ss:$16 sps:$4 sm:$0xff]  }
 0x1d7   :  { %2017 = vmatpush2.bf16.msra.mxu0 %v6784_v49  ;;  %v6870_v49 = vld [vmem:[#allocation3 + $0x884] ss:$16 sps:$4 sm:$0xff]  }
 0x1d8   :  { %2018 = vmatprep.subr.bf16.mxu0 %v6792_v36  ;;  %v6826_v36 = vld [vmem:[#allocation3 + $0x648] ss:$16 sps:$4 sm:$0xff]  }
 0x1d9   :  { %v1036_v60 = vpop.f32.mrf.mxu0  ;;  %v1079_v61 = vpop.f32.mrf.mxu1 }
 0x1da   :  { %v1037_v2 = vadd.f32 %v1036_v60, %v267_v57  ;;  %v6829_v60 = vld [vmem:[#allocation3 + $0x628] ss:$16 sps:$4 sm:$0xff]  }
 0x1db   :  { %v1038_v0 = vpop.f32.mrf.mxu0  ;;  %v1081_v1 = vpop.f32.mrf.mxu1  ;;  %2019 = vmatpush2.bf16.msra.mxu0 %v6790_v58  ;;  %v6868_v58 = vld [vmem:[#allocation3 + $0x880] ss:$16 sps:$4 sm:$0xff]  }
 0x1dc   :  { %v1039_v3 = vadd.f32 %v1038_v0, %v271_v59  ;;  %2020 = vmatprep.subr.bf16.mxu0 %v6798_v62  ;;  %v1080_v10 = vadd.f32 %v1079_v61, %v1037_v2  ;;  %v6834_v61 = vld [vmem:[#allocation3 + $0x60c] ss:$16 sps:$4 sm:$0xff]   ;;  %v6871_v62 = vld [vmem:[#allocation3 + $0x860] ss:$16 sps:$4 sm:$0xff]   ;;  %v6876_v0 = vld [vmem:[#allocation3 + $0x844] ss:$16 sps:$4 sm:$0xff]  }
 0x1dd   :  { %v1040_v4 = vpop.f32.mrf.mxu0  ;;  %v1083_v7 = vpop.f32.mrf.mxu1  ;;  %v6837_v2 = vld [vmem:[#allocation3 + $0x7ec] ss:$16 sps:$4 sm:$0xff]  }
 0x1de   :  { %v1041_v6 = vadd.f32 %v1040_v4, %v267_v57  ;;  %v1082_v8 = vadd.f32 %v1081_v1, %v1039_v3  ;;  %v1098_v18 = vmul.f32 0.2, %v1080_v10  ;;  %vm1090_vm7 = vcmp.ge.f32.partialorder %v1080_v10, 0.0  ;;  %v6831_v57 = vld [vmem:[#allocation3 + $0x62c] ss:$16 sps:$4 sm:$0xff]  }
 0x1df   :  { %v1042_v9 = vpop.f32.mrf.mxu0  ;;  %2021 = vmatpush2.bf16.msra.mxu0 %v6796_v53  ;;  %v1085_v15 = vpop.f32.mrf.mxu1  ;;  %v6832_v1 = vld [vmem:[#allocation3 + $0x608] ss:$16 sps:$4 sm:$0xff]   ;;  %v6874_v3 = vld [vmem:[#allocation3 + $0x840] ss:$16 sps:$4 sm:$0xff]   ;;  %v6879_v53 = vld [vmem:[#allocation3 + $0x824] ss:$16 sps:$4 sm:$0xff]  }
 0x1e0   :  { %v1084_v11 = vadd.f32 %v1083_v7, %v1041_v6  ;;  %v1043_v12 = vadd.f32 %v1042_v9, %v271_v59  ;;  %2022 = vmatprep.subr.bf16.mxu0 %v6804_v5  ;;  %v1099_v16 = vmul.f32 0.2, %v1082_v8  ;;  %vm1091_vm6 = vcmp.ge.f32.partialorder %v1082_v8, 0.0  ;;  %v6873_v59 = vld [vmem:[#allocation3 + $0x864] ss:$16 sps:$4 sm:$0xff]  }
 0x1e1   :  { %v1106_v25 = vsel %vm1090_vm7, %v1080_v10, %v1098_v18  ;;  %v6835_v4 = vld [vmem:[#allocation3 + $0x7e8] ss:$16 sps:$4 sm:$0xff]   ;;  %v6840_v5 = vld [vmem:[#allocation3 + $0x7cc] ss:$16 sps:$4 sm:$0xff]   ;;  %v6877_v6 = vld [vmem:[#allocation3 + $0x820] ss:$16 sps:$4 sm:$0xff]  }
 0x1e2   :  { %v1102_v14 = vmul.f32 0.2, %v1084_v11  ;;  %vm1094_vm5 = vcmp.ge.f32.partialorder %v1084_v11, 0.0  ;;  %v1086_v17 = vadd.f32 %v1085_v15, %v1043_v12  ;;  %v1107_v23 = vsel %vm1091_vm6, %v1082_v8, %v1099_v16  ;;  %v6882_v7 = vld [vmem:[#allocation3 + $0x804] ss:$16 sps:$4 sm:$0xff]  }
 0x1e3   :  { %2023 = vmatpush2.bf16.msra.mxu0 %v6802_v35  ;;  %v6838_v8 = vld [vmem:[#allocation3 + $0x7c8] ss:$16 sps:$4 sm:$0xff]   ;;  %v6843_v9 = vld [vmem:[#allocation3 + $0x7ac] ss:$16 sps:$4 sm:$0xff]   ;;  %v6880_v10 = vld [vmem:[#allocation3 + $0x800] ss:$16 sps:$4 sm:$0xff]  }
 0x1e4   :  { %vm1095_vm8 = vcmp.ge.f32.partialorder %v1086_v17, 0.0  ;;  %v1103_v20 = vmul.f32 0.2, %v1086_v17  ;;  %2024 = vmatprep.subr.bf16.mxu0 %v6810_v13  ;;  %v1110_v22 = vsel %vm1094_vm5, %v1084_v11, %v1102_v14  ;;  %v6885_v11 = vld [vmem:[#allocation3 + $0x9e4] ss:$16 sps:$4 sm:$0xff]  }
 0x1e5   :  { %v7875_v31 = vpack.c.bf16 %v1110_v22, %v1106_v25  ;;  %v6841_v35 = vld [vmem:[#allocation3 + $0x7a8] ss:$16 sps:$4 sm:$0xff]   ;;  %v6846_v12 = vld [vmem:[#allocation3 + $0x78c] ss:$16 sps:$4 sm:$0xff]   ;;  %v6883_v13 = vld [vmem:[#allocation3 + $0x9e0] ss:$16 sps:$4 sm:$0xff]  }
 0x1e6   :  { %v1111_v24 = vsel %vm1095_vm8, %v1086_v17, %v1103_v20  ;;  %v6888_v14 = vld [vmem:[#allocation3 + $0x9c4] ss:$16 sps:$4 sm:$0xff]   ;;  %v6844_v15 = vld [vmem:[#allocation3 + $0x788] ss:$16 sps:$4 sm:$0xff]   ;;  %v6849_v16 = vld [vmem:[#allocation3 + $0x76c] ss:$16 sps:$4 sm:$0xff]  }
 0x1e7   :  { %2025 = vmatpush2.bf16.msra.mxu0 %v6808_v19  ;;  %v1115_v26 = vpack.c.bf16 %v1111_v24, %v1107_v23  ;;  %v6886_v17 = vld [vmem:[#allocation3 + $0x9c0] ss:$16 sps:$4 sm:$0xff]   ;;  %v6891_v18 = vld [vmem:[#allocation3 + $0x9a4] ss:$16 sps:$4 sm:$0xff]   ;;  %v6847_v19 = vld [vmem:[#allocation3 + $0x768] ss:$16 sps:$4 sm:$0xff]  }
 0x1e8   :  { %2900 = vmatprep.subr.bf16.mxu0 %v6861_v41  ;;  %v6852_v20 = vld [vmem:[#allocation3 + $0x74c] ss:$16 sps:$4 sm:$0xff]   ;;  %v6889_v22 = vld [vmem:[#allocation3 + $0x9a0] ss:$16 sps:$4 sm:$0xff]   ;;  %v6894_v23 = vld [vmem:[#allocation3 + $0x984] ss:$16 sps:$4 sm:$0xff]  }
 0x1e9   :  { %1983 = vmatprep.mubr.bf16.mxu1 %v1115_v26  ;;  %v6850_v24 = vld [vmem:[#allocation3 + $0x748] ss:$16 sps:$4 sm:$0xff]   ;;  %v6855_v25 = vld [vmem:[#allocation3 + $0x72c] ss:$16 sps:$4 sm:$0xff]   ;;  %v6903_v41 = vld [vmem:[#allocation3 + $0x924] ss:$16 sps:$4 sm:$0xff]  }
 0x1ea   :  { %1984 = vmatmul.mubr.bf16.vlgmr.msra.gmra.mxu1 %v7875_v31  ;;  %2027 = vmatmul.mubr.bf16.vlgmr.msra.gmra.mxu0 %v7862_v21  ;;  %v6867_v21 = vld [vmem:[#allocation3 + $0x8a4] ss:$16 sps:$4 sm:$0xff]  }
 0x1eb   :  { %2038 = vmatpush1.bf16.msra.mxu1 %v6811_v27  ;;  %2069 = vmatprep.mubr.bf16.mxu1 %v1115_v26  ;;  %v6892_v26 = vld [vmem:[#allocation3 + $0x980] ss:$16 sps:$4 sm:$0xff]   ;;  %v6897_v27 = vld [vmem:[#allocation3 + $0x964] ss:$16 sps:$4 sm:$0xff]  }
 0x1ec   :  { %2039 = vmatprep.subr.bf16.mxu1 %v6816_v32  ;;  %2901 = vmatpush1.bf16.msra.mxu0 %v6859_v40  ;;  %v6853_v32 = vld [vmem:[#allocation3 + $0x728] ss:$16 sps:$4 sm:$0xff]   ;;  %v6898_v40 = vld [vmem:[#allocation3 + $0x940] ss:$16 sps:$4 sm:$0xff]  }
 0x1ed   :  { %2902 = vmatprep.subr.bf16.mxu0 %v6864_v42  ;;  %v6901_v42 = vld [vmem:[#allocation3 + $0x920] ss:$16 sps:$4 sm:$0xff]  }
 0x1ef   :  { %2040 = vmatpush1.bf16.msra.mxu1 %v6814_v33  ;;  %v6858_v33 = vld [vmem:[#allocation3 + $0x70c] ss:$16 sps:$4 sm:$0xff]  }
 0x1f0   :  { %2041 = vmatprep.subr.bf16.mxu1 %v6819_v37  ;;  %2903 = vmatpush1.bf16.msra.mxu0 %v6862_v45  ;;  %v6895_v37 = vld [vmem:[#allocation3 + $0x960] ss:$16 sps:$4 sm:$0xff]  }
 0x1f1   :  { %2904 = vmatprep.subr.bf16.mxu0 %v6867_v21  ;;  %v6907_v45 = vld [vmem:[#allocation3 + $0xae0] ss:$16 sps:$4 sm:$0xff]   ;;  %v6909_v21 = vld [vmem:[#allocation3 + $0xae4] ss:$16 sps:$4 sm:$0xff]  }
 0x1f3   :  { %2042 = vmatpush1.bf16.msra.mxu1 %v6817_v38  ;;  %v6856_v38 = vld [vmem:[#allocation3 + $0x708] ss:$16 sps:$4 sm:$0xff]  }
 0x1f4   :  { %2043 = vmatprep.subr.bf16.mxu1 %v6822_v39  ;;  %2905 = vmatpush1.bf16.msra.mxu0 %v6865_v48  ;;  %v6900_v39 = vld [vmem:[#allocation3 + $0x944] ss:$16 sps:$4 sm:$0xff]   ;;  %v6919_v48 = vld [vmem:[#allocation3 + $0xaa0] ss:$16 sps:$4 sm:$0xff]  }
 0x1f5   :  { %2906 = vmatprep.subr.bf16.mxu0 %v6870_v49  ;;  %v6921_v49 = vld [vmem:[#allocation3 + $0xaa4] ss:$16 sps:$4 sm:$0xff]  }
 0x1f7   :  { %2044 = vmatpush1.bf16.msra.mxu1 %v6820_v43  ;;  %v6906_v43 = vld [vmem:[#allocation3 + $0x904] ss:$16 sps:$4 sm:$0xff]  }
 0x1f8   :  { %2045 = vmatprep.subr.bf16.mxu1 %v6825_v44  ;;  %2907 = vmatpush1.bf16.msra.mxu0 %v6868_v58  ;;  %v6904_v44 = vld [vmem:[#allocation3 + $0x900] ss:$16 sps:$4 sm:$0xff]  }
 0x1f9   :  { %2908 = vmatprep.subr.bf16.mxu0 %v6873_v59  ;;  %v6931_v58 = vld [vmem:[#allocation3 + $0xa60] ss:$16 sps:$4 sm:$0xff]   ;;  %v6933_v59 = vld [vmem:[#allocation3 + $0xa64] ss:$16 sps:$4 sm:$0xff]  }
 0x1fb   :  { %2046 = vmatpush1.bf16.msra.mxu1 %v6823_v46  ;;  %v6912_v46 = vld [vmem:[#allocation3 + $0x8ec] ss:$16 sps:$4 sm:$0xff]  }
 0x1fc   :  { %2047 = vmatprep.subr.bf16.mxu1 %v6828_v47  ;;  %2909 = vmatpush1.bf16.msra.mxu0 %v6871_v62  ;;  %v6913_v47 = vld [vmem:[#allocation3 + $0xac0] ss:$16 sps:$4 sm:$0xff]  }
 0x1fd   :  { %2910 = vmatprep.subr.bf16.mxu0 %v6876_v0  ;;  %v6943_v62 = vld [vmem:[#allocation3 + $0xa20] ss:$16 sps:$4 sm:$0xff]   ;;  %v6945_v0 = vld [vmem:[#allocation3 + $0xa24] ss:$16 sps:$4 sm:$0xff]  }
 0x1ff   :  { %2048 = vmatpush1.bf16.msra.mxu1 %v6826_v36  ;;  %v6925_v36 = vld [vmem:[#allocation3 + $0xa80] ss:$16 sps:$4 sm:$0xff]  }
 0x200   :  { %2049 = vmatprep.subr.bf16.mxu1 %v6831_v57  ;;  %2911 = vmatpush1.bf16.msra.mxu0 %v6874_v3  ;;  %v6927_v57 = vld [vmem:[#allocation3 + $0xa84] ss:$16 sps:$4 sm:$0xff]   ;;  %v6955_v3 = vld [vmem:[#allocation3 + $0xbe0] ss:$16 sps:$4 sm:$0xff]  }
 0x201   :  { %2912 = vmatprep.subr.bf16.mxu0 %v6879_v53  ;;  %v6957_v53 = vld [vmem:[#allocation3 + $0xbe4] ss:$16 sps:$4 sm:$0xff]  }
 0x203   :  { %2050 = vmatpush1.bf16.msra.mxu1 %v6829_v60  ;;  %v6937_v60 = vld [vmem:[#allocation3 + $0xa40] ss:$16 sps:$4 sm:$0xff]  }
 0x204   :  { %2051 = vmatprep.subr.bf16.mxu1 %v6834_v61  ;;  %2913 = vmatpush1.bf16.msra.mxu0 %v6877_v6  ;;  %v6939_v61 = vld [vmem:[#allocation3 + $0xa44] ss:$16 sps:$4 sm:$0xff]   ;;  %v6967_v6 = vld [vmem:[#allocation3 + $0xba0] ss:$16 sps:$4 sm:$0xff]  }
 0x205   :  { %2914 = vmatprep.subr.bf16.mxu0 %v6882_v7  ;;  %v6969_v7 = vld [vmem:[#allocation3 + $0xba4] ss:$16 sps:$4 sm:$0xff]  }
 0x207   :  { %2052 = vmatpush1.bf16.msra.mxu1 %v6832_v1  ;;  %v6949_v1 = vld [vmem:[#allocation3 + $0xa00] ss:$16 sps:$4 sm:$0xff]  }
 0x208   :  { %2053 = vmatprep.subr.bf16.mxu1 %v6837_v2  ;;  %2915 = vmatpush1.bf16.msra.mxu0 %v6880_v10  ;;  %v6951_v2 = vld [vmem:[#allocation3 + $0xa04] ss:$16 sps:$4 sm:$0xff]   ;;  %v6979_v10 = vld [vmem:[#allocation3 + $0xb60] ss:$16 sps:$4 sm:$0xff]  }
 0x209   :  { %2916 = vmatprep.subr.bf16.mxu0 %v6885_v11  ;;  %v6981_v11 = vld [vmem:[#allocation3 + $0xb64] ss:$16 sps:$4 sm:$0xff]  }
 0x20b   :  { %2054 = vmatpush2.bf16.msra.mxu1 %v6835_v4  ;;  %v6961_v4 = vld [vmem:[#allocation3 + $0xbc0] ss:$16 sps:$4 sm:$0xff]  }
 0x20c   :  { %2055 = vmatprep.subr.bf16.mxu1 %v6840_v5  ;;  %2917 = vmatpush2.bf16.msra.mxu0 %v6883_v13  ;;  %v6963_v5 = vld [vmem:[#allocation3 + $0xbc4] ss:$16 sps:$4 sm:$0xff]  }
 0x20d   :  { %2918 = vmatprep.subr.bf16.mxu0 %v6888_v14  ;;  %v6993_v13 = vld [vmem:[#allocation3 + $0xb24] ss:$16 sps:$4 sm:$0xff]   ;;  %v6991_v14 = vld [vmem:[#allocation3 + $0xb20] ss:$16 sps:$4 sm:$0xff]  }
 0x20f   :  { %2056 = vmatpush2.bf16.msra.mxu1 %v6838_v8  ;;  %v6973_v8 = vld [vmem:[#allocation3 + $0xb80] ss:$16 sps:$4 sm:$0xff]  }
 0x210   :  { %2057 = vmatprep.subr.bf16.mxu1 %v6843_v9  ;;  %2919 = vmatpush2.bf16.msra.mxu0 %v6886_v17  ;;  %v6975_v9 = vld [vmem:[#allocation3 + $0xb84] ss:$16 sps:$4 sm:$0xff]   ;;  %v7005_v17 = vld [vmem:[#allocation3 + $0xaec] ss:$16 sps:$4 sm:$0xff]  }
 0x211   :  { %2920 = vmatprep.subr.bf16.mxu0 %v6891_v18 }
 0x213   :  { %2058 = vmatpush2.bf16.msra.mxu1 %v6841_v35  ;;  %v6987_v35 = vld [vmem:[#allocation3 + $0xb44] ss:$16 sps:$4 sm:$0xff]  }
 0x214   :  { %2059 = vmatprep.subr.bf16.mxu1 %v6846_v12  ;;  %2921 = vmatpush2.bf16.msra.mxu0 %v6889_v22  ;;  %v6985_v12 = vld [vmem:[#allocation3 + $0xb40] ss:$16 sps:$4 sm:$0xff]  }
 0x215   :  { %2922 = vmatprep.subr.bf16.mxu0 %v6894_v23 }
 0x217   :  { %2060 = vmatpush2.bf16.msra.mxu1 %v6844_v15  ;;  %v6999_v15 = vld [vmem:[#allocation3 + $0xb04] ss:$16 sps:$4 sm:$0xff]  }
 0x218   :  { %2061 = vmatprep.subr.bf16.mxu1 %v6849_v16  ;;  %2923 = vmatpush2.bf16.msra.mxu0 %v6892_v26  ;;  %v6997_v16 = vld [vmem:[#allocation3 + $0xb00] ss:$16 sps:$4 sm:$0xff]  }
 0x219   :  { %2924 = vmatprep.subr.bf16.mxu0 %v6897_v27 }
 0x21b   :  { %2062 = vmatpush2.bf16.msra.mxu1 %v6847_v19 }
 0x21c   :  { %2063 = vmatprep.subr.bf16.mxu1 %v6852_v20  ;;  %2925 = vmatpush2.bf16.msra.mxu0 %v6895_v37  ;;  %v7880_v20 = vld [vmem:[#allocation5 + $0x4] sm:$0xf] }
 0x21d   :  { %2926 = vmatprep.subr.bf16.mxu0 %v6900_v39  ;;  %v1255_v22 = vrot.slane %v7880_v20, %v7854_v55  ;;  %v1251_v23 = vrot.slane %v7880_v20, %v7851_v54 }
 0x21f   :  { %2064 = vmatpush2.bf16.msra.mxu1 %v6850_v24 }
 0x220   :  { %2065 = vmatprep.subr.bf16.mxu1 %v6855_v25  ;;  %2927 = vmatpush2.bf16.msra.mxu0 %v6898_v40 }
 0x221   :  { %2928 = vmatprep.subr.bf16.mxu0 %v6903_v41 }
 0x223   :  { %2066 = vmatpush2.bf16.msra.mxu1 %v6853_v32 }
 0x224   :  { %2067 = vmatprep.subr.bf16.mxu1 %v6858_v33  ;;  %2929 = vmatpush2.bf16.msra.mxu0 %v6901_v42 }
 0x225   :  { %2930 = vmatprep.subr.bf16.mxu0 %v6906_v43 }
 0x227   :  { %2068 = vmatpush2.bf16.msra.mxu1 %v6856_v38 }
 0x228   :  { %2931 = vmatpush2.bf16.msra.mxu0 %v6904_v44  ;;  %2943 = vmatprep.subr.bf16.mxu1 %v6909_v21 }
 0x229   :  { %2986 = vmatprep.subr.bf16.mxu0 %v6912_v46 }
 0x22a   :  { %2070 = vmatmul.mubr.bf16.vlgmr.msra.gmra.mxu1 %v7875_v31  ;;  %v6915_v31 = vld [vmem:[#allocation3 + $0xac4] ss:$16 sps:$4 sm:$0xff]  }
 0x22b   :  { %2944 = vmatpush1.bf16.msra.mxu1 %v6907_v45 }
 0x22c   :  { %2945 = vmatprep.subr.bf16.mxu1 %v6915_v31 }
 0x22f   :  { %2946 = vmatpush1.bf16.msra.mxu1 %v6913_v47 }
 0x230   :  { %2947 = vmatprep.subr.bf16.mxu1 %v6921_v49 }
 0x233   :  { %2948 = vmatpush1.bf16.msra.mxu1 %v6919_v48 }
 0x234   :  { %2949 = vmatprep.subr.bf16.mxu1 %v6927_v57 }
 0x237   :  { %2950 = vmatpush1.bf16.msra.mxu1 %v6925_v36 }
 0x238   :  { %2951 = vmatprep.subr.bf16.mxu1 %v6933_v59 }
 0x23b   :  { %2952 = vmatpush1.bf16.msra.mxu1 %v6931_v58  ;;  %v6910_v58 = vld [vmem:[#allocation3 + $0x8e8] ss:$16 sps:$4 sm:$0xff]  }
 0x23c   :  { %2953 = vmatprep.subr.bf16.mxu1 %v6939_v61  ;;  %v6916_v61 = vld [vmem:[#allocation3 + $0x8c8] ss:$16 sps:$4 sm:$0xff]  }
 0x23f   :  { %2954 = vmatpush1.bf16.msra.mxu1 %v6937_v60  ;;  %v6918_v60 = vld [vmem:[#allocation3 + $0x8cc] ss:$16 sps:$4 sm:$0xff]  }
 0x240   :  { %2955 = vmatprep.subr.bf16.mxu1 %v6945_v0  ;;  %v6922_v0 = vld [vmem:[#allocation3 + $0x8a8] ss:$16 sps:$4 sm:$0xff]  }
 0x243   :  { %2956 = vmatpush1.bf16.msra.mxu1 %v6943_v62  ;;  %v6924_v62 = vld [vmem:[#allocation3 + $0x8ac] ss:$16 sps:$4 sm:$0xff]  }
 0x244   :  { %2957 = vmatprep.subr.bf16.mxu1 %v6951_v2  ;;  %v6928_v2 = vld [vmem:[#allocation3 + $0x888] ss:$16 sps:$4 sm:$0xff]  }
 0x247   :  { %2958 = vmatpush1.bf16.msra.mxu1 %v6949_v1  ;;  %v6930_v1 = vld [vmem:[#allocation3 + $0x88c] ss:$16 sps:$4 sm:$0xff]  }
 0x248   :  { %2959 = vmatprep.subr.bf16.mxu1 %v6957_v53  ;;  %v6934_v53 = vld [vmem:[#allocation3 + $0x868] ss:$16 sps:$4 sm:$0xff]  }
 0x24b   :  { %2960 = vmatpush2.bf16.msra.mxu1 %v6955_v3  ;;  %v6936_v3 = vld [vmem:[#allocation3 + $0x86c] ss:$16 sps:$4 sm:$0xff]  }
 0x24c   :  { %2961 = vmatprep.subr.bf16.mxu1 %v6963_v5  ;;  %v6940_v5 = vld [vmem:[#allocation3 + $0x848] ss:$16 sps:$4 sm:$0xff]  }
 0x24f   :  { %2962 = vmatpush2.bf16.msra.mxu1 %v6961_v4  ;;  %v6942_v4 = vld [vmem:[#allocation3 + $0x84c] ss:$16 sps:$4 sm:$0xff]  }
 0x250   :  { %2963 = vmatprep.subr.bf16.mxu1 %v6969_v7  ;;  %v6946_v7 = vld [vmem:[#allocation3 + $0x828] ss:$16 sps:$4 sm:$0xff]  }
 0x253   :  { %2964 = vmatpush2.bf16.msra.mxu1 %v6967_v6  ;;  %v6948_v6 = vld [vmem:[#allocation3 + $0x82c] ss:$16 sps:$4 sm:$0xff]  }
 0x254   :  { %2965 = vmatprep.subr.bf16.mxu1 %v6975_v9  ;;  %v6952_v9 = vld [vmem:[#allocation3 + $0x808] ss:$16 sps:$4 sm:$0xff]  }
 0x257   :  { %2966 = vmatpush2.bf16.msra.mxu1 %v6973_v8  ;;  %v6954_v8 = vld [vmem:[#allocation3 + $0x80c] ss:$16 sps:$4 sm:$0xff]  }
 0x258   :  { %2967 = vmatprep.subr.bf16.mxu1 %v6981_v11  ;;  %v6958_v11 = vld [vmem:[#allocation3 + $0x9e8] ss:$16 sps:$4 sm:$0xff]  }
 0x25b   :  { %2968 = vmatpush2.bf16.msra.mxu1 %v6979_v10  ;;  %v6960_v10 = vld [vmem:[#allocation3 + $0x9ec] ss:$16 sps:$4 sm:$0xff]  }
 0x25c   :  { %2969 = vmatprep.subr.bf16.mxu1 %v6987_v35  ;;  %v6966_v35 = vld [vmem:[#allocation3 + $0x9cc] ss:$16 sps:$4 sm:$0xff]  }
 0x25f   :  { %2970 = vmatpush2.bf16.msra.mxu1 %v6985_v12  ;;  %v6964_v12 = vld [vmem:[#allocation3 + $0x9c8] ss:$16 sps:$4 sm:$0xff]  }
 0x260   :  { %2971 = vmatprep.subr.bf16.mxu1 %v6993_v13  ;;  %v6972_v13 = vld [vmem:[#allocation3 + $0x9ac] ss:$16 sps:$4 sm:$0xff]  }
 0x263   :  { %2972 = vmatpush2.bf16.msra.mxu1 %v6991_v14  ;;  %v6970_v14 = vld [vmem:[#allocation3 + $0x9a8] ss:$16 sps:$4 sm:$0xff]  }
 0x264   :  { %2973 = vmatprep.subr.bf16.mxu1 %v6999_v15  ;;  %v6978_v15 = vld [vmem:[#allocation3 + $0x98c] ss:$16 sps:$4 sm:$0xff]  }
 0x267   :  { %2974 = vmatpush2.bf16.msra.mxu1 %v6997_v16 }
 0x268   :  { %3029 = vmatprep.subr.bf16.mxu1 %v7005_v17  ;;  %v6976_v17 = vld [vmem:[#allocation3 + $0x988] ss:$16 sps:$4 sm:$0xff]  }
 0x26a   :  { %v1942_v18 = vpop.f32.mrf.mxu0 }
 0x26b   :  { %v1943_v27 = vadd.f32 %v1942_v18, %v1251_v23  ;;  %v6984_v18 = vld [vmem:[#allocation3 + $0x96c] ss:$16 sps:$4 sm:$0xff]  }
 0x26c   :  { %v1944_v19 = vpop.f32.mrf.mxu0 }
 0x26d   :  { %v1945_v26 = vadd.f32 %v1944_v19, %v1255_v22 }
 0x26e   :  { %v1946_v24 = vpop.f32.mrf.mxu0 }
 0x26f   :  { %v1947_v37 = vadd.f32 %v1946_v24, %v1251_v23  ;;  %v1263_v23 = vrot.slane %v7880_v20, %v7869_v51  ;;  %v6990_v24 = vld [vmem:[#allocation3 + $0x94c] ss:$16 sps:$4 sm:$0xff]  }
 0x270   :  { %v1948_v32 = vpop.f32.mrf.mxu0 }
 0x271   :  { %v1949_v41 = vadd.f32 %v1948_v32, %v1255_v22  ;;  %v6982_v22 = vld [vmem:[#allocation3 + $0x968] ss:$16 sps:$4 sm:$0xff]  }
 0x272   :  { %v6988_v32 = vld [vmem:[#allocation3 + $0x948] ss:$16 sps:$4 sm:$0xff]  }
 0x2aa   :  { %v1985_v25 = vpop.f32.mrf.mxu1  ;;  %v2028_v16 = vpop.f32.mrf.mxu0 }
 0x2ab   :  { %v1986_v39 = vadd.f32 %v1985_v25, %v1943_v27  ;;  %v1259_v25 = vrot.slane %v7880_v20, %v7866_v50  ;;  %v7002_v20 = vld [vmem:[#allocation3 + $0x90c] ss:$16 sps:$4 sm:$0xff]  }
 0x2ac   :  { %v1987_v33 = vpop.f32.mrf.mxu1  ;;  %v2030_v19 = vpop.f32.mrf.mxu0 }
 0x2ad   :  { %v1988_v38 = vadd.f32 %v1987_v33, %v1945_v26  ;;  %v2088_v46 = vmul.f32 0.2, %v1986_v39  ;;  %vm2080_vm11 = vcmp.ge.f32.partialorder %v1986_v39, 0.0  ;;  %v2031_v33 = vadd.f32 %v2030_v19, %v1263_v23  ;;  %v7060_v19 = vld [vmem:[#allocation3 + $0xc80] ss:$16 sps:$4 sm:$0xff]  }
 0x2ae   :  { %v1989_v40 = vpop.f32.mrf.mxu1  ;;  %v2032_v26 = vpop.f32.mrf.mxu0 }
 0x2af   :  { %v1990_v42 = vadd.f32 %v1989_v40, %v1947_v37  ;;  %v2089_v44 = vmul.f32 0.2, %v1988_v38  ;;  %vm2081_vm10 = vcmp.ge.f32.partialorder %v1988_v38, 0.0  ;;  %v2096_v36 = vsel %vm2080_vm11, %v1986_v39, %v2088_v46  ;;  %v6996_v37 = vld [vmem:[#allocation3 + $0x92c] ss:$16 sps:$4 sm:$0xff]  }
 0x2b0   :  { %v1991_v43 = vpop.f32.mrf.mxu1  ;;  %v2034_v39 = vpop.f32.mrf.mxu0 }
 0x2b1   :  { %vm2084_vm9 = vcmp.ge.f32.partialorder %v1990_v42, 0.0  ;;  %v2092_v45 = vmul.f32 0.2, %v1990_v42  ;;  %v1992_v21 = vadd.f32 %v1991_v43, %v1949_v41  ;;  %v2097_v48 = vsel %vm2081_vm10, %v1988_v38, %v2089_v44 }
 0x2b2   :  { %v2029_v38 = vadd.f32 %v2028_v16, %v1259_v25  ;;  %v2033_v41 = vadd.f32 %v2032_v26, %v1259_v25  ;;  %v7062_v16 = vld [vmem:[#allocation3 + $0xc84] ss:$16 sps:$4 sm:$0xff]   ;;  %v7063_v25 = vld [vmem:[#allocation3 + $0xc60] ss:$16 sps:$4 sm:$0xff]   ;;  %vm4304_vm10 = vcmask 1043459  }
 0x2b3   :  { %vm2085_vm12 = vcmp.ge.f32.partialorder %v1992_v21, 0.0  ;;  %v2093_v47 = vmul.f32 0.2, %v1992_v21  ;;  %v2100_v31 = vsel %vm2084_vm9, %v1990_v42, %v2092_v45  ;;  %v6994_v45 = vld [vmem:[#allocation3 + $0x928] ss:$16 sps:$4 sm:$0xff]  }
 0x2b4   :  { %v7886_v59 = vpack.c.bf16 %v2100_v31, %v2096_v36  ;;  %v7068_v26 = vld [vmem:[#allocation3 + $0xc44] ss:$16 sps:$4 sm:$0xff]  }
 0x2b5   :  { %v2101_v49 = vsel %vm2085_vm12, %v1992_v21, %v2093_v47  ;;  %v2035_v21 = vadd.f32 %v2034_v39, %v1263_v23  ;;  %v7021_v23 = vld [vmem:[#allocation3 + $0xa28] ss:$16 sps:$4 sm:$0xff]   ;;  %v7032_v39 = vld [vmem:[#allocation3 + $0xbcc] ss:$16 sps:$4 sm:$0xff]  }
 0x2b6   :  { %v2105_v57 = vpack.c.bf16 %v2101_v49, %v2097_v48 }
 0x2b8   :  { %2932 = vmatprep.mubr.bf16.mxu0 %v2105_v57 }
 0x2b9   :  { %2933 = vmatmul.mubr.bf16.vlgmr.msra.gmra.mxu0 %v7886_v59 }
 0x2ba   :  { %2987 = vmatpush1.bf16.msra.mxu0 %v6910_v58  ;;  %3018 = vmatprep.mubr.bf16.mxu0 %v2105_v57  ;;  %v7000_v57 = vld [vmem:[#allocation3 + $0x908] ss:$16 sps:$4 sm:$0xff]  }
 0x2bb   :  { %2988 = vmatprep.subr.bf16.mxu0 %v6918_v60 }
 0x2be   :  { %2989 = vmatpush1.bf16.msra.mxu0 %v6916_v61 }
 0x2bf   :  { %2990 = vmatprep.subr.bf16.mxu0 %v6924_v62 }
 0x2c2   :  { %2991 = vmatpush1.bf16.msra.mxu0 %v6922_v0 }
 0x2c3   :  { %2992 = vmatprep.subr.bf16.mxu0 %v6930_v1 }
 0x2c6   :  { %2993 = vmatpush1.bf16.msra.mxu0 %v6928_v2  ;;  %v7003_v2 = vld [vmem:[#allocation3 + $0xae8] ss:$16 sps:$4 sm:$0xff]  }
 0x2c7   :  { %2994 = vmatprep.subr.bf16.mxu0 %v6936_v3 }
 0x2ca   :  { %2995 = vmatpush1.bf16.msra.mxu0 %v6934_v53  ;;  %v7008_v53 = vld [vmem:[#allocation3 + $0xacc] ss:$16 sps:$4 sm:$0xff]  }
 0x2cb   :  { %2996 = vmatprep.subr.bf16.mxu0 %v6942_v4  ;;  %v7006_v4 = vld [vmem:[#allocation3 + $0xac8] ss:$16 sps:$4 sm:$0xff]  }
 0x2ce   :  { %2997 = vmatpush1.bf16.msra.mxu0 %v6940_v5  ;;  %v7011_v5 = vld [vmem:[#allocation3 + $0xaac] ss:$16 sps:$4 sm:$0xff]  }
 0x2cf   :  { %2998 = vmatprep.subr.bf16.mxu0 %v6948_v6  ;;  %v7009_v6 = vld [vmem:[#allocation3 + $0xaa8] ss:$16 sps:$4 sm:$0xff]  }
 0x2d2   :  { %2999 = vmatpush1.bf16.msra.mxu0 %v6946_v7  ;;  %v7014_v7 = vld [vmem:[#allocation3 + $0xa8c] ss:$16 sps:$4 sm:$0xff]  }
 0x2d3   :  { %3000 = vmatprep.subr.bf16.mxu0 %v6954_v8  ;;  %v7051_v8 = vld [vmem:[#allocation3 + $0xce0] ss:$16 sps:$4 sm:$0xff]  }
 0x2d6   :  { %3001 = vmatpush1.bf16.msra.mxu0 %v6952_v9  ;;  %v7053_v9 = vld [vmem:[#allocation3 + $0xce4] ss:$16 sps:$4 sm:$0xff]  }
 0x2d7   :  { %3002 = vmatprep.subr.bf16.mxu0 %v6960_v10  ;;  %v7056_v10 = vld [vmem:[#allocation3 + $0xcc4] ss:$16 sps:$4 sm:$0xff]  }
 0x2da   :  { %3003 = vmatpush2.bf16.msra.mxu0 %v6958_v11  ;;  %v7012_v11 = vld [vmem:[#allocation3 + $0xa88] ss:$16 sps:$4 sm:$0xff]  }
 0x2db   :  { %3004 = vmatprep.subr.bf16.mxu0 %v6966_v35  ;;  %v7017_v35 = vld [vmem:[#allocation3 + $0xa6c] ss:$16 sps:$4 sm:$0xff]  }
 0x2de   :  { %3005 = vmatpush2.bf16.msra.mxu0 %v6964_v12  ;;  %v7054_v12 = vld [vmem:[#allocation3 + $0xcc0] ss:$16 sps:$4 sm:$0xff]  }
 0x2df   :  { %3006 = vmatprep.subr.bf16.mxu0 %v6972_v13  ;;  %v7015_v13 = vld [vmem:[#allocation3 + $0xa68] ss:$16 sps:$4 sm:$0xff]  }
 0x2e2   :  { %3007 = vmatpush2.bf16.msra.mxu0 %v6970_v14  ;;  %v7020_v14 = vld [vmem:[#allocation3 + $0xa4c] ss:$16 sps:$4 sm:$0xff]  }
 0x2e3   :  { %3008 = vmatprep.subr.bf16.mxu0 %v6978_v15  ;;  %v7057_v15 = vld [vmem:[#allocation3 + $0xca0] ss:$16 sps:$4 sm:$0xff]  }
 0x2e6   :  { %3009 = vmatpush2.bf16.msra.mxu0 %v6976_v17  ;;  %v7018_v17 = vld [vmem:[#allocation3 + $0xa48] ss:$16 sps:$4 sm:$0xff]  }
 0x2e7   :  { %3010 = vmatprep.subr.bf16.mxu0 %v6984_v18  ;;  %v7023_v18 = vld [vmem:[#allocation3 + $0xa2c] ss:$16 sps:$4 sm:$0xff]  }
 0x2ea   :  { %v2071_v27 = vpop.f32.mrf.mxu1  ;;  %3011 = vmatpush2.bf16.msra.mxu0 %v6982_v22  ;;  %v7065_v22 = vld [vmem:[#allocation3 + $0xc64] ss:$16 sps:$4 sm:$0xff]  }
 0x2eb   :  { %3012 = vmatprep.subr.bf16.mxu0 %v6990_v24  ;;  %v2072_v43 = vadd.f32 %v2071_v27, %v2029_v38  ;;  %v7026_v24 = vld [vmem:[#allocation3 + $0xa0c] ss:$16 sps:$4 sm:$0xff]   ;;  %v7024_v27 = vld [vmem:[#allocation3 + $0xa08] ss:$16 sps:$4 sm:$0xff]  }
 0x2ec   :  { %v2073_v40 = vpop.f32.mrf.mxu1  ;;  %v7027_v38 = vld [vmem:[#allocation3 + $0xbe8] ss:$16 sps:$4 sm:$0xff]  }
 0x2ed   :  { %v2074_v42 = vadd.f32 %v2073_v40, %v2031_v33  ;;  %v2090_v36 = vmul.f32 0.2, %v2072_v43  ;;  %vm2082_vm15 = vcmp.ge.f32.partialorder %v2072_v43, 0.0  ;;  %v7066_v33 = vld [vmem:[#allocation3 + $0xc40] ss:$16 sps:$4 sm:$0xff]  }
 0x2ee   :  { %v2075_v44 = vpop.f32.mrf.mxu1  ;;  %3013 = vmatpush2.bf16.msra.mxu0 %v6988_v32  ;;  %v7029_v32 = vld [vmem:[#allocation3 + $0xbec] ss:$16 sps:$4 sm:$0xff]   ;;  %v7069_v40 = vld [vmem:[#allocation3 + $0xc20] ss:$16 sps:$4 sm:$0xff]  }
 0x2ef   :  { %v2076_v46 = vadd.f32 %v2075_v44, %v2033_v41  ;;  %3014 = vmatprep.subr.bf16.mxu0 %v6996_v37  ;;  %v2091_v31 = vmul.f32 0.2, %v2074_v42  ;;  %vm2083_vm14 = vcmp.ge.f32.partialorder %v2074_v42, 0.0  ;;  %v2098_v0 = vsel %vm2082_vm15, %v2072_v43, %v2090_v36  ;;  %v7071_v37 = vld [vmem:[#allocation3 + $0xc24] ss:$16 sps:$4 sm:$0xff]  }
 0x2f0   :  { %v2077_v47 = vpop.f32.mrf.mxu1  ;;  %v7074_v41 = vld [vmem:[#allocation3 + $0xc04] ss:$16 sps:$4 sm:$0xff]   ;;  %v7035_v43 = vld [vmem:[#allocation3 + $0xbac] ss:$16 sps:$4 sm:$0xff]   ;;  %v7072_v44 = vld [vmem:[#allocation3 + $0xc00] ss:$16 sps:$4 sm:$0xff]  }
 0x2f1   :  { %vm2086_vm13 = vcmp.ge.f32.partialorder %v2076_v46, 0.0  ;;  %v2094_v48 = vmul.f32 0.2, %v2076_v46  ;;  %v2078_v49 = vadd.f32 %v2077_v47, %v2035_v21  ;;  %v2099_v61 = vsel %vm2083_vm14, %v2074_v42, %v2091_v31  ;;  %v7030_v42 = vld [vmem:[#allocation3 + $0xbc8] ss:$16 sps:$4 sm:$0xff]  }
 0x2f2   :  { %3015 = vmatpush2.bf16.msra.mxu0 %v6994_v45  ;;  %v7077_v45 = vld [vmem:[#allocation3 + $0xde4] ss:$16 sps:$4 sm:$0xff]   ;;  %v7033_v21 = vld [vmem:[#allocation3 + $0xba8] ss:$16 sps:$4 sm:$0xff]   ;;  %vm4287_vm15 = vcmask 1041409  }
 0x2f3   :  { %vm2087_vm1 = vcmp.ge.f32.partialorder %v2078_v49, 0.0  ;;  %v2095_v58 = vmul.f32 0.2, %v2078_v49  ;;  %3016 = vmatprep.subr.bf16.mxu0 %v7002_v20  ;;  %v2102_v60 = vsel %vm2086_vm13, %v2076_v46, %v2094_v48  ;;  %v7038_v46 = vld [vmem:[#allocation3 + $0xb8c] ss:$16 sps:$4 sm:$0xff]  }
 0x2f4   :  { %v7893_v3 = vpack.c.bf16 %v2102_v60, %v2098_v0  ;;  %v7075_v20 = vld [vmem:[#allocation3 + $0xde0] ss:$16 sps:$4 sm:$0xff]   ;;  %v7080_v47 = vld [vmem:[#allocation3 + $0xdc4] ss:$16 sps:$4 sm:$0xff]   ;;  %v7036_v31 = vld [vmem:[#allocation3 + $0xb88] ss:$16 sps:$4 sm:$0xff]  }
 0x2f5   :  { %v2103_v62 = vsel %vm2087_vm1, %v2078_v49, %v2095_v58  ;;  %v7041_v48 = vld [vmem:[#allocation3 + $0xb6c] ss:$16 sps:$4 sm:$0xff]   ;;  %v7078_v49 = vld [vmem:[#allocation3 + $0xdc0] ss:$16 sps:$4 sm:$0xff]   ;;  %v7083_v36 = vld [vmem:[#allocation3 + $0xda4] ss:$16 sps:$4 sm:$0xff]  }
 0x2f6   :  { %3017 = vmatpush2.bf16.msra.mxu0 %v7000_v57  ;;  %v2107_v1 = vpack.c.bf16 %v2103_v62, %v2099_v61  ;;  %v7039_v57 = vld [vmem:[#allocation3 + $0xb68] ss:$16 sps:$4 sm:$0xff]   ;;  %v7044_v58 = vld [vmem:[#allocation3 + $0xb4c] ss:$16 sps:$4 sm:$0xff]   ;;  %v7081_v60 = vld [vmem:[#allocation3 + $0xda0] ss:$16 sps:$4 sm:$0xff]  }
 0x2f7   :  { %3892 = vmatprep.subr.bf16.mxu0 %v7053_v9  ;;  %v7086_v61 = vld [vmem:[#allocation3 + $0xd84] ss:$16 sps:$4 sm:$0xff]   ;;  %v7042_v62 = vld [vmem:[#allocation3 + $0xb48] ss:$16 sps:$4 sm:$0xff]   ;;  %v7047_v0 = vld [vmem:[#allocation3 + $0xb2c] ss:$16 sps:$4 sm:$0xff]  }
 0x2f8   :  { %2975 = vmatprep.mubr.bf16.mxu1 %v2107_v1  ;;  %v7095_v9 = vld [vmem:[#allocation3 + $0xd24] ss:$16 sps:$4 sm:$0xff]  }
 0x2f9   :  { %2976 = vmatmul.mubr.bf16.vlgmr.msra.gmra.mxu1 %v7893_v3  ;;  %3019 = vmatmul.mubr.bf16.vlgmr.msra.gmra.mxu0 %v7886_v59  ;;  %v7059_v59 = vld [vmem:[#allocation3 + $0xca4] ss:$16 sps:$4 sm:$0xff]  }
 0x2fa   :  { %3030 = vmatpush1.bf16.msra.mxu1 %v7003_v2  ;;  %3061 = vmatprep.mubr.bf16.mxu1 %v2107_v1  ;;  %v7084_v1 = vld [vmem:[#allocation3 + $0xd80] ss:$16 sps:$4 sm:$0xff]   ;;  %v7089_v2 = vld [vmem:[#allocation3 + $0xd64] ss:$16 sps:$4 sm:$0xff]  }
 0x2fb   :  { %3031 = vmatprep.subr.bf16.mxu1 %v7008_v53  ;;  %3893 = vmatpush1.bf16.msra.mxu0 %v7051_v8  ;;  %v7045_v53 = vld [vmem:[#allocation3 + $0xb28] ss:$16 sps:$4 sm:$0xff]   ;;  %v7090_v8 = vld [vmem:[#allocation3 + $0xd40] ss:$16 sps:$4 sm:$0xff]  }
 0x2fc   :  { %3894 = vmatprep.subr.bf16.mxu0 %v7056_v10  ;;  %v7093_v10 = vld [vmem:[#allocation3 + $0xd20] ss:$16 sps:$4 sm:$0xff]  }
 0x2fe   :  { %3032 = vmatpush1.bf16.msra.mxu1 %v7006_v4  ;;  %v7050_v4 = vld [vmem:[#allocation3 + $0xb0c] ss:$16 sps:$4 sm:$0xff]  }
 0x2ff   :  { %3033 = vmatprep.subr.bf16.mxu1 %v7011_v5  ;;  %3895 = vmatpush1.bf16.msra.mxu0 %v7054_v12  ;;  %v7087_v5 = vld [vmem:[#allocation3 + $0xd60] ss:$16 sps:$4 sm:$0xff]  }
 0x300   :  { %3896 = vmatprep.subr.bf16.mxu0 %v7059_v59  ;;  %v7099_v12 = vld [vmem:[#allocation3 + $0xee0] ss:$16 sps:$4 sm:$0xff]   ;;  %v7101_v59 = vld [vmem:[#allocation3 + $0xee4] ss:$16 sps:$4 sm:$0xff]  }
 0x302   :  { %3034 = vmatpush1.bf16.msra.mxu1 %v7009_v6  ;;  %v7048_v6 = vld [vmem:[#allocation3 + $0xb08] ss:$16 sps:$4 sm:$0xff]  }
 0x303   :  { %3035 = vmatprep.subr.bf16.mxu1 %v7014_v7  ;;  %3897 = vmatpush1.bf16.msra.mxu0 %v7057_v15  ;;  %v7092_v7 = vld [vmem:[#allocation3 + $0xd44] ss:$16 sps:$4 sm:$0xff]   ;;  %v7111_v15 = vld [vmem:[#allocation3 + $0xea0] ss:$16 sps:$4 sm:$0xff]  }
 0x304   :  { %3898 = vmatprep.subr.bf16.mxu0 %v7062_v16  ;;  %v7113_v16 = vld [vmem:[#allocation3 + $0xea4] ss:$16 sps:$4 sm:$0xff]  }
 0x306   :  { %3036 = vmatpush1.bf16.msra.mxu1 %v7012_v11  ;;  %v7098_v11 = vld [vmem:[#allocation3 + $0xd04] ss:$16 sps:$4 sm:$0xff]  }
 0x307   :  { %3037 = vmatprep.subr.bf16.mxu1 %v7017_v35  ;;  %3899 = vmatpush1.bf16.msra.mxu0 %v7060_v19  ;;  %v7096_v35 = vld [vmem:[#allocation3 + $0xd00] ss:$16 sps:$4 sm:$0xff]  }
 0x308   :  { %3900 = vmatprep.subr.bf16.mxu0 %v7065_v22  ;;  %v7123_v19 = vld [vmem:[#allocation3 + $0xe60] ss:$16 sps:$4 sm:$0xff]   ;;  %v7125_v22 = vld [vmem:[#allocation3 + $0xe64] ss:$16 sps:$4 sm:$0xff]  }
 0x30a   :  { %3038 = vmatpush1.bf16.msra.mxu1 %v7015_v13  ;;  %v7104_v13 = vld [vmem:[#allocation3 + $0xcec] ss:$16 sps:$4 sm:$0xff]  }
 0x30b   :  { %3039 = vmatprep.subr.bf16.mxu1 %v7020_v14  ;;  %3901 = vmatpush1.bf16.msra.mxu0 %v7063_v25  ;;  %v7105_v14 = vld [vmem:[#allocation3 + $0xec0] ss:$16 sps:$4 sm:$0xff]  }
 0x30c   :  { %3902 = vmatprep.subr.bf16.mxu0 %v7068_v26  ;;  %v7135_v25 = vld [vmem:[#allocation3 + $0xe20] ss:$16 sps:$4 sm:$0xff]   ;;  %v7137_v26 = vld [vmem:[#allocation3 + $0xe24] ss:$16 sps:$4 sm:$0xff]  }
 0x30e   :  { %3040 = vmatpush1.bf16.msra.mxu1 %v7018_v17  ;;  %v7117_v17 = vld [vmem:[#allocation3 + $0xe80] ss:$16 sps:$4 sm:$0xff]  }
 0x30f   :  { %3041 = vmatprep.subr.bf16.mxu1 %v7023_v18  ;;  %3903 = vmatpush1.bf16.msra.mxu0 %v7066_v33  ;;  %v7119_v18 = vld [vmem:[#allocation3 + $0xe84] ss:$16 sps:$4 sm:$0xff]   ;;  %v7147_v33 = vld [vmem:[#allocation3 + $0xfe0] ss:$16 sps:$4 sm:$0xff]  }
 0x310   :  { %3904 = vmatprep.subr.bf16.mxu0 %v7071_v37  ;;  %v7149_v37 = vld [vmem:[#allocation3 + $0xfe4] ss:$16 sps:$4 sm:$0xff]  }
 0x312   :  { %3042 = vmatpush1.bf16.msra.mxu1 %v7021_v23  ;;  %v7129_v23 = vld [vmem:[#allocation3 + $0xe40] ss:$16 sps:$4 sm:$0xff]  }
 0x313   :  { %3043 = vmatprep.subr.bf16.mxu1 %v7026_v24  ;;  %3905 = vmatpush1.bf16.msra.mxu0 %v7069_v40  ;;  %v7131_v24 = vld [vmem:[#allocation3 + $0xe44] ss:$16 sps:$4 sm:$0xff]   ;;  %v7159_v40 = vld [vmem:[#allocation3 + $0xfa0] ss:$16 sps:$4 sm:$0xff]  }
 0x314   :  { %3906 = vmatprep.subr.bf16.mxu0 %v7074_v41  ;;  %v7161_v41 = vld [vmem:[#allocation3 + $0xfa4] ss:$16 sps:$4 sm:$0xff]  }
 0x316   :  { %3044 = vmatpush1.bf16.msra.mxu1 %v7024_v27  ;;  %v7141_v27 = vld [vmem:[#allocation3 + $0xe00] ss:$16 sps:$4 sm:$0xff]  }
 0x317   :  { %3045 = vmatprep.subr.bf16.mxu1 %v7029_v32  ;;  %3907 = vmatpush1.bf16.msra.mxu0 %v7072_v44  ;;  %v7143_v32 = vld [vmem:[#allocation3 + $0xe04] ss:$16 sps:$4 sm:$0xff]   ;;  %v7171_v44 = vld [vmem:[#allocation3 + $0xf60] ss:$16 sps:$4 sm:$0xff]  }
 0x318   :  { %3908 = vmatprep.subr.bf16.mxu0 %v7077_v45  ;;  %v7173_v45 = vld [vmem:[#allocation3 + $0xf64] ss:$16 sps:$4 sm:$0xff]  }
 0x31a   :  { %3046 = vmatpush2.bf16.msra.mxu1 %v7027_v38  ;;  %v7153_v38 = vld [vmem:[#allocation3 + $0xfc0] ss:$16 sps:$4 sm:$0xff]  }
 0x31b   :  { %3047 = vmatprep.subr.bf16.mxu1 %v7032_v39  ;;  %3909 = vmatpush2.bf16.msra.mxu0 %v7075_v20  ;;  %v7155_v39 = vld [vmem:[#allocation3 + $0xfc4] ss:$16 sps:$4 sm:$0xff]  }
 0x31c   :  { %3910 = vmatprep.subr.bf16.mxu0 %v7080_v47  ;;  %v7185_v20 = vld [vmem:[#allocation3 + $0xf24] ss:$16 sps:$4 sm:$0xff]   ;;  %v7183_v47 = vld [vmem:[#allocation3 + $0xf20] ss:$16 sps:$4 sm:$0xff]  }
 0x31e   :  { %3048 = vmatpush2.bf16.msra.mxu1 %v7030_v42  ;;  %v7165_v42 = vld [vmem:[#allocation3 + $0xf80] ss:$16 sps:$4 sm:$0xff]  }
 0x31f   :  { %3049 = vmatprep.subr.bf16.mxu1 %v7035_v43  ;;  %3911 = vmatpush2.bf16.msra.mxu0 %v7078_v49  ;;  %v7167_v43 = vld [vmem:[#allocation3 + $0xf84] ss:$16 sps:$4 sm:$0xff]   ;;  %v7197_v49 = vld [vmem:[#allocation3 + $0xeec] ss:$16 sps:$4 sm:$0xff]  }
 0x320   :  { %3912 = vmatprep.subr.bf16.mxu0 %v7083_v36 }
 0x322   :  { %3050 = vmatpush2.bf16.msra.mxu1 %v7033_v21  ;;  %v7179_v21 = vld [vmem:[#allocation3 + $0xf44] ss:$16 sps:$4 sm:$0xff]  }
 0x323   :  { %3051 = vmatprep.subr.bf16.mxu1 %v7038_v46  ;;  %3913 = vmatpush2.bf16.msra.mxu0 %v7081_v60  ;;  %v7177_v46 = vld [vmem:[#allocation3 + $0xf40] ss:$16 sps:$4 sm:$0xff]  }
 0x324   :  { %3914 = vmatprep.subr.bf16.mxu0 %v7086_v61 }
 0x326   :  { %3052 = vmatpush2.bf16.msra.mxu1 %v7036_v31  ;;  %v7191_v31 = vld [vmem:[#allocation3 + $0xf04] ss:$16 sps:$4 sm:$0xff]  }
 0x327   :  { %3053 = vmatprep.subr.bf16.mxu1 %v7041_v48  ;;  %3915 = vmatpush2.bf16.msra.mxu0 %v7084_v1  ;;  %v7189_v48 = vld [vmem:[#allocation3 + $0xf00] ss:$16 sps:$4 sm:$0xff]  }
 0x328   :  { %3916 = vmatprep.subr.bf16.mxu0 %v7089_v2 }
 0x32a   :  { %3054 = vmatpush2.bf16.msra.mxu1 %v7039_v57 }
 0x32b   :  { %3055 = vmatprep.subr.bf16.mxu1 %v7044_v58  ;;  %3917 = vmatpush2.bf16.msra.mxu0 %v7087_v5  ;;  %v7898_v58 = vld [vmem:[#allocation5 + $0x8] sm:$0xf] }
 0x32c   :  { %3918 = vmatprep.subr.bf16.mxu0 %v7092_v7  ;;  %v2247_v60 = vrot.slane %v7898_v58, %v7854_v55  ;;  %v2243_v61 = vrot.slane %v7898_v58, %v7851_v54 }
 0x32e   :  { %3056 = vmatpush2.bf16.msra.mxu1 %v7042_v62 }
 0x32f   :  { %3057 = vmatprep.subr.bf16.mxu1 %v7047_v0  ;;  %3919 = vmatpush2.bf16.msra.mxu0 %v7090_v8 }
 0x330   :  { %3920 = vmatprep.subr.bf16.mxu0 %v7095_v9 }
 0x332   :  { %3058 = vmatpush2.bf16.msra.mxu1 %v7045_v53 }
 0x333   :  { %3059 = vmatprep.subr.bf16.mxu1 %v7050_v4  ;;  %3921 = vmatpush2.bf16.msra.mxu0 %v7093_v10 }
 0x334   :  { %3922 = vmatprep.subr.bf16.mxu0 %v7098_v11 }
 0x336   :  { %3060 = vmatpush2.bf16.msra.mxu1 %v7048_v6 }
 0x337   :  { %3923 = vmatpush2.bf16.msra.mxu0 %v7096_v35  ;;  %3935 = vmatprep.subr.bf16.mxu1 %v7101_v59 }
 0x338   :  { %3978 = vmatprep.subr.bf16.mxu0 %v7104_v13 }
 0x339   :  { %3062 = vmatmul.mubr.bf16.vlgmr.msra.gmra.mxu1 %v7893_v3  ;;  %v7107_v3 = vld [vmem:[#allocation3 + $0xec4] ss:$16 sps:$4 sm:$0xff]  }
 0x33a   :  { %3936 = vmatpush1.bf16.msra.mxu1 %v7099_v12 }
 0x33b   :  { %3937 = vmatprep.subr.bf16.mxu1 %v7107_v3 }
 0x33e   :  { %3938 = vmatpush1.bf16.msra.mxu1 %v7105_v14 }
 0x33f   :  { %3939 = vmatprep.subr.bf16.mxu1 %v7113_v16 }
 0x342   :  { %3940 = vmatpush1.bf16.msra.mxu1 %v7111_v15 }
 0x343   :  { %3941 = vmatprep.subr.bf16.mxu1 %v7119_v18 }
 0x346   :  { %3942 = vmatpush1.bf16.msra.mxu1 %v7117_v17 }
 0x347   :  { %3943 = vmatprep.subr.bf16.mxu1 %v7125_v22 }
 0x34a   :  { %3944 = vmatpush1.bf16.msra.mxu1 %v7123_v19  ;;  %v7102_v19 = vld [vmem:[#allocation3 + $0xce8] ss:$16 sps:$4 sm:$0xff]  }
 0x34b   :  { %3945 = vmatprep.subr.bf16.mxu1 %v7131_v24  ;;  %v7108_v24 = vld [vmem:[#allocation3 + $0xcc8] ss:$16 sps:$4 sm:$0xff]  }
 0x34e   :  { %3946 = vmatpush1.bf16.msra.mxu1 %v7129_v23  ;;  %v7110_v23 = vld [vmem:[#allocation3 + $0xccc] ss:$16 sps:$4 sm:$0xff]  }
 0x34f   :  { %3947 = vmatprep.subr.bf16.mxu1 %v7137_v26  ;;  %v7114_v26 = vld [vmem:[#allocation3 + $0xca8] ss:$16 sps:$4 sm:$0xff]  }
 0x352   :  { %3948 = vmatpush1.bf16.msra.mxu1 %v7135_v25  ;;  %v7116_v25 = vld [vmem:[#allocation3 + $0xcac] ss:$16 sps:$4 sm:$0xff]  }
 0x353   :  { %3949 = vmatprep.subr.bf16.mxu1 %v7143_v32  ;;  %v7120_v32 = vld [vmem:[#allocation3 + $0xc88] ss:$16 sps:$4 sm:$0xff]  }
 0x356   :  { %3950 = vmatpush1.bf16.msra.mxu1 %v7141_v27  ;;  %v7122_v27 = vld [vmem:[#allocation3 + $0xc8c] ss:$16 sps:$4 sm:$0xff]  }
 0x357   :  { %3951 = vmatprep.subr.bf16.mxu1 %v7149_v37  ;;  %v7126_v37 = vld [vmem:[#allocation3 + $0xc68] ss:$16 sps:$4 sm:$0xff]  }
 0x35a   :  { %3952 = vmatpush2.bf16.msra.mxu1 %v7147_v33  ;;  %v7128_v33 = vld [vmem:[#allocation3 + $0xc6c] ss:$16 sps:$4 sm:$0xff]  }
 0x35b   :  { %3953 = vmatprep.subr.bf16.mxu1 %v7155_v39  ;;  %v7132_v39 = vld [vmem:[#allocation3 + $0xc48] ss:$16 sps:$4 sm:$0xff]  }
 0x35e   :  { %3954 = vmatpush2.bf16.msra.mxu1 %v7153_v38  ;;  %v7134_v38 = vld [vmem:[#allocation3 + $0xc4c] ss:$16 sps:$4 sm:$0xff]  }
 0x35f   :  { %3955 = vmatprep.subr.bf16.mxu1 %v7161_v41  ;;  %v7138_v41 = vld [vmem:[#allocation3 + $0xc28] ss:$16 sps:$4 sm:$0xff]  }
 0x362   :  { %3956 = vmatpush2.bf16.msra.mxu1 %v7159_v40  ;;  %v7140_v40 = vld [vmem:[#allocation3 + $0xc2c] ss:$16 sps:$4 sm:$0xff]  }
 0x363   :  { %3957 = vmatprep.subr.bf16.mxu1 %v7167_v43  ;;  %v7144_v43 = vld [vmem:[#allocation3 + $0xc08] ss:$16 sps:$4 sm:$0xff]  }
 0x366   :  { %3958 = vmatpush2.bf16.msra.mxu1 %v7165_v42  ;;  %v7146_v42 = vld [vmem:[#allocation3 + $0xc0c] ss:$16 sps:$4 sm:$0xff]  }
 0x367   :  { %3959 = vmatprep.subr.bf16.mxu1 %v7173_v45  ;;  %v7150_v45 = vld [vmem:[#allocation3 + $0xde8] ss:$16 sps:$4 sm:$0xff]  }
 0x36a   :  { %3960 = vmatpush2.bf16.msra.mxu1 %v7171_v44  ;;  %v7152_v44 = vld [vmem:[#allocation3 + $0xdec] ss:$16 sps:$4 sm:$0xff]  }
 0x36b   :  { %3961 = vmatprep.subr.bf16.mxu1 %v7179_v21  ;;  %v7158_v21 = vld [vmem:[#allocation3 + $0xdcc] ss:$16 sps:$4 sm:$0xff]  }
 0x36e   :  { %3962 = vmatpush2.bf16.msra.mxu1 %v7177_v46  ;;  %v7156_v46 = vld [vmem:[#allocation3 + $0xdc8] ss:$16 sps:$4 sm:$0xff]  }
 0x36f   :  { %3963 = vmatprep.subr.bf16.mxu1 %v7185_v20  ;;  %v7164_v20 = vld [vmem:[#allocation3 + $0xdac] ss:$16 sps:$4 sm:$0xff]  }
 0x372   :  { %3964 = vmatpush2.bf16.msra.mxu1 %v7183_v47  ;;  %v7162_v47 = vld [vmem:[#allocation3 + $0xda8] ss:$16 sps:$4 sm:$0xff]  }
 0x373   :  { %3965 = vmatprep.subr.bf16.mxu1 %v7191_v31  ;;  %v7170_v31 = vld [vmem:[#allocation3 + $0xd8c] ss:$16 sps:$4 sm:$0xff]  }
 0x376   :  { %3966 = vmatpush2.bf16.msra.mxu1 %v7189_v48 }
 0x377   :  { %4021 = vmatprep.subr.bf16.mxu1 %v7197_v49  ;;  %v7168_v49 = vld [vmem:[#allocation3 + $0xd88] ss:$16 sps:$4 sm:$0xff]  }
 0x379   :  { %v2934_v36 = vpop.f32.mrf.mxu0 }
 0x37a   :  { %v2935_v2 = vadd.f32 %v2934_v36, %v2243_v61  ;;  %v7176_v36 = vld [vmem:[#allocation3 + $0xd6c] ss:$16 sps:$4 sm:$0xff]  }
 0x37b   :  { %v2936_v57 = vpop.f32.mrf.mxu0 }
 0x37c   :  { %v2937_v1 = vadd.f32 %v2936_v57, %v2247_v60 }
 0x37d   :  { %v2938_v62 = vpop.f32.mrf.mxu0 }
 0x37e   :  { %v2939_v5 = vadd.f32 %v2938_v62, %v2243_v61  ;;  %v2255_v61 = vrot.slane %v7898_v58, %v7869_v51  ;;  %v7182_v62 = vld [vmem:[#allocation3 + $0xd4c] ss:$16 sps:$4 sm:$0xff]  }
 0x37f   :  { %v2940_v53 = vpop.f32.mrf.mxu0 }
 0x380   :  { %v2941_v9 = vadd.f32 %v2940_v53, %v2247_v60  ;;  %v7174_v60 = vld [vmem:[#allocation3 + $0xd68] ss:$16 sps:$4 sm:$0xff]  }
 0x381   :  { %v7180_v53 = vld [vmem:[#allocation3 + $0xd48] ss:$16 sps:$4 sm:$0xff]  }
 0x3b9   :  { %v2977_v0 = vpop.f32.mrf.mxu1  ;;  %v3020_v48 = vpop.f32.mrf.mxu0 }
 0x3ba   :  { %v2978_v7 = vadd.f32 %v2977_v0, %v2935_v2  ;;  %v2251_v0 = vrot.slane %v7898_v58, %v7866_v50  ;;  %v7194_v58 = vld [vmem:[#allocation3 + $0xd0c] ss:$16 sps:$4 sm:$0xff]  }
 0x3bb   :  { %v2979_v4 = vpop.f32.mrf.mxu1  ;;  %v3022_v57 = vpop.f32.mrf.mxu0 }
 0x3bc   :  { %v2980_v6 = vadd.f32 %v2979_v4, %v2937_v1  ;;  %v3080_v13 = vmul.f32 0.2, %v2978_v7  ;;  %vm3072_vm4 = vcmp.ge.f32.partialorder %v2978_v7, 0.0  ;;  %v3023_v4 = vadd.f32 %v3022_v57, %v2255_v61  ;;  %v7252_v57 = vld [vmem:[#allocation7 + $0xc0] ss:$24 sps:$4 sm:$0xff]  }
 0x3bd   :  { %v2981_v8 = vpop.f32.mrf.mxu1  ;;  %v3024_v1 = vpop.f32.mrf.mxu0 }
 0x3be   :  { %v2982_v10 = vadd.f32 %v2981_v8, %v2939_v5  ;;  %v3081_v35 = vmul.f32 0.2, %v2980_v6  ;;  %vm3073_vm3 = vcmp.ge.f32.partialorder %v2980_v6, 0.0  ;;  %v3088_v17 = vsel %vm3072_vm4, %v2978_v7, %v3080_v13  ;;  %v7188_v5 = vld [vmem:[#allocation3 + $0xd2c] ss:$16 sps:$4 sm:$0xff]  }
 0x3bf   :  { %v2983_v11 = vpop.f32.mrf.mxu1  ;;  %v3026_v7 = vpop.f32.mrf.mxu0 }
 0x3c0   :  { %vm3076_vm2 = vcmp.ge.f32.partialorder %v2982_v10, 0.0  ;;  %v3084_v12 = vmul.f32 0.2, %v2982_v10  ;;  %v2984_v59 = vadd.f32 %v2983_v11, %v2941_v9  ;;  %v3089_v15 = vsel %vm3073_vm3, %v2980_v6, %v3081_v35 }
 0x3c1   :  { %v3021_v6 = vadd.f32 %v3020_v48, %v2251_v0  ;;  %v3025_v9 = vadd.f32 %v3024_v1, %v2251_v0  ;;  %v7254_v48 = vld [vmem:[#allocation7 + $0xc4] ss:$24 sps:$4 sm:$0xff]   ;;  %v7255_v0 = vld [vmem:[#allocation7 + $0x90] ss:$24 sps:$4 sm:$0xff]  }
 0x3c2   :  { %vm3077_vm5 = vcmp.ge.f32.partialorder %v2984_v59, 0.0  ;;  %v3085_v14 = vmul.f32 0.2, %v2984_v59  ;;  %v3092_v3 = vsel %vm3076_vm2, %v2982_v10, %v3084_v12  ;;  %v7186_v12 = vld [vmem:[#allocation3 + $0xd28] ss:$16 sps:$4 sm:$0xff]  }
 0x3c3   :  { %v7904_v22 = vpack.c.bf16 %v3092_v3, %v3088_v17  ;;  %v7260_v1 = vld [vmem:[#allocation7 + $0x64] ss:$24 sps:$4 sm:$0xff]  }
 0x3c4   :  { %v3093_v16 = vsel %vm3077_vm5, %v2984_v59, %v3085_v14  ;;  %v3027_v59 = vadd.f32 %v3026_v7, %v2255_v61  ;;  %v7213_v61 = vld [vmem:[#allocation3 + $0xe28] ss:$16 sps:$4 sm:$0xff]   ;;  %v7224_v7 = vld [vmem:[#allocation3 + $0xfcc] ss:$16 sps:$4 sm:$0xff]  }
 0x3c5   :  { %v3097_v18 = vpack.c.bf16 %v3093_v16, %v3089_v15 }
 0x3c7   :  { %3924 = vmatprep.mubr.bf16.mxu0 %v3097_v18 }
 0x3c8   :  { %3925 = vmatmul.mubr.bf16.vlgmr.msra.gmra.mxu0 %v7904_v22 }
 0x3c9   :  { %3979 = vmatpush1.bf16.msra.mxu0 %v7102_v19  ;;  %4010 = vmatprep.mubr.bf16.mxu0 %v3097_v18  ;;  %v7192_v18 = vld [vmem:[#allocation3 + $0xd08] ss:$16 sps:$4 sm:$0xff]  }
 0x3ca   :  { %3980 = vmatprep.subr.bf16.mxu0 %v7110_v23 }
 0x3cd   :  { %3981 = vmatpush1.bf16.msra.mxu0 %v7108_v24 }
 0x3ce   :  { %3982 = vmatprep.subr.bf16.mxu0 %v7116_v25 }
 0x3d1   :  { %3983 = vmatpush1.bf16.msra.mxu0 %v7114_v26 }
 0x3d2   :  { %3984 = vmatprep.subr.bf16.mxu0 %v7122_v27 }
 0x3d5   :  { %3985 = vmatpush1.bf16.msra.mxu0 %v7120_v32  ;;  %v7195_v32 = vld [vmem:[#allocation3 + $0xee8] ss:$16 sps:$4 sm:$0xff]  }
 0x3d6   :  { %3986 = vmatprep.subr.bf16.mxu0 %v7128_v33 }
 0x3d9   :  { %3987 = vmatpush1.bf16.msra.mxu0 %v7126_v37  ;;  %v7200_v37 = vld [vmem:[#allocation3 + $0xecc] ss:$16 sps:$4 sm:$0xff]  }
 0x3da   :  { %3988 = vmatprep.subr.bf16.mxu0 %v7134_v38  ;;  %v7198_v38 = vld [vmem:[#allocation3 + $0xec8] ss:$16 sps:$4 sm:$0xff]  }
 0x3dd   :  { %3989 = vmatpush1.bf16.msra.mxu0 %v7132_v39  ;;  %v7203_v39 = vld [vmem:[#allocation3 + $0xeac] ss:$16 sps:$4 sm:$0xff]  }
 0x3de   :  { %3990 = vmatprep.subr.bf16.mxu0 %v7140_v40  ;;  %v7201_v40 = vld [vmem:[#allocation3 + $0xea8] ss:$16 sps:$4 sm:$0xff]  }
 0x3e1   :  { %3991 = vmatpush1.bf16.msra.mxu0 %v7138_v41  ;;  %v7206_v41 = vld [vmem:[#allocation3 + $0xe8c] ss:$16 sps:$4 sm:$0xff]  }
 0x3e2   :  { %3992 = vmatprep.subr.bf16.mxu0 %v7146_v42  ;;  %v7243_v42 = vld [vmem:[#allocation7 + $0x150] ss:$24 sps:$4 sm:$0xff]  }
 0x3e5   :  { %3993 = vmatpush1.bf16.msra.mxu0 %v7144_v43  ;;  %v7245_v43 = vld [vmem:[#allocation7 + $0x154] ss:$24 sps:$4 sm:$0xff]  }
 0x3e6   :  { %3994 = vmatprep.subr.bf16.mxu0 %v7152_v44  ;;  %v7248_v44 = vld [vmem:[#allocation7 + $0x124] ss:$24 sps:$4 sm:$0xff]  }
 0x3e9   :  { %3995 = vmatpush2.bf16.msra.mxu0 %v7150_v45  ;;  %v7204_v45 = vld [vmem:[#allocation3 + $0xe88] ss:$16 sps:$4 sm:$0xff]  }
 0x3ea   :  { %3996 = vmatprep.subr.bf16.mxu0 %v7158_v21  ;;  %v7209_v21 = vld [vmem:[#allocation3 + $0xe6c] ss:$16 sps:$4 sm:$0xff]  }
 0x3ed   :  { %3997 = vmatpush2.bf16.msra.mxu0 %v7156_v46  ;;  %v7246_v46 = vld [vmem:[#allocation7 + $0x120] ss:$24 sps:$4 sm:$0xff]  }
 0x3ee   :  { %3998 = vmatprep.subr.bf16.mxu0 %v7164_v20  ;;  %v7207_v20 = vld [vmem:[#allocation3 + $0xe68] ss:$16 sps:$4 sm:$0xff]  }
 0x3f1   :  { %3999 = vmatpush2.bf16.msra.mxu0 %v7162_v47  ;;  %v7212_v47 = vld [vmem:[#allocation3 + $0xe4c] ss:$16 sps:$4 sm:$0xff]  }
 0x3f2   :  { %4000 = vmatprep.subr.bf16.mxu0 %v7170_v31  ;;  %v7249_v31 = vld [vmem:[#allocation7 + $0xf0] ss:$24 sps:$4 sm:$0xff]  }
 0x3f5   :  { %4001 = vmatpush2.bf16.msra.mxu0 %v7168_v49  ;;  %v7210_v49 = vld [vmem:[#allocation3 + $0xe48] ss:$16 sps:$4 sm:$0xff]  }
 0x3f6   :  { %4002 = vmatprep.subr.bf16.mxu0 %v7176_v36  ;;  %v7215_v36 = vld [vmem:[#allocation3 + $0xe2c] ss:$16 sps:$4 sm:$0xff]  }
 0x3f9   :  { %v3063_v2 = vpop.f32.mrf.mxu1  ;;  %4003 = vmatpush2.bf16.msra.mxu0 %v7174_v60  ;;  %v7257_v60 = vld [vmem:[#allocation7 + $0x94] ss:$24 sps:$4 sm:$0xff]  }
 0x3fa   :  { %4004 = vmatprep.subr.bf16.mxu0 %v7182_v62  ;;  %v3064_v11 = vadd.f32 %v3063_v2, %v3021_v6  ;;  %v7218_v62 = vld [vmem:[#allocation3 + $0xe0c] ss:$16 sps:$4 sm:$0xff]   ;;  %v7216_v2 = vld [vmem:[#allocation3 + $0xe08] ss:$16 sps:$4 sm:$0xff]  }
 0x3fb   :  { %v3065_v8 = vpop.f32.mrf.mxu1  ;;  %v7219_v6 = vld [vmem:[#allocation3 + $0xfe8] ss:$16 sps:$4 sm:$0xff]  }
 0x3fc   :  { %v3066_v10 = vadd.f32 %v3065_v8, %v3023_v4  ;;  %v3082_v17 = vmul.f32 0.2, %v3064_v11  ;;  %vm3074_vm8 = vcmp.ge.f32.partialorder %v3064_v11, 0.0  ;;  %v7258_v4 = vld [vmem:[#allocation7 + $0x60] ss:$24 sps:$4 sm:$0xff]  }
 0x3fd   :  { %v3067_v35 = vpop.f32.mrf.mxu1  ;;  %4005 = vmatpush2.bf16.msra.mxu0 %v7180_v53  ;;  %v7221_v53 = vld [vmem:[#allocation3 + $0xfec] ss:$16 sps:$4 sm:$0xff]   ;;  %v7261_v8 = vld [vmem:[#allocation7 + $0x30] ss:$24 sps:$4 sm:$0xff]  }
 0x3fe   :  { %v3068_v13 = vadd.f32 %v3067_v35, %v3025_v9  ;;  %4006 = vmatprep.subr.bf16.mxu0 %v7188_v5  ;;  %v3083_v3 = vmul.f32 0.2, %v3066_v10  ;;  %vm3075_vm7 = vcmp.ge.f32.partialorder %v3066_v10, 0.0  ;;  %v3090_v26 = vsel %vm3074_vm8, %v3064_v11, %v3082_v17  ;;  %v7263_v5 = vld [vmem:[#allocation7 + $0x34] ss:$24 sps:$4 sm:$0xff]  }
 0x3ff   :  { %v3069_v14 = vpop.f32.mrf.mxu1  ;;  %v7266_v9 = vld [vmem:[#allocation7 + $0x4] ss:$24 sps:$4 sm:$0xff]   ;;  %v7264_v35 = vld [vmem:[#allocation7] ss:$24 sps:$4 sm:$0xff]  }
 0x400   :  { %vm3078_vm6 = vcmp.ge.f32.partialorder %v3068_v13, 0.0  ;;  %v3086_v15 = vmul.f32 0.2, %v3068_v13  ;;  %v3070_v16 = vadd.f32 %v3069_v14, %v3027_v59  ;;  %v3091_v24 = vsel %vm3075_vm7, %v3066_v10, %v3083_v3  ;;  %v7222_v10 = vld [vmem:[#allocation3 + $0xfc8] ss:$16 sps:$4 sm:$0xff]  }
 0x401   :  { %4007 = vmatpush2.bf16.msra.mxu0 %v7186_v12  ;;  %v7227_v11 = vld [vmem:[#allocation3 + $0xfac] ss:$16 sps:$4 sm:$0xff]   ;;  %v7225_v12 = vld [vmem:[#allocation3 + $0xfa8] ss:$16 sps:$4 sm:$0xff]  }
 0x402   :  { %vm3079_vm9 = vcmp.ge.f32.partialorder %v3070_v16, 0.0  ;;  %v3087_v19 = vmul.f32 0.2, %v3070_v16  ;;  %4008 = vmatprep.subr.bf16.mxu0 %v7194_v58  ;;  %v3094_v23 = vsel %vm3078_vm6, %v3068_v13, %v3086_v15  ;;  %v7230_v59 = vld [vmem:[#allocation3 + $0xf8c] ss:$16 sps:$4 sm:$0xff]  }
 0x403   :  { %v7911_v33 = vpack.c.bf16 %v3094_v23, %v3090_v26  ;;  %v7228_v13 = vld [vmem:[#allocation3 + $0xf88] ss:$16 sps:$4 sm:$0xff]   ;;  %v7233_v58 = vld [vmem:[#allocation3 + $0xf6c] ss:$16 sps:$4 sm:$0xff]   ;;  %v4133_v26 = vrot.slane %v7751_v28, 4 }
 0x404   :  { %v3095_v25 = vsel %vm3079_vm9, %v3070_v16, %v3087_v19  ;;  %v7231_v14 = vld [vmem:[#allocation3 + $0xf68] ss:$16 sps:$4 sm:$0xff]   ;;  %v7236_v3 = vld [vmem:[#allocation3 + $0xf4c] ss:$16 sps:$4 sm:$0xff]  }
 0x405   :  { %4009 = vmatpush2.bf16.msra.mxu0 %v7192_v18  ;;  %v3099_v27 = vpack.c.bf16 %v3095_v25, %v3091_v24  ;;  %v7234_v15 = vld [vmem:[#allocation3 + $0xf48] ss:$16 sps:$4 sm:$0xff]   ;;  %v7239_v16 = vld [vmem:[#allocation3 + $0xf2c] ss:$16 sps:$4 sm:$0xff]  }
 0x406   :  { %5473 = vmatprep.subr.bf16.mxu0 %v7245_v43  ;;  %v7237_v17 = vld [vmem:[#allocation3 + $0xf28] ss:$16 sps:$4 sm:$0xff]   ;;  %v7242_v18 = vld [vmem:[#allocation3 + $0xf0c] ss:$16 sps:$4 sm:$0xff]  }
 0x407   :  { %3967 = vmatprep.mubr.bf16.mxu1 %v3099_v27  ;;  %v7240_v19 = vld [vmem:[#allocation3 + $0xf08] ss:$16 sps:$4 sm:$0xff]   ;;  %v7269_v23 = vld [vmem:[#allocation7 + $0x2d4] ss:$24 sps:$4 sm:$0xff]   ;;  %v7272_v25 = vld [vmem:[#allocation7 + $0x2a4] ss:$24 sps:$4 sm:$0xff]  }
 0x408   :  { %3968 = vmatmul.mubr.bf16.vlgmr.msra.gmra.mxu1 %v7911_v33  ;;  %4011 = vmatmul.mubr.bf16.vlgmr.msra.gmra.mxu0 %v7904_v22  ;;  %v7251_v22 = vld [vmem:[#allocation7 + $0xf4] ss:$24 sps:$4 sm:$0xff]   ;;  %v7267_v24 = vld [vmem:[#allocation7 + $0x2d0] ss:$24 sps:$4 sm:$0xff]  }
 0x409   :  { %4022 = vmatpush1.bf16.msra.mxu1 %v7195_v32  ;;  %4053 = vmatprep.mubr.bf16.mxu1 %v3099_v27  ;;  %v7270_v27 = vld [vmem:[#allocation7 + $0x2a0] ss:$24 sps:$4 sm:$0xff]   ;;  %v4134_v32 = vadd.f32 %v4133_v26, %v7751_v28 }
 0x40a   :  { %4023 = vmatprep.subr.bf16.mxu1 %v7200_v37  ;;  %5474 = vmatpush1.bf16.msra.mxu0 %v7243_v42  ;;  %v7921_v37 = vld [vmem:[%s8114_s1 + $0x68] sm:$0xff]  ;;  %v4142_v42 = vrot.slane %v7753_v29, 4 }
 0x40b   :  { %5475 = vmatprep.subr.bf16.mxu0 %v7248_v44  ;;  %v85_v28 = vld [vmem:[%s8114_s1 + $0xa8] sm:$0x3]  ;;  %v7278_v44 = vld [vmem:[#allocation7 + $0x244] ss:$24 sps:$4 sm:$0xff]  }
 0x40c   :  { %4126 = vst [vmem:[%s8118_s5 + $0xa8] sm:$0x3] %v85_v28  ;;  %v4176_v43 = vsel %vm4130_vm0, %v85_v28, 0.0  ;;  %v7309_v26 = vld [vmem:[#allocation7 + $0x3c0] ss:$24 sps:$4 sm:$0xff]  }
 0x40d   :  { %4024 = vmatpush1.bf16.msra.mxu1 %v7198_v38  ;;  %v7333_v28 = vld [vmem:[#allocation7 + $0x300] ss:$24 sps:$4 sm:$0xff]  }
 0x40e   :  { %4025 = vmatprep.subr.bf16.mxu1 %v7203_v39  ;;  %5476 = vmatpush1.bf16.msra.mxu0 %v7246_v46  ;;  %v7275_v39 = vld [vmem:[#allocation7 + $0x274] ss:$24 sps:$4 sm:$0xff]   ;;  %v4135_v46 = vrot.slane %v4134_v32, 2 }
 0x40f   :  { %5477 = vmatprep.subr.bf16.mxu0 %v7251_v22  ;;  %v7276_v22 = vld [vmem:[#allocation7 + $0x240] ss:$24 sps:$4 sm:$0xff]  }
 0x411   :  { %4026 = vmatpush1.bf16.msra.mxu1 %v7201_v40  ;;  %v7273_v40 = vld [vmem:[#allocation7 + $0x270] ss:$24 sps:$4 sm:$0xff]  }
 0x412   :  { %4027 = vmatprep.subr.bf16.mxu1 %v7206_v41  ;;  %5478 = vmatpush1.bf16.msra.mxu0 %v7249_v31  ;;  %v4169_v41 = vrot.slane %v7808_v52, 4  ;;  %v4136_v31 = vadd.f32 %v4135_v46, %v4134_v32  ;;  %v7315_v32 = vld [vmem:[#allocation7 + $0x390] ss:$24 sps:$4 sm:$0xff]   ;;  %v7345_v46 = vld [vmem:[#allocation7 + $0x5a0] ss:$24 sps:$4 sm:$0xff]  }
 0x413   :  { %5479 = vmatprep.subr.bf16.mxu0 %v7254_v48 }
 0x414   :  { %v4170_v48 = vadd.f32 %v4169_v41, %v7808_v52  ;;  %v7329_v41 = vld [vmem:[#allocation7 + $0x334] ss:$24 sps:$4 sm:$0xff]  }
 0x415   :  { %4028 = vmatpush1.bf16.msra.mxu1 %v7204_v45  ;;  %v4143_v45 = vadd.f32 %v4142_v42, %v7753_v29  ;;  %v7335_v42 = vld [vmem:[#allocation7 + $0x304] ss:$24 sps:$4 sm:$0xff]  }
 0x416   :  { %4029 = vmatprep.subr.bf16.mxu1 %v7209_v21  ;;  %5480 = vmatpush1.bf16.msra.mxu0 %v7252_v57 }
 0x417   :  { %5481 = vmatprep.subr.bf16.mxu0 %v7257_v60  ;;  %v7279_v60 = vld [vmem:[#allocation7 + $0x210] ss:$24 sps:$4 sm:$0xff]  }
 0x419   :  { %4030 = vmatpush1.bf16.msra.mxu1 %v7207_v20  ;;  %v4144_v20 = vrot.slane %v4143_v45, 2 }
 0x41a   :  { %4031 = vmatprep.subr.bf16.mxu1 %v7212_v47  ;;  %5482 = vmatpush1.bf16.msra.mxu0 %v7255_v0 }
 0x41b   :  { %5483 = vmatprep.subr.bf16.mxu0 %v7260_v1  ;;  %v4137_v1 = vrot.slane %v4136_v31, 1 }
 0x41d   :  { %4032 = vmatpush1.bf16.msra.mxu1 %v7210_v49  ;;  %v7281_v49 = vld [vmem:[#allocation7 + $0x214] ss:$24 sps:$4 sm:$0xff]   ;;  %v4138_v52 = vadd.f32 %v4137_v1, %v4136_v31 }
 0x41e   :  { %4033 = vmatprep.subr.bf16.mxu1 %v7215_v36  ;;  %5484 = vmatpush1.bf16.msra.mxu0 %v7258_v4  ;;  %v4145_v36 = vadd.f32 %v4144_v20, %v4143_v45  ;;  %v7282_v4 = vld [vmem:[#allocation7 + $0x1e0] ss:$24 sps:$4 sm:$0xff]   ;;  %v4151_v45 = vrot.slane %v7755_v30, 4  ;;  %v4160_v20 = vrot.slane %v7766_v34, 4  ;;  %v7353_v31 = vld [vmem:[#allocation7 + $0x574] ss:$24 sps:$4 sm:$0xff]  }
 0x41f   :  { %5485 = vmatprep.subr.bf16.mxu0 %v7263_v5  ;;  %v7365_v1 = vld [vmem:[#allocation7 + $0x514] ss:$24 sps:$4 sm:$0xff]  }
 0x421   :  { %4034 = vmatpush1.bf16.msra.mxu1 %v7213_v61  ;;  %v4171_v61 = vrot.slane %v4170_v48, 2 }
 0x422   :  { %4035 = vmatprep.subr.bf16.mxu1 %v7218_v62  ;;  %5486 = vmatpush1.bf16.msra.mxu0 %v7261_v8  ;;  %v4146_v62 = vrot.slane %v4145_v36, 1  ;;  %v7285_v8 = vld [vmem:[#allocation7 + $0x1b0] ss:$24 sps:$4 sm:$0xff]  }
 0x423   :  { %5487 = vmatprep.subr.bf16.mxu0 %v7266_v9  ;;  %v4172_v29 = vadd.f32 %v4171_v61, %v4170_v48  ;;  %v7287_v9 = vld [vmem:[#allocation7 + $0x1b4] ss:$24 sps:$4 sm:$0xff]   ;;  %v7351_v48 = vld [vmem:[#allocation7 + $0x570] ss:$24 sps:$4 sm:$0xff]   ;;  %v7359_v61 = vld [vmem:[#allocation7 + $0x544] ss:$24 sps:$4 sm:$0xff]  }
 0x425   :  { %4036 = vmatpush1.bf16.msra.mxu1 %v7216_v2  ;;  %v7284_v2 = vld [vmem:[#allocation7 + $0x1e4] ss:$24 sps:$4 sm:$0xff]   ;;  %v4173_v5 = vrot.slane %v4172_v29, 1 }
 0x426   :  { %4037 = vmatprep.subr.bf16.mxu1 %v7221_v53  ;;  %5488 = vmatpush1.bf16.msra.mxu0 %v7264_v35  ;;  %v7291_v35 = vld [vmem:[#allocation7 + $0x450] ss:$24 sps:$4 sm:$0xff]  }
 0x427   :  { %5489 = vmatprep.subr.bf16.mxu0 %v7269_v23  ;;  %v7299_v23 = vld [vmem:[#allocation7 + $0x424] ss:$24 sps:$4 sm:$0xff]  }
 0x429   :  { %4038 = vmatpush2.bf16.msra.mxu1 %v7219_v6  ;;  %v4147_v6 = vadd.f32 %v4146_v62, %v4145_v36  ;;  %v4161_v36 = vadd.f32 %v4160_v20, %v7766_v34  ;;  %v7357_v62 = vld [vmem:[#allocation7 + $0x540] ss:$24 sps:$4 sm:$0xff]  }
 0x42a   :  { %4039 = vmatprep.subr.bf16.mxu1 %v7224_v7  ;;  %5490 = vmatpush2.bf16.msra.mxu0 %v7267_v24  ;;  %v7303_v24 = vld [vmem:[#allocation7 + $0x3f0] ss:$24 sps:$4 sm:$0xff]  }
 0x42b   :  { %5491 = vmatprep.subr.bf16.mxu0 %v7272_v25  ;;  %v7305_v25 = vld [vmem:[#allocation7 + $0x3f4] ss:$24 sps:$4 sm:$0xff]  }
 0x42d   :  { %4040 = vmatpush2.bf16.msra.mxu1 %v7222_v10  ;;  %v4174_v10 = vadd.f32 %v4173_v5, %v4172_v29 }
 0x42e   :  { %4041 = vmatprep.subr.bf16.mxu1 %v7227_v11  ;;  %5492 = vmatpush2.bf16.msra.mxu0 %v7270_v27  ;;  %v7290_v11 = vld [vmem:[#allocation7 + $0x184] ss:$24 sps:$4 sm:$0xff]  }
 0x42f   :  { %5493 = vmatprep.subr.bf16.mxu0 %v7275_v39  ;;  %v7311_v27 = vld [vmem:[#allocation7 + $0x3c4] ss:$24 sps:$4 sm:$0xff]  }
 0x430   :  { %v7323_v39 = vld [vmem:[#allocation7 + $0x364] ss:$24 sps:$4 sm:$0xff]  }
 0x431   :  { %4042 = vmatpush2.bf16.msra.mxu1 %v7225_v12  ;;  %v7293_v12 = vld [vmem:[#allocation7 + $0x454] ss:$24 sps:$4 sm:$0xff]  }
 0x432   :  { %4043 = vmatprep.subr.bf16.mxu1 %v7230_v59  ;;  %5494 = vmatpush2.bf16.msra.mxu0 %v7273_v40  ;;  %v7327_v40 = vld [vmem:[#allocation7 + $0x330] ss:$24 sps:$4 sm:$0xff]  }
 0x433   :  { %5495 = vmatprep.subr.bf16.mxu0 %v7278_v44  ;;  %v7339_v44 = vld [vmem:[#allocation7 + $0x5d0] ss:$24 sps:$4 sm:$0xff]  }
 0x435   :  { %4044 = vmatpush2.bf16.msra.mxu1 %v7228_v13  ;;  %v7938_v13 = vmul.f32 0.055555556, %v4147_v6 }
 0x436   :  { %4045 = vmatprep.subr.bf16.mxu1 %v7233_v58  ;;  %5496 = vmatpush2.bf16.msra.mxu0 %v7276_v22  ;;  %v7940_v58 = vmul.f32 0.055555556, %v4138_v52  ;;  %v4152_v22 = vadd.f32 %v4151_v45, %v7755_v30  ;;  %v4162_v30 = vrot.slane %v4161_v36, 2 }
 0x437   :  { %5497 = vmatprep.subr.bf16.mxu0 %v7281_v49 }
 0x438   :  { %v4153_v49 = vrot.slane %v4152_v22, 2  ;;  %v4163_v29 = vadd.f32 %v4162_v30, %v4161_v36 }
 0x439   :  { %4046 = vmatpush2.bf16.msra.mxu1 %v7231_v14  ;;  %v7942_v14 = vmul.f32 0.055555556, %v4174_v10 }
 0x43a   :  { %4047 = vmatprep.subr.bf16.mxu1 %v7236_v3  ;;  %5498 = vmatpush2.bf16.msra.mxu0 %v7279_v60  ;;  %v7288_v3 = vld [vmem:[#allocation7 + $0x180] ss:$24 sps:$4 sm:$0xff]   ;;  %v4196_v60 = vrot.slane %v7814_v63, 4 }
 0x43b   :  { %5499 = vmatprep.subr.bf16.mxu0 %v7284_v2 }
 0x43c   :  { %v4197_v2 = vadd.f32 %v4196_v60, %v7814_v63  ;;  %v7377_v63 = vld [vmem:[#allocation7 + $0x4b4] ss:$24 sps:$4 sm:$0xff]  }
 0x43d   :  { %4048 = vmatpush2.bf16.msra.mxu1 %v7234_v15 }
 0x43e   :  { %4049 = vmatprep.subr.bf16.mxu1 %v7239_v16  ;;  %5500 = vmatpush2.bf16.msra.mxu0 %v7282_v4  ;;  %v7949_v16 = vsel %vm4304_vm10, %v7942_v14, %v7940_v58  ;;  %v7363_v4 = vld [vmem:[#allocation7 + $0x510] ss:$24 sps:$4 sm:$0xff]   ;;  %v4198_v34 = vrot.slane %v4197_v2, 2 }
 0x43f   :  { %5501 = vmatprep.subr.bf16.mxu0 %v7287_v9  ;;  %v7369_v9 = vld [vmem:[#allocation7 + $0x4e0] ss:$24 sps:$4 sm:$0xff]  }
 0x440   :  { %v4199_v52 = vadd.f32 %v4198_v34, %v4197_v2 }
 0x441   :  { %4050 = vmatpush2.bf16.msra.mxu1 %v7237_v17 }
 0x442   :  { %4051 = vmatprep.subr.bf16.mxu1 %v7242_v18  ;;  %5502 = vmatpush2.bf16.msra.mxu0 %v7285_v8  ;;  %v7296_v18 = vld [vmem:[#allocation7 + $0x15c] ss:$24 sps:$4 sm:$0xff]   ;;  %v4200_v10 = vrot.slane %v4199_v52, 1 }
 0x443   :  { %5503 = vmatprep.subr.bf16.mxu0 %v7290_v11 }
 0x445   :  { %4052 = vmatpush2.bf16.msra.mxu1 %v7240_v19  ;;  %v7297_v19 = vld [vmem:[#allocation7 + $0x420] ss:$24 sps:$4 sm:$0xff]  }
 0x446   :  { %5514 = vmatprep.subr.bf16.mxu1 %v7293_v12  ;;  %5504 = vmatpush2.bf16.msra.mxu0 %v7288_v3  ;;  %v4201_v3 = vadd.f32 %v4200_v10, %v4199_v52 }
 0x447   :  { %5555 = vmatprep.subr.bf16.mxu0 %v7296_v18 }
 0x448   :  { %4054 = vmatmul.mubr.bf16.vlgmr.msra.gmra.mxu1 %v7911_v33  ;;  %v7556_v33 = vld [vmem:[%s8118_s5 + $0x88] sm:$0xff] }
 0x449   :  { %v4175_v38 = vadd.f32 %v7556_v33, %v7921_v37  ;;  %5515 = vmatpush1.bf16.msra.mxu1 %v7291_v35  ;;  %v7317_v33 = vld [vmem:[#allocation7 + $0x394] ss:$24 sps:$4 sm:$0xff]  }
 0x44a   :  { %5516 = vmatprep.subr.bf16.mxu1 %v7299_v23 }
 0x44b   :  { %v4177_v21 = vadd.f32 %v4176_v43, %v4175_v38  ;;  %v7321_v38 = vld [vmem:[#allocation7 + $0x360] ss:$24 sps:$4 sm:$0xff]   ;;  %v7341_v43 = vld [vmem:[#allocation7 + $0x5d4] ss:$24 sps:$4 sm:$0xff]  }
 0x44d   :  { %v4178_v47 = vrot.slane %v4177_v21, 4  ;;  %5517 = vmatpush1.bf16.msra.mxu1 %v7297_v19 }
 0x44e   :  { %5518 = vmatprep.subr.bf16.mxu1 %v7305_v25  ;;  %v7383_v25 = vld [vmem:[#allocation7 + $0x484] ss:$24 sps:$4 sm:$0xff]  }
 0x44f   :  { %v4179_v57 = vadd.f32 %v4178_v47, %v4177_v21  ;;  %v7347_v21 = vld [vmem:[#allocation7 + $0x5a4] ss:$24 sps:$4 sm:$0xff]   ;;  %v4187_v47 = vrot.slane %v7811_v56, 4 }
 0x451   :  { %v4180_v0 = vrot.slane %v4179_v57, 2  ;;  %5519 = vmatpush1.bf16.msra.mxu1 %v7303_v24  ;;  %v7381_v24 = vld [vmem:[#allocation7 + $0x480] ss:$24 sps:$4 sm:$0xff]  }
 0x452   :  { %5520 = vmatprep.subr.bf16.mxu1 %v7311_v27 }
 0x453   :  { %v4181_v53 = vadd.f32 %v4180_v0, %v4179_v57  ;;  %v4188_v57 = vadd.f32 %v4187_v47, %v7811_v56  ;;  %v4154_v0 = vadd.f32 %v4153_v49, %v4152_v22  ;;  %v4164_v56 = vrot.slane %v4163_v29, 1 }
 0x454   :  { %v7991_v22 = vstv %s8113_s0 }
 0x455   :  { %v4182_v7 = vrot.slane %v4181_v53, 1  ;;  %5521 = vmatpush1.bf16.msra.mxu1 %v7309_v26  ;;  %v4155_v5 = vrot.slane %v4154_v0, 1  ;;  %v4165_v12 = vadd.f32 %v4164_v56, %v4163_v29  ;;  %v7970_v26 = vmul.f32 0.055555556, %v4201_v3  ;;  %v7557_v29 = vld [vmem:[%s8114_s1] sm:$0xff] }
 0x456   :  { %5522 = vmatprep.subr.bf16.mxu1 %v7317_v33  ;;  %v7389_v33 = vld [vmem:[#allocation7 + $0x45c] ss:$24 sps:$4 sm:$0xff]  }
 0x457   :  { %v4183_v59 = vadd.f32 %v4182_v7, %v4181_v53  ;;  %v4189_v53 = vrot.slane %v4188_v57, 2  ;;  %v7371_v7 = vld [vmem:[#allocation7 + $0x4e4] ss:$24 sps:$4 sm:$0xff]   ;;  %v4156_v11 = vadd.f32 %v4155_v5, %v4154_v0  ;;  %v7968_v23 = vmul.f32 0.055555556, %v4165_v12 }
 0x459   :  { %v7944_v15 = vmul.f32 0.055555556, %v4183_v59  ;;  %5523 = vmatpush1.bf16.msra.mxu1 %v7315_v32  ;;  %v4190_v6 = vadd.f32 %v4189_v53, %v4188_v57  ;;  %v7375_v59 = vld [vmem:[#allocation7 + $0x4b0] ss:$24 sps:$4 sm:$0xff]   ;;  %v7964_v18 = vmul.f32 0.055555556, %v4156_v11  ;;  %v7980_v32 = vsel %vm4304_vm10, %v7970_v26, %v7968_v23 }
 0x45a   :  { %5524 = vmatprep.subr.bf16.mxu1 %v7323_v39  ;;  %v7982_v39 = vld [vmem:[#allocation5 + $0xc] sm:$0xf] }
 0x45b   :  { %v7954_v17 = vsel %vm4304_vm10, %v7944_v15, %v7938_v13  ;;  %v4191_v8 = vrot.slane %v4190_v6, 1 }
 0x45d   :  { %5525 = vmatpush1.bf16.msra.mxu1 %v7321_v38  ;;  %v4192_v35 = vadd.f32 %v4191_v8, %v4190_v6 }
 0x45e   :  { %5526 = vmatprep.subr.bf16.mxu1 %v7329_v41  ;;  %v3235_v41 = vrot.slane %v7982_v39, %v7851_v54 }
 0x45f   :  { %v7966_v19 = vmul.f32 0.055555556, %v4192_v35 }
 0x461   :  { %5527 = vmatpush1.bf16.msra.mxu1 %v7327_v40  ;;  %v7975_v27 = vsel %vm4304_vm10, %v7966_v19, %v7964_v18 }
 0x462   :  { %5528 = vmatprep.subr.bf16.mxu1 %v7335_v42 }
 0x465   :  { %5529 = vmatpush1.bf16.msra.mxu1 %v7333_v28  ;;  %v3239_v28 = vrot.slane %v7982_v39, %v7854_v55 }
 0x466   :  { %5530 = vmatprep.subr.bf16.mxu1 %v7341_v43 }
 0x469   :  { %5531 = vmatpush2.bf16.msra.mxu1 %v7339_v44 }
 0x46a   :  { %5532 = vmatprep.subr.bf16.mxu1 %v7347_v21 }
 0x46d   :  { %5533 = vmatpush2.bf16.msra.mxu1 %v7345_v46 }
 0x46e   :  { %5534 = vmatprep.subr.bf16.mxu1 %v7353_v31 }
 0x471   :  { %5535 = vmatpush2.bf16.msra.mxu1 %v7351_v48 }
 0x472   :  { %5536 = vmatprep.subr.bf16.mxu1 %v7359_v61 }
 0x475   :  { %5537 = vmatpush2.bf16.msra.mxu1 %v7357_v62 }
 0x476   :  { %5538 = vmatprep.subr.bf16.mxu1 %v7365_v1 }
 0x479   :  { %5539 = vmatpush2.bf16.msra.mxu1 %v7363_v4 }
 0x47a   :  { %5540 = vmatprep.subr.bf16.mxu1 %v7371_v7  ;;  %v7558_v7 = vld [vmem:[%s8114_s1 + $0x8] sm:$0xff] }
 0x47d   :  { %5541 = vmatpush2.bf16.msra.mxu1 %v7369_v9 }
 0x47e   :  { %5542 = vmatprep.subr.bf16.mxu1 %v7377_v63 }
 0x481   :  { %5543 = vmatpush2.bf16.msra.mxu1 %v7375_v59  ;;  %v7559_v59 = vld [vmem:[%s8114_s1 + $0x60] sm:$0xff] }
 0x482   :  { %5544 = vmatprep.subr.bf16.mxu1 %v7383_v25 }
 0x485   :  { %5545 = vmatpush2.bf16.msra.mxu1 %v7381_v24 }
 0x486   :  { %5596 = vmatprep.subr.bf16.mxu1 %v7389_v33 }
 0x488   :  { %v3926_v38 = vpop.f32.mrf.mxu0 }
 0x489   :  { %v3927_v43 = vadd.f32 %v3926_v38, %v3235_v41 }
 0x48a   :  { %v3928_v40 = vpop.f32.mrf.mxu0 }
 0x48b   :  { %v3929_v45 = vadd.f32 %v3928_v40, %v3239_v28 }
 0x48c   :  { %v3930_v42 = vpop.f32.mrf.mxu0 }
 0x48d   :  { %v3931_v47 = vadd.f32 %v3930_v42, %v3235_v41 }
 0x48e   :  { %v3932_v21 = vpop.f32.mrf.mxu0 }
 0x48f   :  { %v3933_v54 = vadd.f32 %v3932_v21, %v3239_v28  ;;  %v8022_v21 = vstv %s4213_s22 }
 0x4c8   :  { %v3969_v44 = vpop.f32.mrf.mxu1 }
 0x4c9   :  { %v3970_v46 = vadd.f32 %v3969_v44, %v3927_v43 }
 0x4ca   :  { %v3971_v20 = vpop.f32.mrf.mxu1 }
 0x4cb   :  { %vm4064_vm11 = vcmp.ge.f32.partialorder %v3970_v46, 0.0  ;;  %v4072_v31 = vmul.f32 0.2, %v3970_v46  ;;  %v3972_v48 = vadd.f32 %v3971_v20, %v3929_v45 }
 0x4cc   :  { %v3973_v49 = vpop.f32.mrf.mxu1 }
 0x4cd   :  { %v4080_v36 = vsel %vm4064_vm11, %v3970_v46, %v4072_v31  ;;  %vm4065_vm12 = vcmp.ge.f32.partialorder %v3972_v48, 0.0  ;;  %v4073_v55 = vmul.f32 0.2, %v3972_v48  ;;  %v3974_v57 = vadd.f32 %v3973_v49, %v3931_v47 }
 0x4ce   :  { %v4089_v60 = vmul.f32 %v7991_v22, %v4080_v36  ;;  %v4214_v61 = vrot.slane %v4080_v36, 4  ;;  %v3975_v62 = vpop.f32.mrf.mxu1 }
 0x4cf   :  { %v4081_v30 = vsel %vm4065_vm12, %v3972_v48, %v4073_v55  ;;  %vm4068_vm13 = vcmp.ge.f32.partialorder %v3974_v57, 0.0  ;;  %v4076_v0 = vmul.f32 0.2, %v3974_v57  ;;  %v3976_v1 = vadd.f32 %v3975_v62, %v3933_v54 }
 0x4d0   :  { %v4097_v2 = vadd.f32 %v7557_v29, %v4089_v60  ;;  %v4215_v53 = vadd.f32 %v4214_v61, %v4080_v36  ;;  %v4090_v4 = vmul.f32 %v7991_v22, %v4081_v30  ;;  %v4220_v34 = vrot.slane %v4081_v30, 4 }
 0x4d1   :  { %v4084_v5 = vsel %vm4068_vm13, %v3974_v57, %v4076_v0  ;;  %vm4069_vm14 = vcmp.ge.f32.partialorder %v3976_v1, 0.0  ;;  %v4077_v6 = vmul.f32 0.2, %v3976_v1 }
 0x4d2   :  { %4105 = vst [vmem:[%s8118_s5] sm:$0xff] %v4097_v2  ;;  %v4216_v56 = vrot.slane %v4215_v53, 2  ;;  %v4098_v52 = vadd.f32 %v7558_v7, %v4090_v4  ;;  %v4221_v8 = vadd.f32 %v4220_v34, %v4081_v30  ;;  %v4093_v9 = vmul.f32 %v7991_v22, %v4084_v5  ;;  %v7312_v4 = vld [vmem:[#allocation7 + $0xc8] ss:$24 sps:$4 sm:$0xff]   ;;  %v7320_v34 = vld [vmem:[#allocation7 + $0x9c] ss:$24 sps:$4 sm:$0xff]  }
 0x4d3   :  { %v4238_v10 = vrot.slane %v4084_v5, 4  ;;  %v4085_v11 = vsel %vm4069_vm14, %v3976_v1, %v4077_v6  ;;  %v7326_v6 = vld [vmem:[#allocation7 + $0x6c] ss:$24 sps:$4 sm:$0xff]   ;;  %v7332_v7 = vld [vmem:[#allocation7 + $0x3c] ss:$24 sps:$4 sm:$0xff]  }
 0x4d4   :  { %v4217_v35 = vadd.f32 %v4216_v56, %v4215_v53  ;;  %4106 = vst [vmem:[%s8118_s5 + $0x8] sm:$0xff] %v4098_v52  ;;  %v4222_v12 = vrot.slane %v4221_v8, 2  ;;  %v4101_v63 = vadd.f32 %v7559_v59, %v4093_v9  ;;  %v4094_v3 = vmul.f32 %v7991_v22, %v4085_v11  ;;  %v7294_v53 = vld [vmem:[#allocation7 + $0x158] ss:$24 sps:$4 sm:$0xff]   ;;  %v7324_v56 = vld [vmem:[#allocation7 + $0x68] ss:$24 sps:$4 sm:$0xff]   ;;  %v4012_v52 = vpop.f32.mrf.mxu0 }
 0x4d5   :  { %v4239_v24 = vadd.f32 %v4238_v10, %v4084_v5  ;;  %v4244_v25 = vrot.slane %v4085_v11, 4  ;;  %v7318_v5 = vld [vmem:[#allocation7 + $0x98] ss:$24 sps:$4 sm:$0xff]   ;;  %v7338_v9 = vld [vmem:[#allocation7 + $0xc] ss:$24 sps:$4 sm:$0xff]   ;;  %v3247_v59 = vrot.slane %v7982_v39, %v7869_v51 }
 0x4d6   :  { %v4218_v33 = vrot.slane %v4217_v35, 1  ;;  %v4223_v38 = vadd.f32 %v4222_v12, %v4221_v8  ;;  %4109 = vst [vmem:[%s8118_s5 + $0x60] sm:$0xff] %v4101_v63  ;;  %v4102_v40 = vadd.f32 %v7921_v37, %v4094_v3  ;;  %v7330_v8 = vld [vmem:[#allocation7 + $0x38] ss:$24 sps:$4 sm:$0xff]   ;;  %v4014_v10 = vpop.f32.mrf.mxu0  ;;  %v7344_v12 = vld [vmem:[#allocation7 + $0x2dc] ss:$24 sps:$4 sm:$0xff]  }
 0x4d7   :  { %v4240_v41 = vrot.slane %v4239_v24, 2  ;;  %v4245_v28 = vadd.f32 %v4244_v25, %v4085_v11  ;;  %v3243_v11 = vrot.slane %v7982_v39, %v7866_v50  ;;  %v7356_v51 = vld [vmem:[#allocation7 + $0x27c] ss:$24 sps:$4 sm:$0xff]  }
 0x4d8   :  { %v4224_v42 = vrot.slane %v4223_v38, 1  ;;  %4110 = vst [vmem:[%s8118_s5 + $0x68] sm:$0xff] %v4102_v40  ;;  %v4219_v43 = vadd.f32 %v4218_v33, %v4217_v35  ;;  %v7336_v35 = vld [vmem:[#allocation7 + $0x8] ss:$24 sps:$4 sm:$0xff]   ;;  %v4016_v63 = vpop.f32.mrf.mxu0  ;;  %v7350_v33 = vld [vmem:[#allocation7 + $0x2ac] ss:$24 sps:$4 sm:$0xff]  }
 0x4d9   :  { %v4241_v44 = vadd.f32 %v4240_v41, %v4239_v24  ;;  %v4246_v45 = vrot.slane %v4245_v28, 2  ;;  %v4013_v3 = vadd.f32 %v4012_v52, %v3243_v11  ;;  %v7342_v24 = vld [vmem:[#allocation7 + $0x2d8] ss:$24 sps:$4 sm:$0xff]  }
 0x4da   :  { %v4225_v46 = vadd.f32 %v4224_v42, %v4223_v38  ;;  %v4263_v31 = vmul.f32 %v8022_v21, %v4219_v43  ;;  %v4015_v38 = vadd.f32 %v4014_v10, %v3247_v59  ;;  %v4018_v40 = vpop.f32.mrf.mxu0  ;;  %v4017_v42 = vadd.f32 %v4016_v63, %v3243_v11 }
 0x4db   :  { %v4242_v20 = vrot.slane %v4241_v44, 1  ;;  %v4247_v47 = vadd.f32 %v4246_v45, %v4245_v28  ;;  %v4019_v45 = vadd.f32 %v4018_v40, %v3247_v59 }
 0x4dc   :  { %v4264_v36 = vmul.f32 %v8022_v21, %v4225_v46  ;;  %v4271_v57 = vadd.f32 %v4263_v31, %v7940_v58 }
 0x4dd   :  { %v4243_v48 = vadd.f32 %v4242_v20, %v4241_v44  ;;  %v4248_v54 = vrot.slane %v4247_v47, 1  ;;  %v7348_v44 = vld [vmem:[#allocation7 + $0x2a8] ss:$24 sps:$4 sm:$0xff]  }
 0x4de   :  { %v4272_v61 = vadd.f32 %v4264_v36, %v7938_v13  ;;  %v7300_v13 = vld [vmem:[#allocation7 + $0x128] ss:$24 sps:$4 sm:$0xff]  }
 0x4df   :  { %v4267_v37 = vmul.f32 %v8022_v21, %v4243_v48  ;;  %v4249_v49 = vadd.f32 %v4248_v54, %v4247_v47 }
 0x4e1   :  { %v4268_v55 = vmul.f32 %v8022_v21, %v4249_v49  ;;  %v4275_v60 = vadd.f32 %v4267_v37, %v7942_v14  ;;  %v7302_v14 = vld [vmem:[#allocation7 + $0x12c] ss:$24 sps:$4 sm:$0xff]  }
 0x4e3   :  { %v4276_v62 = vadd.f32 %v4268_v55, %v7944_v15  ;;  %v4288_v30 = vsel %vm4287_vm15, %v4275_v60, %v4271_v57  ;;  %v7308_v15 = vld [vmem:[#allocation7 + $0xfc] ss:$24 sps:$4 sm:$0xff]   ;;  %v7354_v55 = vld [vmem:[#allocation7 + $0x278] ss:$24 sps:$4 sm:$0xff]   ;;  %v7560_v57 = vld [vmem:[%s8114_s1 + $0x10] sm:$0xff] }
 0x4e4   :  { %v4313_v0 = vsel %vm4130_vm0, %v4288_v30, %v7949_v16  ;;  %v7306_v16 = vld [vmem:[#allocation7 + $0xf8] ss:$24 sps:$4 sm:$0xff]  }
 0x4e5   :  { %v4289_v1 = vsel %vm4287_vm15, %v4276_v62, %v4272_v61  ;;  %v8040_v58 = vpack.c.bf16 %v4313_v0, %v4313_v0  ;;  %v7362_v0 = vld [vmem:[#allocation7 + $0x24c] ss:$24 sps:$4 sm:$0xff]  }
 0x4e6   :  { %v4314_v29 = vsel %vm4130_vm0, %v4289_v1, %v7954_v17  ;;  %v7314_v17 = vld [vmem:[#allocation7 + $0xcc] ss:$24 sps:$4 sm:$0xff]  }
 0x4e7   :  { %v8038_v2 = vpack.c.bf16 %v4314_v29, %v4314_v29 }
 0x4e9   :  { %5505 = vmatprep.mubr.bf16.mxu0 %v8038_v2 }
 0x4ea   :  { %5506 = vmatmul.mubr.bf16.vlgmr.msra.gmra.mxu0 %v8040_v58 }
 0x4eb   :  { %5556 = vmatpush1.bf16.msra.mxu0 %v7294_v53  ;;  %5587 = vmatprep.mubr.bf16.mxu0 %v8038_v2 }
 0x4ec   :  { %5557 = vmatprep.subr.bf16.mxu0 %v7302_v14  ;;  %v7561_v14 = vld [vmem:[%s8114_s1 + $0x18] sm:$0xff] }
 0x4ef   :  { %5558 = vmatpush1.bf16.msra.mxu0 %v7300_v13 }
 0x4f0   :  { %5559 = vmatprep.subr.bf16.mxu0 %v7308_v15 }
 0x4f3   :  { %5560 = vmatpush1.bf16.msra.mxu0 %v7306_v16 }
 0x4f4   :  { %5561 = vmatprep.subr.bf16.mxu0 %v7314_v17 }
 0x4f7   :  { %5562 = vmatpush1.bf16.msra.mxu0 %v7312_v4 }
 0x4f8   :  { %5563 = vmatprep.subr.bf16.mxu0 %v7320_v34  ;;  %v7360_v34 = vld [vmem:[#allocation7 + $0x248] ss:$24 sps:$4 sm:$0xff]  }
 0x4fb   :  { %5564 = vmatpush1.bf16.msra.mxu0 %v7318_v5 }
 0x4fc   :  { %5565 = vmatprep.subr.bf16.mxu0 %v7326_v6 }
 0x4ff   :  { %5566 = vmatpush1.bf16.msra.mxu0 %v7324_v56  ;;  %v7562_v56 = vld [vmem:[%s8114_s1 + $0x70] sm:$0xff] }
 0x500   :  { %5567 = vmatprep.subr.bf16.mxu0 %v7332_v7 }
 0x503   :  { %5568 = vmatpush1.bf16.msra.mxu0 %v7330_v8  ;;  %v7368_v8 = vld [vmem:[#allocation7 + $0x21c] ss:$24 sps:$4 sm:$0xff]  }
 0x504   :  { %5569 = vmatprep.subr.bf16.mxu0 %v7338_v9 }
 0x507   :  { %5570 = vmatpush1.bf16.msra.mxu0 %v7336_v35 }
 0x508   :  { %v4055_v25 = vpop.f32.mrf.mxu1  ;;  %5571 = vmatprep.subr.bf16.mxu0 %v7344_v12  ;;  %v7563_v12 = vld [vmem:[%s8114_s1 + $0x78] sm:$0xff] }
 0x509   :  { %v4056_v41 = vadd.f32 %v4055_v25, %v4013_v3  ;;  %v7374_v25 = vld [vmem:[#allocation7 + $0x1ec] ss:$24 sps:$4 sm:$0xff]  }
 0x50a   :  { %v4057_v28 = vpop.f32.mrf.mxu1 }
 0x50b   :  { %vm4066_vm1 = vcmp.ge.f32.partialorder %v4056_v41, 0.0  ;;  %v4074_v50 = vmul.f32 0.2, %v4056_v41  ;;  %v4058_v43 = vadd.f32 %v4057_v28, %v4015_v38  ;;  %5572 = vmatpush2.bf16.msra.mxu0 %v7342_v24  ;;  %v7366_v24 = vld [vmem:[#allocation7 + $0x218] ss:$24 sps:$4 sm:$0xff]  }
 0x50c   :  { %v4059_v46 = vpop.f32.mrf.mxu1  ;;  %5573 = vmatprep.subr.bf16.mxu0 %v7350_v33 }
 0x50d   :  { %v4082_v39 = vsel %vm4066_vm1, %v4056_v41, %v4074_v50  ;;  %vm4067_vm2 = vcmp.ge.f32.partialorder %v4058_v43, 0.0  ;;  %v4075_v20 = vmul.f32 0.2, %v4058_v43  ;;  %v4060_v47 = vadd.f32 %v4059_v46, %v4017_v42  ;;  %v7372_v50 = vld [vmem:[#allocation7 + $0x1e8] ss:$24 sps:$4 sm:$0xff]  }
 0x50e   :  { %v4091_v31 = vmul.f32 %v7991_v22, %v4082_v39  ;;  %v4226_v48 = vrot.slane %v4082_v39, 4  ;;  %v4061_v54 = vpop.f32.mrf.mxu1 }
 0x50f   :  { %v4083_v37 = vsel %vm4067_vm2, %v4058_v43, %v4075_v20  ;;  %vm4070_vm3 = vcmp.ge.f32.partialorder %v4060_v47, 0.0  ;;  %v4078_v49 = vmul.f32 0.2, %v4060_v47  ;;  %v4062_v36 = vadd.f32 %v4061_v54, %v4019_v45  ;;  %5574 = vmatpush2.bf16.msra.mxu0 %v7348_v44  ;;  %v7380_v43 = vld [vmem:[#allocation7 + $0x1bc] ss:$24 sps:$4 sm:$0xff]  }
 0x510   :  { %v4099_v60 = vadd.f32 %v7560_v57, %v4091_v31  ;;  %v4227_v61 = vadd.f32 %v4226_v48, %v4082_v39  ;;  %v4092_v62 = vmul.f32 %v7991_v22, %v4083_v37  ;;  %v4232_v30 = vrot.slane %v4083_v37, 4  ;;  %5575 = vmatprep.subr.bf16.mxu0 %v7356_v51  ;;  %v7378_v20 = vld [vmem:[#allocation7 + $0x1b8] ss:$24 sps:$4 sm:$0xff]   ;;  %v7386_v31 = vld [vmem:[#allocation7 + $0x18c] ss:$24 sps:$4 sm:$0xff]  }
 0x511   :  { %v4086_v1 = vsel %vm4070_vm3, %v4060_v47, %v4078_v49  ;;  %vm4071_vm4 = vcmp.ge.f32.partialorder %v4062_v36, 0.0  ;;  %v4079_v29 = vmul.f32 0.2, %v4062_v36  ;;  %v7384_v49 = vld [vmem:[#allocation7 + $0x188] ss:$24 sps:$4 sm:$0xff]  }
 0x512   :  { %4107 = vst [vmem:[%s8118_s5 + $0x10] sm:$0xff] %v4099_v60  ;;  %v4228_v53 = vrot.slane %v4227_v61, 2  ;;  %v4100_v13 = vadd.f32 %v7561_v14, %v4092_v62  ;;  %v4233_v15 = vadd.f32 %v4232_v30, %v4083_v37  ;;  %v4095_v16 = vmul.f32 %v7991_v22, %v4086_v1  ;;  %v7402_v14 = vld [vmem:[#allocation7 + $0x100] ss:$24 sps:$4 sm:$0xff]  }
 0x513   :  { %v4250_v17 = vrot.slane %v4086_v1, 4  ;;  %v4087_v4 = vsel %vm4071_vm4, %v4062_v36, %v4079_v29  ;;  %5576 = vmatpush2.bf16.msra.mxu0 %v7354_v55  ;;  %v7404_v29 = vld [vmem:[#allocation7 + $0x104] ss:$24 sps:$4 sm:$0xff]  }
 0x514   :  { %v4229_v5 = vadd.f32 %v4228_v53, %v4227_v61  ;;  %4108 = vst [vmem:[%s8118_s5 + $0x18] sm:$0xff] %v4100_v13  ;;  %v4234_v6 = vrot.slane %v4233_v15, 2  ;;  %v4103_v7 = vadd.f32 %v7562_v56, %v4095_v16  ;;  %v4096_v52 = vmul.f32 %v7991_v22, %v4087_v4  ;;  %5577 = vmatprep.subr.bf16.mxu0 %v7362_v0  ;;  %v7392_v61 = vld [vmem:[#allocation7 + $0x164] ss:$24 sps:$4 sm:$0xff]   ;;  %v7398_v0 = vld [vmem:[#allocation7 + $0x134] ss:$24 sps:$4 sm:$0xff]  }
 0x515   :  { %v4251_v9 = vadd.f32 %v4250_v17, %v4086_v1  ;;  %v4256_v10 = vrot.slane %v4087_v4, 4  ;;  %v7401_v1 = vld [vmem:[#allocation7 + $0x3fc] ss:$24 sps:$4 sm:$0xff]   ;;  %v7399_v53 = vld [vmem:[#allocation7 + $0x3f8] ss:$24 sps:$4 sm:$0xff]  }
 0x516   :  { %v4230_v11 = vrot.slane %v4229_v5, 1  ;;  %v4235_v35 = vadd.f32 %v4234_v6, %v4233_v15  ;;  %4111 = vst [vmem:[%s8118_s5 + $0x70] sm:$0xff] %v4103_v7  ;;  %v4104_v59 = vadd.f32 %v7563_v12, %v4096_v52  ;;  %v7407_v13 = vld [vmem:[#allocation7 + $0x3cc] ss:$24 sps:$4 sm:$0xff]   ;;  %v7405_v16 = vld [vmem:[#allocation7 + $0x3c8] ss:$24 sps:$4 sm:$0xff]  }
 0x517   :  { %v4252_v63 = vrot.slane %v4251_v9, 2  ;;  %v4257_v3 = vadd.f32 %v4256_v10, %v4087_v4  ;;  %5578 = vmatpush2.bf16.msra.mxu0 %v7360_v34  ;;  %v7410_v15 = vld [vmem:[#allocation7 + $0xd4] ss:$24 sps:$4 sm:$0xff]   ;;  %v7408_v17 = vld [vmem:[#allocation7 + $0xd0] ss:$24 sps:$4 sm:$0xff]  }
 0x518   :  { %v4236_v22 = vrot.slane %v4235_v35, 1  ;;  %4112 = vst [vmem:[%s8118_s5 + $0x78] sm:$0xff] %v4104_v59  ;;  %5579 = vmatprep.subr.bf16.mxu0 %v7368_v8  ;;  %v4231_v33 = vadd.f32 %v4230_v11, %v4229_v5  ;;  %v7413_v4 = vld [vmem:[#allocation7 + $0x39c] ss:$24 sps:$4 sm:$0xff]   ;;  %v7411_v34 = vld [vmem:[#allocation7 + $0x398] ss:$24 sps:$4 sm:$0xff]  }
 0x519   :  { %v4253_v38 = vadd.f32 %v4252_v63, %v4251_v9  ;;  %v4258_v40 = vrot.slane %v4257_v3, 2  ;;  %v7414_v5 = vld [vmem:[#allocation7 + $0xa0] ss:$24 sps:$4 sm:$0xff]   ;;  %v7419_v6 = vld [vmem:[#allocation7 + $0x36c] ss:$24 sps:$4 sm:$0xff]  }
 0x51a   :  { %v4237_v41 = vadd.f32 %v4236_v22, %v4235_v35  ;;  %v4265_v44 = vmul.f32 %v8022_v21, %v4231_v33  ;;  %v7422_v56 = vld [vmem:[#allocation7 + $0x74] ss:$24 sps:$4 sm:$0xff]   ;;  %v7417_v7 = vld [vmem:[#allocation7 + $0x368] ss:$24 sps:$4 sm:$0xff]   ;;  %v7428_v9 = vld [vmem:[#allocation7 + $0x44] ss:$24 sps:$4 sm:$0xff]  }
 0x51b   :  { %v4254_v28 = vrot.slane %v4253_v38, 1  ;;  %v4259_v42 = vadd.f32 %v4258_v40, %v4257_v3  ;;  %5580 = vmatpush2.bf16.msra.mxu0 %v7366_v24  ;;  %v7420_v52 = vld [vmem:[#allocation7 + $0x70] ss:$24 sps:$4 sm:$0xff]   ;;  %v7425_v8 = vld [vmem:[#allocation7 + $0x33c] ss:$24 sps:$4 sm:$0xff]  }
 0x51c   :  { %5581 = vmatprep.subr.bf16.mxu0 %v7374_v25  ;;  %v4266_v47 = vmul.f32 %v8022_v21, %v4237_v41  ;;  %v4273_v54 = vadd.f32 %v4265_v44, %v7964_v18  ;;  %v7423_v10 = vld [vmem:[#allocation7 + $0x338] ss:$24 sps:$4 sm:$0xff]   ;;  %v7431_v35 = vld [vmem:[#allocation7 + $0x30c] ss:$24 sps:$4 sm:$0xff]   ;;  %v7429_v59 = vld [vmem:[#allocation7 + $0x308] ss:$24 sps:$4 sm:$0xff]  }
 0x51d   :  { %v4255_v45 = vadd.f32 %v4254_v28, %v4253_v38  ;;  %v4260_v46 = vrot.slane %v4259_v42, 1  ;;  %v7426_v11 = vld [vmem:[#allocation7 + $0x40] ss:$24 sps:$4 sm:$0xff]   ;;  %v7434_v12 = vld [vmem:[#allocation7 + $0x14] ss:$24 sps:$4 sm:$0xff]  }
 0x51e   :  { %v4274_v36 = vadd.f32 %v4266_v47, %v7968_v23  ;;  %v7390_v23 = vld [vmem:[#allocation7 + $0x160] ss:$24 sps:$4 sm:$0xff]   ;;  %v7432_v63 = vld [vmem:[#allocation7 + $0x10] ss:$24 sps:$4 sm:$0xff]   ;;  %v7437_v3 = vld [vmem:[#allocation7 + $0x5dc] ss:$24 sps:$4 sm:$0xff]  }
 0x51f   :  { %v4269_v51 = vmul.f32 %v8022_v21, %v4255_v45  ;;  %v4261_v39 = vadd.f32 %v4260_v46, %v4259_v42  ;;  %5582 = vmatpush2.bf16.msra.mxu0 %v7372_v50  ;;  %v7440_v24 = vld [vmem:[#allocation7 + $0x2e4] ss:$24 sps:$4 sm:$0xff]   ;;  %v7435_v22 = vld [vmem:[#allocation7 + $0x5d8] ss:$24 sps:$4 sm:$0xff]   ;;  %v7446_v38 = vld [vmem:[#allocation7 + $0x2b4] ss:$24 sps:$4 sm:$0xff]  }
 0x520   :  { %5583 = vmatprep.subr.bf16.mxu0 %v7380_v43  ;;  %v7438_v25 = vld [vmem:[#allocation7 + $0x2e0] ss:$24 sps:$4 sm:$0xff]   ;;  %v7443_v33 = vld [vmem:[#allocation7 + $0x5ac] ss:$24 sps:$4 sm:$0xff]   ;;  %v7444_v41 = vld [vmem:[#allocation7 + $0x2b0] ss:$24 sps:$4 sm:$0xff]  }
 0x521   :  { %v4270_v48 = vmul.f32 %v8022_v21, %v4261_v39  ;;  %v4277_v37 = vadd.f32 %v4269_v51, %v7966_v19  ;;  %v7387_v21 = vld [vmem:[#allocation7 + $0x458] ss:$24 sps:$4 sm:$0xff]   ;;  %v7441_v40 = vld [vmem:[#allocation7 + $0x5a8] ss:$24 sps:$4 sm:$0xff]   ;;  %v7449_v28 = vld [vmem:[#allocation7 + $0x57c] ss:$24 sps:$4 sm:$0xff]  }
 0x522   :  { %v7452_v42 = vld [vmem:[#allocation7 + $0x284] ss:$24 sps:$4 sm:$0xff]   ;;  %v7447_v50 = vld [vmem:[#allocation7 + $0x578] ss:$24 sps:$4 sm:$0xff]   ;;  %v7458_v45 = vld [vmem:[#allocation7 + $0x254] ss:$24 sps:$4 sm:$0xff]  }
 0x523   :  { %5584 = vmatpush2.bf16.msra.mxu0 %v7378_v20  ;;  %v4278_v55 = vadd.f32 %v4270_v48, %v7970_v26  ;;  %v4290_v57 = vsel %vm4287_vm15, %v4277_v37, %v4273_v54  ;;  %v7395_v26 = vld [vmem:[#allocation7 + $0x42c] ss:$24 sps:$4 sm:$0xff]   ;;  %v7450_v43 = vld [vmem:[#allocation7 + $0x280] ss:$24 sps:$4 sm:$0xff]   ;;  %v7456_v51 = vld [vmem:[#allocation7 + $0x250] ss:$24 sps:$4 sm:$0xff]  }
 0x524   :  { %5585 = vmatprep.subr.bf16.mxu0 %v7386_v31  ;;  %v4315_v60 = vsel %vm4130_vm0, %v4290_v57, %v7975_v27  ;;  %v7393_v27 = vld [vmem:[#allocation7 + $0x428] ss:$24 sps:$4 sm:$0xff]   ;;  %v7455_v44 = vld [vmem:[#allocation7 + $0x54c] ss:$24 sps:$4 sm:$0xff]   ;;  %v7461_v39 = vld [vmem:[#allocation7 + $0x51c] ss:$24 sps:$4 sm:$0xff]  }
 0x525   :  { %v4291_v62 = vsel %vm4287_vm15, %v4278_v55, %v4274_v36  ;;  %v8093_v30 = vpack.c.bf16 %v4315_v60, %v4315_v60  ;;  %v7453_v46 = vld [vmem:[#allocation7 + $0x548] ss:$24 sps:$4 sm:$0xff]   ;;  %v7464_v20 = vld [vmem:[#allocation7 + $0x224] ss:$24 sps:$4 sm:$0xff]   ;;  %v7459_v47 = vld [vmem:[#allocation7 + $0x518] ss:$24 sps:$4 sm:$0xff]  }
 0x526   :  { %v4316_v18 = vsel %vm4130_vm0, %v4291_v62, %v7980_v32  ;;  %v7396_v32 = vld [vmem:[#allocation7 + $0x130] ss:$24 sps:$4 sm:$0xff]   ;;  %v7462_v31 = vld [vmem:[#allocation7 + $0x220] ss:$24 sps:$4 sm:$0xff]   ;;  %v7467_v48 = vld [vmem:[#allocation7 + $0x4ec] ss:$24 sps:$4 sm:$0xff]  }
 0x527   :  { %5586 = vmatpush2.bf16.msra.mxu0 %v7384_v49  ;;  %v8091_v19 = vpack.c.bf16 %v4316_v18, %v4316_v18  ;;  %v7470_v54 = vld [vmem:[#allocation7 + $0x1f4] ss:$24 sps:$4 sm:$0xff]   ;;  %v7465_v37 = vld [vmem:[#allocation7 + $0x4e8] ss:$24 sps:$4 sm:$0xff]   ;;  %v7476_v55 = vld [vmem:[#allocation7 + $0x1c4] ss:$24 sps:$4 sm:$0xff]  }
 0x528   :  { %5637 = vmatprep.subr.bf16.mxu0 %v7392_v61  ;;  %v7468_v49 = vld [vmem:[#allocation7 + $0x1f0] ss:$24 sps:$4 sm:$0xff]   ;;  %v7473_v36 = vld [vmem:[#allocation7 + $0x4bc] ss:$24 sps:$4 sm:$0xff]   ;;  %v7474_v60 = vld [vmem:[#allocation7 + $0x1c0] ss:$24 sps:$4 sm:$0xff]  }
 0x529   :  { %5546 = vmatprep.mubr.bf16.mxu1 %v8091_v19  ;;  %v7471_v57 = vld [vmem:[#allocation7 + $0x4b8] ss:$24 sps:$4 sm:$0xff]   ;;  %v7479_v61 = vld [vmem:[#allocation7 + $0x48c] ss:$24 sps:$4 sm:$0xff]   ;;  %v7477_v18 = vld [vmem:[#allocation7 + $0x488] ss:$24 sps:$4 sm:$0xff]  }
 0x52a   :  { %5547 = vmatmul.mubr.bf16.vlgmr.msra.gmra.mxu1 %v8093_v30  ;;  %5588 = vmatmul.mubr.bf16.vlgmr.msra.gmra.mxu0 %v8040_v58  ;;  %v7482_v62 = vld [vmem:[#allocation7 + $0x194] ss:$24 sps:$4 sm:$0xff]  }
 0x52b   :  { %5597 = vmatpush1.bf16.msra.mxu1 %v7387_v21  ;;  %5628 = vmatprep.mubr.bf16.mxu1 %v8091_v19  ;;  %v7480_v21 = vld [vmem:[#allocation7 + $0x190] ss:$24 sps:$4 sm:$0xff]  }
 0x52c   :  { %5638 = vmatpush1.bf16.msra.mxu0 %v7390_v23  ;;  %5669 = vmatprep.mubr.bf16.mxu0 %v8038_v2  ;;  %v7416_v2 = vld [vmem:[#allocation7 + $0xa4] ss:$24 sps:$4 sm:$0xff]  }
 0x52d   :  { %5598 = vmatprep.subr.bf16.mxu1 %v7395_v26  ;;  %5639 = vmatprep.subr.bf16.mxu0 %v7398_v0  ;;  %v7485_v23 = vld [vmem:[#allocation7 + $0x464] ss:$24 sps:$4 sm:$0xff]   ;;  %v7483_v26 = vld [vmem:[#allocation7 + $0x460] ss:$24 sps:$4 sm:$0xff]   ;;  %v7488_v0 = vld [vmem:[#allocation7 + $0x434] ss:$24 sps:$4 sm:$0xff]  }
 0x52f   :  { %5599 = vmatpush1.bf16.msra.mxu1 %v7393_v27  ;;  %v7486_v27 = vld [vmem:[#allocation7 + $0x430] ss:$24 sps:$4 sm:$0xff]  }
 0x530   :  { %5640 = vmatpush1.bf16.msra.mxu0 %v7396_v32  ;;  %5600 = vmatprep.subr.bf16.mxu1 %v7401_v1  ;;  %v7491_v32 = vld [vmem:[#allocation7 + $0x404] ss:$24 sps:$4 sm:$0xff]   ;;  %v7489_v1 = vld [vmem:[#allocation7 + $0x400] ss:$24 sps:$4 sm:$0xff]  }
 0x531   :  { %5641 = vmatprep.subr.bf16.mxu0 %v7404_v29  ;;  %v7494_v29 = vld [vmem:[#allocation7 + $0x3d4] ss:$24 sps:$4 sm:$0xff]  }
 0x533   :  { %5601 = vmatpush1.bf16.msra.mxu1 %v7399_v53  ;;  %v7492_v53 = vld [vmem:[#allocation7 + $0x3d0] ss:$24 sps:$4 sm:$0xff]  }
 0x534   :  { %5642 = vmatpush1.bf16.msra.mxu0 %v7402_v14  ;;  %5602 = vmatprep.subr.bf16.mxu1 %v7407_v13  ;;  %v7497_v14 = vld [vmem:[#allocation7 + $0x3a4] ss:$24 sps:$4 sm:$0xff]   ;;  %v7495_v13 = vld [vmem:[#allocation7 + $0x3a0] ss:$24 sps:$4 sm:$0xff]  }
 0x535   :  { %5643 = vmatprep.subr.bf16.mxu0 %v7410_v15  ;;  %v7500_v15 = vld [vmem:[#allocation7 + $0x374] ss:$24 sps:$4 sm:$0xff]  }
 0x537   :  { %5603 = vmatpush1.bf16.msra.mxu1 %v7405_v16  ;;  %v7503_v16 = vld [vmem:[#allocation7 + $0x344] ss:$24 sps:$4 sm:$0xff]  }
 0x538   :  { %5644 = vmatpush1.bf16.msra.mxu0 %v7408_v17  ;;  %5604 = vmatprep.subr.bf16.mxu1 %v7413_v4  ;;  %v7506_v17 = vld [vmem:[#allocation7 + $0x314] ss:$24 sps:$4 sm:$0xff]   ;;  %v7504_v4 = vld [vmem:[#allocation7 + $0x310] ss:$24 sps:$4 sm:$0xff]  }
 0x539   :  { %5645 = vmatprep.subr.bf16.mxu0 %v7416_v2  ;;  %v7509_v2 = vld [vmem:[#allocation7 + $0x5e4] ss:$24 sps:$4 sm:$0xff]  }
 0x53b   :  { %5605 = vmatpush1.bf16.msra.mxu1 %v7411_v34  ;;  %v7507_v34 = vld [vmem:[#allocation7 + $0x5e0] ss:$24 sps:$4 sm:$0xff]  }
 0x53c   :  { %5646 = vmatpush1.bf16.msra.mxu0 %v7414_v5  ;;  %5606 = vmatprep.subr.bf16.mxu1 %v7419_v6  ;;  %v7512_v5 = vld [vmem:[#allocation7 + $0x5b4] ss:$24 sps:$4 sm:$0xff]   ;;  %v7510_v6 = vld [vmem:[#allocation7 + $0x5b0] ss:$24 sps:$4 sm:$0xff]  }
 0x53d   :  { %5647 = vmatprep.subr.bf16.mxu0 %v7422_v56  ;;  %v7515_v56 = vld [vmem:[#allocation7 + $0x584] ss:$24 sps:$4 sm:$0xff]  }
 0x53f   :  { %5607 = vmatpush1.bf16.msra.mxu1 %v7417_v7  ;;  %v7513_v7 = vld [vmem:[#allocation7 + $0x580] ss:$24 sps:$4 sm:$0xff]  }
 0x540   :  { %5648 = vmatpush1.bf16.msra.mxu0 %v7420_v52  ;;  %5608 = vmatprep.subr.bf16.mxu1 %v7425_v8  ;;  %v7518_v52 = vld [vmem:[#allocation7 + $0x554] ss:$24 sps:$4 sm:$0xff]   ;;  %v7516_v8 = vld [vmem:[#allocation7 + $0x550] ss:$24 sps:$4 sm:$0xff]  }
 0x541   :  { %5649 = vmatprep.subr.bf16.mxu0 %v7428_v9  ;;  %v7521_v9 = vld [vmem:[#allocation7 + $0x524] ss:$24 sps:$4 sm:$0xff]  }
 0x543   :  { %5609 = vmatpush1.bf16.msra.mxu1 %v7423_v10  ;;  %v7519_v10 = vld [vmem:[#allocation7 + $0x520] ss:$24 sps:$4 sm:$0xff]  }
 0x544   :  { %5650 = vmatpush1.bf16.msra.mxu0 %v7426_v11  ;;  %5610 = vmatprep.subr.bf16.mxu1 %v7431_v35  ;;  %v7524_v11 = vld [vmem:[#allocation7 + $0x4f4] ss:$24 sps:$4 sm:$0xff]   ;;  %v7522_v35 = vld [vmem:[#allocation7 + $0x4f0] ss:$24 sps:$4 sm:$0xff]  }
 0x545   :  { %5651 = vmatprep.subr.bf16.mxu0 %v7434_v12  ;;  %v7527_v12 = vld [vmem:[#allocation7 + $0x4c4] ss:$24 sps:$4 sm:$0xff]  }
 0x547   :  { %5611 = vmatpush1.bf16.msra.mxu1 %v7429_v59  ;;  %v7525_v59 = vld [vmem:[#allocation7 + $0x4c0] ss:$24 sps:$4 sm:$0xff]  }
 0x548   :  { %5652 = vmatpush1.bf16.msra.mxu0 %v7432_v63  ;;  %5612 = vmatprep.subr.bf16.mxu1 %v7437_v3  ;;  %v7530_v63 = vld [vmem:[#allocation7 + $0x494] ss:$24 sps:$4 sm:$0xff]   ;;  %v7528_v3 = vld [vmem:[#allocation7 + $0x490] ss:$24 sps:$4 sm:$0xff]  }
 0x549   :  { %5653 = vmatprep.subr.bf16.mxu0 %v7440_v24 }
 0x54b   :  { %5613 = vmatpush2.bf16.msra.mxu1 %v7435_v22 }
 0x54c   :  { %5654 = vmatpush2.bf16.msra.mxu0 %v7438_v25  ;;  %5614 = vmatprep.subr.bf16.mxu1 %v7443_v33 }
 0x54d   :  { %5655 = vmatprep.subr.bf16.mxu0 %v7446_v38 }
 0x54f   :  { %5615 = vmatpush2.bf16.msra.mxu1 %v7441_v40 }
 0x550   :  { %5656 = vmatpush2.bf16.msra.mxu0 %v7444_v41  ;;  %5616 = vmatprep.subr.bf16.mxu1 %v7449_v28 }
 0x551   :  { %5657 = vmatprep.subr.bf16.mxu0 %v7452_v42 }
 0x553   :  { %5617 = vmatpush2.bf16.msra.mxu1 %v7447_v50 }
 0x554   :  { %5658 = vmatpush2.bf16.msra.mxu0 %v7450_v43  ;;  %5618 = vmatprep.subr.bf16.mxu1 %v7455_v44 }
 0x555   :  { %5659 = vmatprep.subr.bf16.mxu0 %v7458_v45 }
 0x557   :  { %5619 = vmatpush2.bf16.msra.mxu1 %v7453_v46 }
 0x558   :  { %5660 = vmatpush2.bf16.msra.mxu0 %v7456_v51  ;;  %5620 = vmatprep.subr.bf16.mxu1 %v7461_v39 }
 0x559   :  { %5661 = vmatprep.subr.bf16.mxu0 %v7464_v20 }
 0x55b   :  { %5621 = vmatpush2.bf16.msra.mxu1 %v7459_v47 }
 0x55c   :  { %5662 = vmatpush2.bf16.msra.mxu0 %v7462_v31  ;;  %5622 = vmatprep.subr.bf16.mxu1 %v7467_v48 }
 0x55d   :  { %5663 = vmatprep.subr.bf16.mxu0 %v7470_v54 }
 0x55f   :  { %5623 = vmatpush2.bf16.msra.mxu1 %v7465_v37 }
 0x560   :  { %5664 = vmatpush2.bf16.msra.mxu0 %v7468_v49  ;;  %5624 = vmatprep.subr.bf16.mxu1 %v7473_v36 }
 0x561   :  { %5665 = vmatprep.subr.bf16.mxu0 %v7476_v55 }
 0x563   :  { %5625 = vmatpush2.bf16.msra.mxu1 %v7471_v57 }
 0x564   :  { %5666 = vmatpush2.bf16.msra.mxu0 %v7474_v60  ;;  %5626 = vmatprep.subr.bf16.mxu1 %v7479_v61 }
 0x565   :  { %5667 = vmatprep.subr.bf16.mxu0 %v7482_v62 }
 0x567   :  { %5627 = vmatpush2.bf16.msra.mxu1 %v7477_v18 }
 0x568   :  { %5668 = vmatpush2.bf16.msra.mxu0 %v7480_v21  ;;  %5678 = vmatprep.subr.bf16.mxu1 %v7485_v23 }
 0x56a   :  { %5629 = vmatmul.mubr.bf16.vlgmr.msra.gmra.mxu1 %v8093_v30 }
 0x56b   :  { %5670 = vmatmul.mubr.bf16.vlgmr.msra.gmra.mxu0 %v8040_v58  ;;  %5679 = vmatpush1.bf16.msra.mxu1 %v7483_v26  ;;  %v7498_v58 = vld [vmem:[#allocation7 + $0x370] ss:$24 sps:$4 sm:$0xff]  }
 0x56c   :  { %5710 = vmatprep.mubr.bf16.mxu1 %v8091_v19  ;;  %5680 = vmatprep.subr.bf16.mxu1 %v7488_v0  ;;  %v7501_v19 = vld [vmem:[#allocation7 + $0x340] ss:$24 sps:$4 sm:$0xff]  }
 0x56f   :  { %5681 = vmatpush1.bf16.msra.mxu1 %v7486_v27 }
 0x570   :  { %5682 = vmatprep.subr.bf16.mxu1 %v7491_v32 }
 0x573   :  { %5683 = vmatpush1.bf16.msra.mxu1 %v7489_v1 }
 0x574   :  { %5684 = vmatprep.subr.bf16.mxu1 %v7494_v29 }
 0x577   :  { %5685 = vmatpush1.bf16.msra.mxu1 %v7492_v53 }
 0x578   :  { %5686 = vmatprep.subr.bf16.mxu1 %v7497_v14 }
 0x57b   :  { %5687 = vmatpush1.bf16.msra.mxu1 %v7495_v13 }
 0x57c   :  { %5688 = vmatprep.subr.bf16.mxu1 %v7500_v15 }
 0x57f   :  { %5689 = vmatpush1.bf16.msra.mxu1 %v7498_v58 }
 0x580   :  { %5690 = vmatprep.subr.bf16.mxu1 %v7503_v16 }
 0x583   :  { %5691 = vmatpush1.bf16.msra.mxu1 %v7501_v19 }
 0x584   :  { %5692 = vmatprep.subr.bf16.mxu1 %v7506_v17 }
 0x587   :  { %5693 = vmatpush1.bf16.msra.mxu1 %v7504_v4 }
 0x588   :  { %5694 = vmatprep.subr.bf16.mxu1 %v7509_v2 }
 0x58b   :  { %5695 = vmatpush2.bf16.msra.mxu1 %v7507_v34 }
 0x58c   :  { %5696 = vmatprep.subr.bf16.mxu1 %v7512_v5 }
 0x58f   :  { %5697 = vmatpush2.bf16.msra.mxu1 %v7510_v6 }
 0x590   :  { %5698 = vmatprep.subr.bf16.mxu1 %v7515_v56 }
 0x593   :  { %5699 = vmatpush2.bf16.msra.mxu1 %v7513_v7 }
 0x594   :  { %5700 = vmatprep.subr.bf16.mxu1 %v7518_v52 }
 0x597   :  { %5701 = vmatpush2.bf16.msra.mxu1 %v7516_v8 }
 0x598   :  { %5702 = vmatprep.subr.bf16.mxu1 %v7521_v9 }
 0x59b   :  { %5703 = vmatpush2.bf16.msra.mxu1 %v7519_v10 }
 0x59c   :  { %5704 = vmatprep.subr.bf16.mxu1 %v7524_v11 }
 0x59f   :  { %5705 = vmatpush2.bf16.msra.mxu1 %v7522_v35 }
 0x5a0   :  { %5706 = vmatprep.subr.bf16.mxu1 %v7527_v12 }
 0x5a3   :  { %5707 = vmatpush2.bf16.msra.mxu1 %v7525_v59 }
 0x5a4   :  { %5708 = vmatprep.subr.bf16.mxu1 %v7530_v63 }
 0x5a7   :  { %5709 = vmatpush2.bf16.msra.mxu1 %v7528_v3 }
 0x5aa   :  { %5711 = vmatmul.mubr.bf16.vlgmr.msra.gmra.mxu1 %v8093_v30  ;;  %v5507_v24 = vpop.f32.mrf.mxu0 }
 0x5ac   :  { %v5509_v22 = vpop.f32.mrf.mxu0 }
 0x5ae   :  { %v5511_v25 = vpop.f32.mrf.mxu0 }
 0x5b0   :  { %v5512_v33 = vpop.f32.mrf.mxu0 }
 0x5ea   :  { %v5548_v38 = vpop.f32.mrf.mxu1  ;;  %v5589_v40 = vpop.f32.mrf.mxu0 }
 0x5eb   :  { %v5549_v41 = vadd.f32 %v5548_v38, %v5507_v24 }
 0x5ec   :  { %v5550_v28 = vpop.f32.mrf.mxu1  ;;  %v5591_v42 = vpop.f32.mrf.mxu0 }
 0x5ed   :  { %7535 = vtanh.f32 %v5549_v41  ;;  %v5551_v50 = vadd.f32 %v5550_v28, %v5509_v22 }
 0x5ee   :  { %v5552_v43 = vpop.f32.mrf.mxu1  ;;  %v5593_v44 = vpop.f32.mrf.mxu0 }
 0x5ef   :  { %7537 = vtanh.f32 %v5551_v50 }
 0x5f0   :  { %v5553_v45 = vpop.f32.mrf.mxu1  ;;  %v5594_v46 = vpop.f32.mrf.mxu0 }
 0x5fa   :  { %v7536_v51 = vpop.eup %7535 }
 0x5fb   :  { %v5725_v39 = vmul.f32 0.5, %v7536_v51 }
 0x5fc   :  { %v7538_v20 = vpop.eup %7537 }
 0x5fd   :  { %v5726_v30 = vmul.f32 0.5, %v7538_v20  ;;  %v5731_v47 = vadd.f32 0.5, %v5725_v39 }
 0x5ff   :  { %v5732_v31 = vadd.f32 0.5, %v5726_v30 }
 0x601   :  { %v5743_v48 = vcombine.low %v5731_v47, %v5732_v31 }
 0x603   :  { %5749 = vst [vmem:[%s8119_s6] sm:$0xff] %v5743_v48 }
 0x62a   :  { %v5630_v54 = vpop.f32.mrf.mxu1 }
 0x62b   :  { %v5631_v37 = vadd.f32 %v5630_v54, %v5589_v40  ;;  %v5671_v49 = vpop.f32.mrf.mxu0 }
 0x62c   :  { %v5632_v36 = vpop.f32.mrf.mxu1 }
 0x62d   :  { %7539 = vtanh.f32 %v5631_v37  ;;  %v5633_v55 = vadd.f32 %v5632_v36, %v5591_v42  ;;  %v5673_v57 = vpop.f32.mrf.mxu0 }
 0x62e   :  { %v5634_v60 = vpop.f32.mrf.mxu1 }
 0x62f   :  { %7541 = vtanh.f32 %v5633_v55  ;;  %v5675_v61 = vpop.f32.mrf.mxu0 }
 0x630   :  { %v5635_v62 = vpop.f32.mrf.mxu1 }
 0x631   :  { %v5676_v18 = vpop.f32.mrf.mxu0 }
 0x63a   :  { %v7540_v21 = vpop.eup %7539 }
 0x63b   :  { %v5727_v23 = vmul.f32 0.5, %v7540_v21 }
 0x63c   :  { %v7542_v26 = vpop.eup %7541 }
 0x63d   :  { %v5728_v0 = vmul.f32 0.5, %v7542_v26  ;;  %v5733_v27 = vadd.f32 0.5, %v5727_v23 }
 0x63f   :  { %v5734_v32 = vadd.f32 0.5, %v5728_v0 }
 0x641   :  { %v5744_v1 = vcombine.low %v5733_v27, %v5734_v32 }
 0x643   :  { %5750 = vst [vmem:[%s8119_s6 + $0x8] sm:$0xff] %v5744_v1 }
 0x66a   :  { %v5712_v29 = vpop.f32.mrf.mxu1 }
 0x66b   :  { %v5713_v53 = vadd.f32 %v5712_v29, %v5671_v49 }
 0x66c   :  { %v5714_v14 = vpop.f32.mrf.mxu1 }
 0x66d   :  { %7543 = vtanh.f32 %v5713_v53  ;;  %v5715_v13 = vadd.f32 %v5714_v14, %v5673_v57 }
 0x66e   :  { %v5716_v15 = vpop.f32.mrf.mxu1 }
 0x66f   :  { %7545 = vtanh.f32 %v5715_v13 }
 0x670   :  { %v5717_v58 = vpop.f32.mrf.mxu1 }
 0x67a   :  { %v7544_v16 = vpop.eup %7543 }
 0x67b   :  { %v5729_v19 = vmul.f32 0.5, %v7544_v16 }
 0x67c   :  { %v7546_v17 = vpop.eup %7545 }
 0x67d   :  { %v5730_v4 = vmul.f32 0.5, %v7546_v17  ;;  %v5735_v2 = vadd.f32 0.5, %v5729_v19 }
 0x67f   :  { %v5736_v34 = vadd.f32 0.5, %v5730_v4 }
 0x681   :  { %v5745_v5 = vcombine.low %v5735_v2, %v5736_v34 }
 0x683   :  { %5751 = vst [vmem:[%s8119_s6 + $0x10] sm:$0xff] %v5745_v5 }
 0x684   :  { %5760 = vsyncpa [#allocation4], 1 }
 0x685   :  { %5761 = vsyncpa [#allocation6], 1 }

</bundles_post_ra>
